<compile_context>
chip_gen: v6e
topology: v6e:2x2x1
jax: 0.10.0
libtpu: 0.0.40
codegen_flags: <defaults>
</compile_context>

<pallas_src>
import numpy as np
import jax
import jax.numpy as jnp
from jax.experimental import pallas as pl
from jax.experimental.pallas import tpu as pltpu

# ----------------------------------------------------------------------------
# Flat-geometry constants (per image: feature maps are [C rows, H*W lanes]).
# ----------------------------------------------------------------------------
_G1 = 32 * 32                    # conv1 geometry: 32x32 flat (valid out 28x28)
_X_LANES = _G1 + 4 * 32 + 4      # 1156: room for all 25 conv1 tap offsets
_M1_LEN = 896                    # pool1 shifted-max width (needs > 858)
_P1_LANES = 384                  # pool1 out lanes: 16x16 geometry + conv2 margin
_G2 = 16 * 16                    # conv2 geometry: 16x16 flat (valid out 10x10)
_M2_LEN = 192                    # pool2 shifted-max width (needs > 136)
_P2_PER_C = 32                   # packed 5x5 pool2 lanes per channel (25 used)
_FC_K = 16 * _P2_PER_C           # 512: single stacked-K contraction for fc

# Static checks of the hand-derived lane margins (reviewer correctness note).
assert _X_LANES >= 4 * 32 + 4 + _G1            # conv1 taps stay inside padded x
assert 33 + _M1_LEN <= _G1                     # pool1 shifted slices stay in a1
assert 2 * 13 * 32 + 2 * 13 < _M1_LEN          # last valid pool1 source covered
assert 4 * 16 + 4 + _G2 <= _P1_LANES           # conv2 taps stay inside p1
assert 17 + _M2_LEN <= _G2                     # pool2 shifted slices stay in a2
assert 2 * 4 * 16 + 2 * 4 < _M2_LEN            # last valid pool2 source covered


def _pool_selection(src_w, dst_w, n_valid, src_len, dst_len):
    """0/1 matrix: column (y*dst_w + x) picks flat source index (2y*src_w + 2x)."""
    sel = np.zeros((src_len, dst_len), np.float32)
    for y in range(n_valid):
        for x in range(n_valid):
            sel[2 * y * src_w + 2 * x, y * dst_w + x] = 1.0
    return sel


_SEL1 = _pool_selection(32, 16, 14, _M1_LEN, _P1_LANES)   # 28x28 -> 14x14 (16x16 geom)
_SEL2 = _pool_selection(16, 5, 5, _M2_LEN, _P2_PER_C)     # 10x10 -> 5x5 (packed, 32 lanes)
# Widened pool2 selection: channel c's packed map lands in lanes [c*32, c*32+25).
_SEL2WIDE = np.tile(_SEL2, (1, 16))                       # [192, 512]
# Block-diagonal mask picking row c of the widened selection for lane block c.
_MASK = np.zeros((16, _FC_K), np.float32)
for _c in range(16):
    _MASK[_c, _c * _P2_PER_C:(_c + 1) * _P2_PER_C] = 1.0


# ----------------------------------------------------------------------------
# Fused kernel: one image per grid step.  Rows = channels, lanes = flat spatial
# index of the current geometry.  Out-of-image lanes hold finite garbage/zeros
# and are never selected (the 0/1 selection matmuls drop them at each pool).
# ----------------------------------------------------------------------------
def _lenet5_kernel(x_ref, w1_ref, b1_ref, w2_ref, b2_ref, sel1_ref, sel2_ref,
                   mask_ref, wfc_ref, bfc_ref, wfc1_ref, bfc1_ref,
                   wfc2_ref, bfc2_ref, out_ref):
    f32 = jnp.float32
    bf16 = jnp.bfloat16

    x = x_ref[0]                                              # [1, 1156] bf16

    # ---- layer1: conv(1->6,k5)+BN+ReLU as ONE stacked-K matmul (K=25) ----
    taps1 = jnp.concatenate(
        [x[:, kh * 32 + kw: kh * 32 + kw + _G1]
         for kh in range(5) for kw in range(5)], axis=0)      # [25, 1024] bf16
    a1 = jnp.maximum(
        jnp.dot(w1_ref[...], taps1, preferred_element_type=f32) + b1_ref[...],
        0.0)                                                  # [6, 1024] f32

    # ---- maxpool1 (2x2/2): 4 shifted-lane max + 0/1 selection matmul ----
    m1 = jnp.maximum(
        jnp.maximum(a1[:, 0:_M1_LEN], a1[:, 1:_M1_LEN + 1]),
        jnp.maximum(a1[:, 32:_M1_LEN + 32], a1[:, 33:_M1_LEN + 33]))
    p1 = jnp.dot(m1.astype(bf16), sel1_ref[...],
                 preferred_element_type=f32)                  # [6, 384] f32

    # ---- layer2: conv(6->16,k5)+BN+ReLU as ONE stacked-K matmul (K=150) ----
    p1b = p1.astype(bf16)
    taps2 = jnp.concatenate(
        [p1b[:, kh * 16 + kw: kh * 16 + kw + _G2]
         for kh in range(5) for kw in range(5)], axis=0)      # [150, 256] bf16
    a2 = jnp.maximum(
        jnp.dot(w2_ref[...], taps2, preferred_element_type=f32) + b2_ref[...],
        0.0)                                                  # [16, 256] f32

    # ---- maxpool2 + (C,H,W) flatten: shifted max, widened selection matmul,
    # ---- block-diagonal mask + row-sum -> lane-dense FC input [1, 512] ----
    m2 = jnp.maximum(
        jnp.maximum(a2[:, 0:_M2_LEN], a2[:, 1:_M2_LEN + 1]),
        jnp.maximum(a2[:, 16:_M2_LEN + 16], a2[:, 17:_M2_LEN + 17]))
    p2w = jnp.dot(m2.astype(bf16), sel2_ref[...],
                  preferred_element_type=f32)                 # [16, 512] f32
    fc_in = jnp.sum(p2w * mask_ref[...], axis=0, keepdims=True)   # [1, 512]

    # ---- fc 400->120 (one K=512 matmul) + ReLU, fc1 + ReLU, fc2 ----
    y = jnp.maximum(
        jnp.dot(fc_in.astype(bf16), wfc_ref[...],
                preferred_element_type=f32) + bfc_ref[...], 0.0)   # [1, 120]
    y = jnp.maximum(
        jnp.dot(y.astype(bf16), wfc1_ref[...],
                preferred_element_type=f32) + bfc1_ref[...], 0.0)  # [1, 84]
    out_ref[0] = (jnp.dot(y.astype(bf16), wfc2_ref[...],
                          preferred_element_type=f32) + bfc2_ref[...])


# ----------------------------------------------------------------------------
# Wrapper: fold BN, pre-pack weights (weight-side only), one grid-parallel call.
# ----------------------------------------------------------------------------
def _fold_bn(conv_b, gamma, beta, mean, var, eps=1e-5):
    # TODO(synk): BatchNorm applied in inference form (running stats); PyTorch
    # train-mode batch statistics are not reproduced here.
    scale = gamma / jnp.sqrt(var + eps)
    bias = (conv_b - mean) * scale + beta
    return scale.astype(jnp.float32), bias.astype(jnp.float32)


def _const_spec(a):
    zeros = (0,) * a.ndim
    return pl.BlockSpec(a.shape, lambda b: zeros)


def lenet5_forward(params, x_nchw):
    f32, bf16 = jnp.float32, jnp.bfloat16
    n = x_nchw.shape[0]
    num_classes = params["fc2_w"].shape[0]

    # input: [N,1,32,32] -> [N, 1, 1156] (flat 32x32 + zero margin for conv1 taps)
    x = x_nchw.astype(f32).reshape(n, 1, _G1)
    x = jnp.pad(x, ((0, 0), (0, 0), (0, _X_LANES - _G1))).astype(bf16)

    # conv1 weights: BN scale folded, taps on the contraction axis -> [6, 25]
    s1, bb1 = _fold_bn(params["conv1_b"], params["bn1_gamma"], params["bn1_beta"],
                       params["bn1_mean"], params["bn1_var"])
    w1 = (params["conv1_w"].reshape(6, 25) * s1[:, None]).astype(bf16)
    b1 = bb1[:, None]                                              # [6, 1] f32

    # conv2 weights: contraction index (kh*5+kw)*6 + cin -> [16, 150]
    s2, bb2 = _fold_bn(params["conv2_b"], params["bn2_gamma"], params["bn2_beta"],
                       params["bn2_mean"], params["bn2_var"])
    w2 = (params["conv2_w"] * s2[:, None, None, None]).transpose(0, 2, 3, 1)
    w2 = w2.reshape(16, 150).astype(bf16)
    b2 = bb2[:, None]                                              # [16, 1] f32

    # fc weights: rows c*32 + (y*5+x), matching the packed 5x5-per-channel
    # flatten produced in-kernel (PyTorch (C,H,W) order, lanes 25..31 zero).
    wfc = params["fc_w"].T.reshape(16, 25, 120)
    wfc = jnp.pad(wfc, ((0, 0), (0, _P2_PER_C - 25), (0, 0)))
    wfc = wfc.reshape(_FC_K, 120).astype(bf16)

    args = (x, w1, b1, w2, b2,
            jnp.asarray(_SEL1, bf16), jnp.asarray(_SEL2WIDE, bf16),
            jnp.asarray(_MASK, f32),
            wfc, params["fc_b"][None, :].astype(f32),
            params["fc1_w"].T.astype(bf16), params["fc1_b"][None, :].astype(f32),
            params["fc2_w"].T.astype(bf16), params["fc2_b"][None, :].astype(f32))

    in_specs = [pl.BlockSpec((1, 1, _X_LANES), lambda b: (b, 0, 0))]
    in_specs += [_const_spec(a) for a in args[1:]]

    out = pl.pallas_call(
        _lenet5_kernel,
        out_shape=jax.ShapeDtypeStruct((n, 1, num_classes), f32),
        grid=(n,),
        in_specs=in_specs,
        out_specs=pl.BlockSpec((1, 1, num_classes), lambda b: (b, 0, 0)),
        compiler_params=pltpu.CompilerParams(
            dimension_semantics=("parallel",),
            vmem_limit_bytes=32 * 1024 * 1024),
    )(*args)
    return out.reshape(n, num_classes)


# ----------------------------------------------------------------------------
# Parameters (deterministic, PyTorch-default-style uniform init)
# ----------------------------------------------------------------------------
def init_params(key, num_classes=10):
    keys = jax.random.split(key, 16)

    def u(k, shape, fan_in):
        bound = 1.0 / jnp.sqrt(fan_in)
        return jax.random.uniform(k, shape, jnp.float32, -bound, bound)

    return {
        "conv1_w": u(keys[0], (6, 1, 5, 5), 1 * 25),
        "conv1_b": u(keys[1], (6,), 1 * 25),
        "bn1_gamma": jnp.ones((6,), jnp.float32),
        "bn1_beta": jnp.zeros((6,), jnp.float32),
        "bn1_mean": jnp.zeros((6,), jnp.float32),
        "bn1_var": jnp.ones((6,), jnp.float32),
        "conv2_w": u(keys[2], (16, 6, 5, 5), 6 * 25),
        "conv2_b": u(keys[3], (16,), 6 * 25),
        "bn2_gamma": jnp.ones((16,), jnp.float32),
        "bn2_beta": jnp.zeros((16,), jnp.float32),
        "bn2_mean": jnp.zeros((16,), jnp.float32),
        "bn2_var": jnp.ones((16,), jnp.float32),
        "fc_w": u(keys[4], (120, 400), 400),
        "fc_b": u(keys[5], (120,), 400),
        "fc1_w": u(keys[6], (84, 120), 120),
        "fc1_b": u(keys[7], (84,), 120),
        "fc2_w": u(keys[8], (num_classes, 84), 84),
        "fc2_b": u(keys[9], (num_classes,), 84),
    }


# ----------------------------------------------------------------------------
# Pure-JAX reference (numerical sanity check against the kernel)
# ----------------------------------------------------------------------------
def _reference_forward(params, x):
    eps = 1e-5

    def block(z, w, cb, g, bt, m, v):
        z = jax.lax.conv(z, w, (1, 1), "VALID",
                         precision=jax.lax.Precision.HIGHEST)
        z = z + cb[None, :, None, None]
        z = (z - m[None, :, None, None]) * (
            g[None, :, None, None] / jnp.sqrt(v[None, :, None, None] + eps)
        ) + bt[None, :, None, None]
        z = jnp.maximum(z, 0.0)
        return jax.lax.reduce_window(z, -jnp.inf, jax.lax.max,
                                     (1, 1, 2, 2), (1, 1, 2, 2), "VALID")

    y = block(x, params["conv1_w"], params["conv1_b"], params["bn1_gamma"],
              params["bn1_beta"], params["bn1_mean"], params["bn1_var"])
    y = block(y, params["conv2_w"], params["conv2_b"], params["bn2_gamma"],
              params["bn2_beta"], params["bn2_mean"], params["bn2_var"])
    y = y.reshape(y.shape[0], -1)
    hi = jax.lax.Precision.HIGHEST
    y = jnp.maximum(jnp.dot(y, params["fc_w"].T, precision=hi) + params["fc_b"], 0.0)
    y = jnp.maximum(jnp.dot(y, params["fc1_w"].T, precision=hi) + params["fc1_b"], 0.0)
    return jnp.dot(y, params["fc2_w"].T, precision=hi) + params["fc2_b"]


# ----------------------------------------------------------------------------
if __name__ == "__main__":
    num_classes = 10
    key = jax.random.PRNGKey(0)
    pkey, xkey = jax.random.split(key)

    params = init_params(pkey, num_classes)
    # LeNet-5 with Linear(400, 120) implies 1x32x32 inputs; batch=2.
    x = jax.random.normal(xkey, (2, 1, 32, 32), jnp.float32)

    logits = jax.jit(lenet5_forward)(params, x)
    jax.block_until_ready(logits)
    assert logits.shape == (2, num_classes), logits.shape

    ref = _reference_forward(params, x)
    np.testing.assert_allclose(np.asarray(logits), np.asarray(ref),
                               rtol=2e-2, atol=2e-2)
    print("KERNEL_OK")
</pallas_src>

<mosaic_0001>
module attributes {stable_mosaic.version = 11 : i64} {
  func.func @_lenet5_kernel(%arg0: i32, %arg1: memref<1x1x1156xbf16, #tpu.memory_space<vmem>>, %arg2: memref<6x25xbf16, #tpu.memory_space<vmem>>, %arg3: memref<6x1xf32, #tpu.memory_space<vmem>>, %arg4: memref<16x150xbf16, #tpu.memory_space<vmem>>, %arg5: memref<16x1xf32, #tpu.memory_space<vmem>>, %arg6: memref<896x384xbf16, #tpu.memory_space<vmem>>, %arg7: memref<192x512xbf16, #tpu.memory_space<vmem>>, %arg8: memref<16x512xf32, #tpu.memory_space<vmem>>, %arg9: memref<512x120xbf16, #tpu.memory_space<vmem>>, %arg10: memref<1x120xf32, #tpu.memory_space<vmem>>, %arg11: memref<120x84xbf16, #tpu.memory_space<vmem>>, %arg12: memref<1x84xf32, #tpu.memory_space<vmem>>, %arg13: memref<84x10xbf16, #tpu.memory_space<vmem>>, %arg14: memref<1x10xf32, #tpu.memory_space<vmem>>, %arg15: memref<1x1x10xf32, #tpu.memory_space<vmem>>) attributes {dimension_semantics = [#tpu.dimension_semantics<parallel>], iteration_bounds = array<i64: 2>, scalar_prefetch = 0 : i64, scratch_operands = 0 : i64, tpu.core_type = #tpu.core_type<tc>, window_params = [{transform_indices = @transform_0, window_bounds = array<i64: 1, 1, 1156>}, {pipeline_mode = #tpu.pipeline_mode<synchronous>, transform_indices = @transform_1, window_bounds = array<i64: 6, 25>}, {pipeline_mode = #tpu.pipeline_mode<synchronous>, transform_indices = @transform_2, window_bounds = array<i64: 6, 1>}, {pipeline_mode = #tpu.pipeline_mode<synchronous>, transform_indices = @transform_3, window_bounds = array<i64: 16, 150>}, {pipeline_mode = #tpu.pipeline_mode<synchronous>, transform_indices = @transform_4, window_bounds = array<i64: 16, 1>}, {pipeline_mode = #tpu.pipeline_mode<synchronous>, transform_indices = @transform_5, window_bounds = array<i64: 896, 384>}, {pipeline_mode = #tpu.pipeline_mode<synchronous>, transform_indices = @transform_6, window_bounds = array<i64: 192, 512>}, {pipeline_mode = #tpu.pipeline_mode<synchronous>, transform_indices = @transform_7, window_bounds = array<i64: 16, 512>}, {pipeline_mode = #tpu.pipeline_mode<synchronous>, transform_indices = @transform_8, window_bounds = array<i64: 512, 120>}, {pipeline_mode = #tpu.pipeline_mode<synchronous>, transform_indices = @transform_9, window_bounds = array<i64: 1, 120>}, {pipeline_mode = #tpu.pipeline_mode<synchronous>, transform_indices = @transform_10, window_bounds = array<i64: 120, 84>}, {pipeline_mode = #tpu.pipeline_mode<synchronous>, transform_indices = @transform_11, window_bounds = array<i64: 1, 84>}, {pipeline_mode = #tpu.pipeline_mode<synchronous>, transform_indices = @transform_12, window_bounds = array<i64: 84, 10>}, {pipeline_mode = #tpu.pipeline_mode<synchronous>, transform_indices = @transform_13, window_bounds = array<i64: 1, 10>}, {transform_indices = @transform_14, window_bounds = array<i64: 1, 1, 10>}]} {
    %c0 = arith.constant 0 : index
    %c0_0 = arith.constant 0 : index
    %c0_1 = arith.constant 0 : index
    %0 = vector.load %arg1[%c0, %c0_0, %c0_1] : memref<1x1x1156xbf16, #tpu.memory_space<vmem>>, vector<1x1x1156xbf16>
    %1 = vector.shape_cast %0 : vector<1x1x1156xbf16> to vector<1x1156xbf16>
    %2 = vector.extract_strided_slice %1 {offsets = [0, 0], sizes = [1, 1024], strides = [1, 1]} : vector<1x1156xbf16> to vector<1x1024xbf16>
    %3 = vector.extract_strided_slice %1 {offsets = [0, 1], sizes = [1, 1024], strides = [1, 1]} : vector<1x1156xbf16> to vector<1x1024xbf16>
    %4 = vector.extract_strided_slice %1 {offsets = [0, 2], sizes = [1, 1024], strides = [1, 1]} : vector<1x1156xbf16> to vector<1x1024xbf16>
    %5 = vector.extract_strided_slice %1 {offsets = [0, 3], sizes = [1, 1024], strides = [1, 1]} : vector<1x1156xbf16> to vector<1x1024xbf16>
    %6 = vector.extract_strided_slice %1 {offsets = [0, 4], sizes = [1, 1024], strides = [1, 1]} : vector<1x1156xbf16> to vector<1x1024xbf16>
    %7 = vector.extract_strided_slice %1 {offsets = [0, 32], sizes = [1, 1024], strides = [1, 1]} : vector<1x1156xbf16> to vector<1x1024xbf16>
    %8 = vector.extract_strided_slice %1 {offsets = [0, 33], sizes = [1, 1024], strides = [1, 1]} : vector<1x1156xbf16> to vector<1x1024xbf16>
    %9 = vector.extract_strided_slice %1 {offsets = [0, 34], sizes = [1, 1024], strides = [1, 1]} : vector<1x1156xbf16> to vector<1x1024xbf16>
    %10 = vector.extract_strided_slice %1 {offsets = [0, 35], sizes = [1, 1024], strides = [1, 1]} : vector<1x1156xbf16> to vector<1x1024xbf16>
    %11 = vector.extract_strided_slice %1 {offsets = [0, 36], sizes = [1, 1024], strides = [1, 1]} : vector<1x1156xbf16> to vector<1x1024xbf16>
    %12 = vector.extract_strided_slice %1 {offsets = [0, 64], sizes = [1, 1024], strides = [1, 1]} : vector<1x1156xbf16> to vector<1x1024xbf16>
    %13 = vector.extract_strided_slice %1 {offsets = [0, 65], sizes = [1, 1024], strides = [1, 1]} : vector<1x1156xbf16> to vector<1x1024xbf16>
    %14 = vector.extract_strided_slice %1 {offsets = [0, 66], sizes = [1, 1024], strides = [1, 1]} : vector<1x1156xbf16> to vector<1x1024xbf16>
    %15 = vector.extract_strided_slice %1 {offsets = [0, 67], sizes = [1, 1024], strides = [1, 1]} : vector<1x1156xbf16> to vector<1x1024xbf16>
    %16 = vector.extract_strided_slice %1 {offsets = [0, 68], sizes = [1, 1024], strides = [1, 1]} : vector<1x1156xbf16> to vector<1x1024xbf16>
    %17 = vector.extract_strided_slice %1 {offsets = [0, 96], sizes = [1, 1024], strides = [1, 1]} : vector<1x1156xbf16> to vector<1x1024xbf16>
    %18 = vector.extract_strided_slice %1 {offsets = [0, 97], sizes = [1, 1024], strides = [1, 1]} : vector<1x1156xbf16> to vector<1x1024xbf16>
    %19 = vector.extract_strided_slice %1 {offsets = [0, 98], sizes = [1, 1024], strides = [1, 1]} : vector<1x1156xbf16> to vector<1x1024xbf16>
    %20 = vector.extract_strided_slice %1 {offsets = [0, 99], sizes = [1, 1024], strides = [1, 1]} : vector<1x1156xbf16> to vector<1x1024xbf16>
    %21 = vector.extract_strided_slice %1 {offsets = [0, 100], sizes = [1, 1024], strides = [1, 1]} : vector<1x1156xbf16> to vector<1x1024xbf16>
    %22 = vector.extract_strided_slice %1 {offsets = [0, 128], sizes = [1, 1024], strides = [1, 1]} : vector<1x1156xbf16> to vector<1x1024xbf16>
    %23 = vector.extract_strided_slice %1 {offsets = [0, 129], sizes = [1, 1024], strides = [1, 1]} : vector<1x1156xbf16> to vector<1x1024xbf16>
    %24 = vector.extract_strided_slice %1 {offsets = [0, 130], sizes = [1, 1024], strides = [1, 1]} : vector<1x1156xbf16> to vector<1x1024xbf16>
    %25 = vector.extract_strided_slice %1 {offsets = [0, 131], sizes = [1, 1024], strides = [1, 1]} : vector<1x1156xbf16> to vector<1x1024xbf16>
    %26 = vector.extract_strided_slice %1 {offsets = [0, 132], sizes = [1, 1024], strides = [1, 1]} : vector<1x1156xbf16> to vector<1x1024xbf16>
    %27 = tpu.concatenate %2, %3, %4, %5, %6, %7, %8, %9, %10, %11, %12, %13, %14, %15, %16, %17 in 0 : vector<1x1024xbf16>, vector<1x1024xbf16>, vector<1x1024xbf16>, vector<1x1024xbf16>, vector<1x1024xbf16>, vector<1x1024xbf16>, vector<1x1024xbf16>, vector<1x1024xbf16>, vector<1x1024xbf16>, vector<1x1024xbf16>, vector<1x1024xbf16>, vector<1x1024xbf16>, vector<1x1024xbf16>, vector<1x1024xbf16>, vector<1x1024xbf16>, vector<1x1024xbf16> -> vector<16x1024xbf16>
    %28 = tpu.concatenate %18, %19, %20, %21, %22, %23, %24, %25, %26 in 0 : vector<1x1024xbf16>, vector<1x1024xbf16>, vector<1x1024xbf16>, vector<1x1024xbf16>, vector<1x1024xbf16>, vector<1x1024xbf16>, vector<1x1024xbf16>, vector<1x1024xbf16>, vector<1x1024xbf16> -> vector<9x1024xbf16>
    %29 = tpu.concatenate %27, %28 in 0 : vector<16x1024xbf16>, vector<9x1024xbf16> -> vector<25x1024xbf16>
    %c0_2 = arith.constant 0 : index
    %c0_3 = arith.constant 0 : index
    %30 = vector.load %arg2[%c0_2, %c0_3] : memref<6x25xbf16, #tpu.memory_space<vmem>>, vector<6x25xbf16>
    %cst = arith.constant dense<0.000000e+00> : vector<6x1024xf32>
    %31 = tpu.matmul %30, %29, %cst {dimension_numbers = #tpu.dot_dimension_numbers<[1], [0], [0], [1], [0, 0, 1, 1], [], []>} : vector<6x25xbf16>, vector<25x1024xbf16>, vector<6x1024xf32> -> vector<6x1024xf32>
    %c0_4 = arith.constant 0 : index
    %c0_5 = arith.constant 0 : index
    %32 = vector.load %arg3[%c0_4, %c0_5] : memref<6x1xf32, #tpu.memory_space<vmem>>, vector<6x1xf32>
    %33 = vector.broadcast %32 : vector<6x1xf32> to vector<6x1024xf32>
    %34 = arith.addf %31, %33 : vector<6x1024xf32>
    %cst_6 = arith.constant 0.000000e+00 : f32
    %35 = vector.broadcast %cst_6 : f32 to vector<6x1024xf32>
    %36 = arith.maximumf %34, %35 : vector<6x1024xf32>
    %37 = vector.extract_strided_slice %36 {offsets = [0, 0], sizes = [6, 896], strides = [1, 1]} : vector<6x1024xf32> to vector<6x896xf32>
    %38 = vector.extract_strided_slice %36 {offsets = [0, 1], sizes = [6, 896], strides = [1, 1]} : vector<6x1024xf32> to vector<6x896xf32>
    %39 = arith.maximumf %37, %38 : vector<6x896xf32>
    %40 = vector.extract_strided_slice %36 {offsets = [0, 32], sizes = [6, 896], strides = [1, 1]} : vector<6x1024xf32> to vector<6x896xf32>
    %41 = vector.extract_strided_slice %36 {offsets = [0, 33], sizes = [6, 896], strides = [1, 1]} : vector<6x1024xf32> to vector<6x896xf32>
    %42 = arith.maximumf %40, %41 : vector<6x896xf32>
    %43 = arith.maximumf %39, %42 : vector<6x896xf32>
    %44 = arith.truncf %43 : vector<6x896xf32> to vector<6x896xbf16>
    %c0_7 = arith.constant 0 : index
    %c0_8 = arith.constant 0 : index
    %45 = vector.load %arg6[%c0_7, %c0_8] : memref<896x384xbf16, #tpu.memory_space<vmem>>, vector<896x384xbf16>
    %cst_9 = arith.constant dense<0.000000e+00> : vector<6x384xf32>
    %46 = tpu.matmul %44, %45, %cst_9 {dimension_numbers = #tpu.dot_dimension_numbers<[1], [0], [0], [1], [0, 0, 1, 1], [], []>} : vector<6x896xbf16>, vector<896x384xbf16>, vector<6x384xf32> -> vector<6x384xf32>
    %47 = arith.truncf %46 : vector<6x384xf32> to vector<6x384xbf16>
    %48 = vector.extract_strided_slice %47 {offsets = [0, 0], sizes = [6, 256], strides = [1, 1]} : vector<6x384xbf16> to vector<6x256xbf16>
    %49 = vector.extract_strided_slice %47 {offsets = [0, 1], sizes = [6, 256], strides = [1, 1]} : vector<6x384xbf16> to vector<6x256xbf16>
    %50 = vector.extract_strided_slice %47 {offsets = [0, 2], sizes = [6, 256], strides = [1, 1]} : vector<6x384xbf16> to vector<6x256xbf16>
    %51 = vector.extract_strided_slice %47 {offsets = [0, 3], sizes = [6, 256], strides = [1, 1]} : vector<6x384xbf16> to vector<6x256xbf16>
    %52 = vector.extract_strided_slice %47 {offsets = [0, 4], sizes = [6, 256], strides = [1, 1]} : vector<6x384xbf16> to vector<6x256xbf16>
    %53 = vector.extract_strided_slice %47 {offsets = [0, 16], sizes = [6, 256], strides = [1, 1]} : vector<6x384xbf16> to vector<6x256xbf16>
    %54 = vector.extract_strided_slice %47 {offsets = [0, 17], sizes = [6, 256], strides = [1, 1]} : vector<6x384xbf16> to vector<6x256xbf16>
    %55 = vector.extract_strided_slice %47 {offsets = [0, 18], sizes = [6, 256], strides = [1, 1]} : vector<6x384xbf16> to vector<6x256xbf16>
    %56 = vector.extract_strided_slice %47 {offsets = [0, 19], sizes = [6, 256], strides = [1, 1]} : vector<6x384xbf16> to vector<6x256xbf16>
    %57 = vector.extract_strided_slice %47 {offsets = [0, 20], sizes = [6, 256], strides = [1, 1]} : vector<6x384xbf16> to vector<6x256xbf16>
    %58 = vector.extract_strided_slice %47 {offsets = [0, 32], sizes = [6, 256], strides = [1, 1]} : vector<6x384xbf16> to vector<6x256xbf16>
    %59 = vector.extract_strided_slice %47 {offsets = [0, 33], sizes = [6, 256], strides = [1, 1]} : vector<6x384xbf16> to vector<6x256xbf16>
    %60 = vector.extract_strided_slice %47 {offsets = [0, 34], sizes = [6, 256], strides = [1, 1]} : vector<6x384xbf16> to vector<6x256xbf16>
    %61 = vector.extract_strided_slice %47 {offsets = [0, 35], sizes = [6, 256], strides = [1, 1]} : vector<6x384xbf16> to vector<6x256xbf16>
    %62 = vector.extract_strided_slice %47 {offsets = [0, 36], sizes = [6, 256], strides = [1, 1]} : vector<6x384xbf16> to vector<6x256xbf16>
    %63 = vector.extract_strided_slice %47 {offsets = [0, 48], sizes = [6, 256], strides = [1, 1]} : vector<6x384xbf16> to vector<6x256xbf16>
    %64 = vector.extract_strided_slice %47 {offsets = [0, 49], sizes = [6, 256], strides = [1, 1]} : vector<6x384xbf16> to vector<6x256xbf16>
    %65 = vector.extract_strided_slice %47 {offsets = [0, 50], sizes = [6, 256], strides = [1, 1]} : vector<6x384xbf16> to vector<6x256xbf16>
    %66 = vector.extract_strided_slice %47 {offsets = [0, 51], sizes = [6, 256], strides = [1, 1]} : vector<6x384xbf16> to vector<6x256xbf16>
    %67 = vector.extract_strided_slice %47 {offsets = [0, 52], sizes = [6, 256], strides = [1, 1]} : vector<6x384xbf16> to vector<6x256xbf16>
    %68 = vector.extract_strided_slice %47 {offsets = [0, 64], sizes = [6, 256], strides = [1, 1]} : vector<6x384xbf16> to vector<6x256xbf16>
    %69 = vector.extract_strided_slice %47 {offsets = [0, 65], sizes = [6, 256], strides = [1, 1]} : vector<6x384xbf16> to vector<6x256xbf16>
    %70 = vector.extract_strided_slice %47 {offsets = [0, 66], sizes = [6, 256], strides = [1, 1]} : vector<6x384xbf16> to vector<6x256xbf16>
    %71 = vector.extract_strided_slice %47 {offsets = [0, 67], sizes = [6, 256], strides = [1, 1]} : vector<6x384xbf16> to vector<6x256xbf16>
    %72 = vector.extract_strided_slice %47 {offsets = [0, 68], sizes = [6, 256], strides = [1, 1]} : vector<6x384xbf16> to vector<6x256xbf16>
    %73 = tpu.concatenate %48, %49, %50, %51, %52, %53, %54, %55, %56, %57, %58, %59, %60, %61, %62, %63 in 0 : vector<6x256xbf16>, vector<6x256xbf16>, vector<6x256xbf16>, vector<6x256xbf16>, vector<6x256xbf16>, vector<6x256xbf16>, vector<6x256xbf16>, vector<6x256xbf16>, vector<6x256xbf16>, vector<6x256xbf16>, vector<6x256xbf16>, vector<6x256xbf16>, vector<6x256xbf16>, vector<6x256xbf16>, vector<6x256xbf16>, vector<6x256xbf16> -> vector<96x256xbf16>
    %74 = tpu.concatenate %64, %65, %66, %67, %68, %69, %70, %71, %72 in 0 : vector<6x256xbf16>, vector<6x256xbf16>, vector<6x256xbf16>, vector<6x256xbf16>, vector<6x256xbf16>, vector<6x256xbf16>, vector<6x256xbf16>, vector<6x256xbf16>, vector<6x256xbf16> -> vector<54x256xbf16>
    %75 = tpu.concatenate %73, %74 in 0 : vector<96x256xbf16>, vector<54x256xbf16> -> vector<150x256xbf16>
    %c0_10 = arith.constant 0 : index
    %c0_11 = arith.constant 0 : index
    %76 = vector.load %arg4[%c0_10, %c0_11] : memref<16x150xbf16, #tpu.memory_space<vmem>>, vector<16x150xbf16>
    %cst_12 = arith.constant dense<0.000000e+00> : vector<16x256xf32>
    %77 = tpu.matmul %76, %75, %cst_12 {dimension_numbers = #tpu.dot_dimension_numbers<[1], [0], [0], [1], [0, 0, 1, 1], [], []>} : vector<16x150xbf16>, vector<150x256xbf16>, vector<16x256xf32> -> vector<16x256xf32>
    %c0_13 = arith.constant 0 : index
    %c0_14 = arith.constant 0 : index
    %78 = vector.load %arg5[%c0_13, %c0_14] : memref<16x1xf32, #tpu.memory_space<vmem>>, vector<16x1xf32>
    %79 = vector.broadcast %78 : vector<16x1xf32> to vector<16x256xf32>
    %80 = arith.addf %77, %79 : vector<16x256xf32>
    %cst_15 = arith.constant 0.000000e+00 : f32
    %81 = vector.broadcast %cst_15 : f32 to vector<16x256xf32>
    %82 = arith.maximumf %80, %81 : vector<16x256xf32>
    %83 = vector.extract_strided_slice %82 {offsets = [0, 0], sizes = [16, 192], strides = [1, 1]} : vector<16x256xf32> to vector<16x192xf32>
    %84 = vector.extract_strided_slice %82 {offsets = [0, 1], sizes = [16, 192], strides = [1, 1]} : vector<16x256xf32> to vector<16x192xf32>
    %85 = arith.maximumf %83, %84 : vector<16x192xf32>
    %86 = vector.extract_strided_slice %82 {offsets = [0, 16], sizes = [16, 192], strides = [1, 1]} : vector<16x256xf32> to vector<16x192xf32>
    %87 = vector.extract_strided_slice %82 {offsets = [0, 17], sizes = [16, 192], strides = [1, 1]} : vector<16x256xf32> to vector<16x192xf32>
    %88 = arith.maximumf %86, %87 : vector<16x192xf32>
    %89 = arith.maximumf %85, %88 : vector<16x192xf32>
    %90 = arith.truncf %89 : vector<16x192xf32> to vector<16x192xbf16>
    %c0_16 = arith.constant 0 : index
    %c0_17 = arith.constant 0 : index
    %91 = vector.load %arg7[%c0_16, %c0_17] : memref<192x512xbf16, #tpu.memory_space<vmem>>, vector<192x512xbf16>
    %cst_18 = arith.constant dense<0.000000e+00> : vector<16x512xf32>
    %92 = tpu.matmul %90, %91, %cst_18 {dimension_numbers = #tpu.dot_dimension_numbers<[1], [0], [0], [1], [0, 0, 1, 1], [], []>} : vector<16x192xbf16>, vector<192x512xbf16>, vector<16x512xf32> -> vector<16x512xf32>
    %c0_19 = arith.constant 0 : index
    %c0_20 = arith.constant 0 : index
    %93 = vector.load %arg8[%c0_19, %c0_20] : memref<16x512xf32, #tpu.memory_space<vmem>>, vector<16x512xf32>
    %94 = arith.mulf %92, %93 : vector<16x512xf32>
    %cst_21 = arith.constant dense<0.000000e+00> : vector<512xf32>
    %95 = vector.multi_reduction <add>, %94, %cst_21 [0] : vector<16x512xf32> to vector<512xf32>
    %96 = vector.shape_cast %95 : vector<512xf32> to vector<1x512xf32>
    %97 = arith.truncf %96 : vector<1x512xf32> to vector<1x512xbf16>
    %c0_22 = arith.constant 0 : index
    %c0_23 = arith.constant 0 : index
    %98 = vector.load %arg9[%c0_22, %c0_23] : memref<512x120xbf16, #tpu.memory_space<vmem>>, vector<512x120xbf16>
    %cst_24 = arith.constant dense<0.000000e+00> : vector<1x120xf32>
    %99 = tpu.matmul %97, %98, %cst_24 {dimension_numbers = #tpu.dot_dimension_numbers<[1], [0], [0], [1], [0, 0, 1, 1], [], []>} : vector<1x512xbf16>, vector<512x120xbf16>, vector<1x120xf32> -> vector<1x120xf32>
    %c0_25 = arith.constant 0 : index
    %c0_26 = arith.constant 0 : index
    %100 = vector.load %arg10[%c0_25, %c0_26] : memref<1x120xf32, #tpu.memory_space<vmem>>, vector<1x120xf32>
    %101 = arith.addf %99, %100 : vector<1x120xf32>
    %cst_27 = arith.constant 0.000000e+00 : f32
    %102 = vector.broadcast %cst_27 : f32 to vector<1x120xf32>
    %103 = arith.maximumf %101, %102 : vector<1x120xf32>
    %104 = arith.truncf %103 : vector<1x120xf32> to vector<1x120xbf16>
    %c0_28 = arith.constant 0 : index
    %c0_29 = arith.constant 0 : index
    %105 = vector.load %arg11[%c0_28, %c0_29] : memref<120x84xbf16, #tpu.memory_space<vmem>>, vector<120x84xbf16>
    %cst_30 = arith.constant dense<0.000000e+00> : vector<1x84xf32>
    %106 = tpu.matmul %104, %105, %cst_30 {dimension_numbers = #tpu.dot_dimension_numbers<[1], [0], [0], [1], [0, 0, 1, 1], [], []>} : vector<1x120xbf16>, vector<120x84xbf16>, vector<1x84xf32> -> vector<1x84xf32>
    %c0_31 = arith.constant 0 : index
    %c0_32 = arith.constant 0 : index
    %107 = vector.load %arg12[%c0_31, %c0_32] : memref<1x84xf32, #tpu.memory_space<vmem>>, vector<1x84xf32>
    %108 = arith.addf %106, %107 : vector<1x84xf32>
    %cst_33 = arith.constant 0.000000e+00 : f32
    %109 = vector.broadcast %cst_33 : f32 to vector<1x84xf32>
    %110 = arith.maximumf %108, %109 : vector<1x84xf32>
    %111 = arith.truncf %110 : vector<1x84xf32> to vector<1x84xbf16>
    %c0_34 = arith.constant 0 : index
    %c0_35 = arith.constant 0 : index
    %112 = vector.load %arg13[%c0_34, %c0_35] : memref<84x10xbf16, #tpu.memory_space<vmem>>, vector<84x10xbf16>
    %cst_36 = arith.constant dense<0.000000e+00> : vector<1x10xf32>
    %113 = tpu.matmul %111, %112, %cst_36 {dimension_numbers = #tpu.dot_dimension_numbers<[1], [0], [0], [1], [0, 0, 1, 1], [], []>} : vector<1x84xbf16>, vector<84x10xbf16>, vector<1x10xf32> -> vector<1x10xf32>
    %c0_37 = arith.constant 0 : index
    %c0_38 = arith.constant 0 : index
    %114 = vector.load %arg14[%c0_37, %c0_38] : memref<1x10xf32, #tpu.memory_space<vmem>>, vector<1x10xf32>
    %115 = arith.addf %113, %114 : vector<1x10xf32>
    %c0_39 = arith.constant 0 : index
    %c0_40 = arith.constant 0 : index
    %c0_41 = arith.constant 0 : index
    %116 = vector.load %arg15[%c0_39, %c0_40, %c0_41] : memref<1x1x10xf32, #tpu.memory_space<vmem>>, vector<1x1x10xf32>
    %117 = vector.shape_cast %116 : vector<1x1x10xf32> to vector<1x10xf32>
    %118 = vector.shape_cast %115 : vector<1x10xf32> to vector<1x1x10xf32>
    tpu.vector_store %arg15[%c0_39, %c0_40, %c0_41], %118 {strides = array<i32>} : memref<1x1x10xf32, #tpu.memory_space<vmem>>, vector<1x1x10xf32>,
    return
  }
  func.func @transform_0(%arg0: i32) -> (i32, i32, i32) {
    %c0_i32 = arith.constant 0 : i32
    %c0_i32_0 = arith.constant 0 : i32
    %c0_i32_1 = arith.constant 0 : i32
    return %arg0, %c0_i32, %c0_i32_0 : i32, i32, i32
  }
  func.func @transform_1(%arg0: i32) -> (i32, i32) {
    %c0_i32 = arith.constant 0 : i32
    %c0_i32_0 = arith.constant 0 : i32
    %c0_i32_1 = arith.constant 0 : i32
    return %c0_i32, %c0_i32_0 : i32, i32
  }
  func.func @transform_2(%arg0: i32) -> (i32, i32) {
    %c0_i32 = arith.constant 0 : i32
    %c0_i32_0 = arith.constant 0 : i32
    %c0_i32_1 = arith.constant 0 : i32
    return %c0_i32, %c0_i32_0 : i32, i32
  }
  func.func @transform_3(%arg0: i32) -> (i32, i32) {
    %c0_i32 = arith.constant 0 : i32
    %c0_i32_0 = arith.constant 0 : i32
    %c0_i32_1 = arith.constant 0 : i32
    return %c0_i32, %c0_i32_0 : i32, i32
  }
  func.func @transform_4(%arg0: i32) -> (i32, i32) {
    %c0_i32 = arith.constant 0 : i32
    %c0_i32_0 = arith.constant 0 : i32
    %c0_i32_1 = arith.constant 0 : i32
    return %c0_i32, %c0_i32_0 : i32, i32
  }
  func.func @transform_5(%arg0: i32) -> (i32, i32) {
    %c0_i32 = arith.constant 0 : i32
    %c0_i32_0 = arith.constant 0 : i32
    %c0_i32_1 = arith.constant 0 : i32
    return %c0_i32, %c0_i32_0 : i32, i32
  }
  func.func @transform_6(%arg0: i32) -> (i32, i32) {
    %c0_i32 = arith.constant 0 : i32
    %c0_i32_0 = arith.constant 0 : i32
    %c0_i32_1 = arith.constant 0 : i32
    return %c0_i32, %c0_i32_0 : i32, i32
  }
  func.func @transform_7(%arg0: i32) -> (i32, i32) {
    %c0_i32 = arith.constant 0 : i32
    %c0_i32_0 = arith.constant 0 : i32
    %c0_i32_1 = arith.constant 0 : i32
    return %c0_i32, %c0_i32_0 : i32, i32
  }
  func.func @transform_8(%arg0: i32) -> (i32, i32) {
    %c0_i32 = arith.constant 0 : i32
    %c0_i32_0 = arith.constant 0 : i32
    %c0_i32_1 = arith.constant 0 : i32
    return %c0_i32, %c0_i32_0 : i32, i32
  }
  func.func @transform_9(%arg0: i32) -> (i32, i32) {
    %c0_i32 = arith.constant 0 : i32
    %c0_i32_0 = arith.constant 0 : i32
    %c0_i32_1 = arith.constant 0 : i32
    return %c0_i32, %c0_i32_0 : i32, i32
  }
  func.func @transform_10(%arg0: i32) -> (i32, i32) {
    %c0_i32 = arith.constant 0 : i32
    %c0_i32_0 = arith.constant 0 : i32
    %c0_i32_1 = arith.constant 0 : i32
    return %c0_i32, %c0_i32_0 : i32, i32
  }
  func.func @transform_11(%arg0: i32) -> (i32, i32) {
    %c0_i32 = arith.constant 0 : i32
    %c0_i32_0 = arith.constant 0 : i32
    %c0_i32_1 = arith.constant 0 : i32
    return %c0_i32, %c0_i32_0 : i32, i32
  }
  func.func @transform_12(%arg0: i32) -> (i32, i32) {
    %c0_i32 = arith.constant 0 : i32
    %c0_i32_0 = arith.constant 0 : i32
    %c0_i32_1 = arith.constant 0 : i32
    return %c0_i32, %c0_i32_0 : i32, i32
  }
  func.func @transform_13(%arg0: i32) -> (i32, i32) {
    %c0_i32 = arith.constant 0 : i32
    %c0_i32_0 = arith.constant 0 : i32
    %c0_i32_1 = arith.constant 0 : i32
    return %c0_i32, %c0_i32_0 : i32, i32
  }
  func.func @transform_14(%arg0: i32) -> (i32, i32, i32) {
    %c0_i32 = arith.constant 0 : i32
    %c0_i32_0 = arith.constant 0 : i32
    %c0_i32_1 = arith.constant 0 : i32
    return %arg0, %c0_i32, %c0_i32_0 : i32, i32, i32
  }
}

</mosaic_0001>

<bundles_post_ra>
// kernel: lenet5_forward.1
= control target key start
LH: loop header
LB: loop body
LE: loop exit
PB: predicated region body
PF: predicated region fallthrough
CT: control target
= control target key end

     0   :  { %s9027_s0 = inlined_call_operand.vmem [shape: bf16[2,1,1156], index: 0, kind: input, shape index: {}]   ;;  %s9028_s1 = inlined_call_operand.vmem [shape: bf16[6,25], index: 1, kind: input, shape index: {}]   ;;  %s9029_s2 = inlined_call_operand.vmem [shape: f32[6,1], index: 2, kind: input, shape index: {}]   ;;  %s9030_s3 = inlined_call_operand.vmem [shape: bf16[16,150], index: 3, kind: input, shape index: {}]   ;;  %s9031_s4 = inlined_call_operand.vmem [shape: f32[16,1], index: 4, kind: input, shape index: {}]   ;;  %s9032_s5 = inlined_call_operand.vmem [shape: bf16[896,384], index: 5, kind: input, shape index: {}]   ;;  %s9033_s6 = inlined_call_operand.vmem [shape: bf16[192,512], index: 6, kind: input, shape index: {}]   ;;  %s9034_s7 = inlined_call_operand.vmem [shape: f32[16,512], index: 7, kind: input, shape index: {}]   ;;  %s9035_s8 = inlined_call_operand.vmem [shape: bf16[512,120], index: 8, kind: input, shape index: {}]   ;;  %s9036_s9 = inlined_call_operand.vmem [shape: f32[1,120], index: 9, kind: input, shape index: {}]   ;;  %s9037_s10 = inlined_call_operand.vmem [shape: bf16[120,84], index: 10, kind: input, shape index: {}]   ;;  %s9038_s11 = inlined_call_operand.vmem [shape: f32[1,84], index: 11, kind: input, shape index: {}]   ;;  %s9039_s12 = inlined_call_operand.vmem [shape: bf16[84,10], index: 12, kind: input, shape index: {}]   ;;  %s9040_s13 = inlined_call_operand.vmem [shape: f32[1,10], index: 13, kind: input, shape index: {}]   ;;  %s9041_s14 = inlined_call_operand.hbm [shape: f32[2,1,10], index: 14, kind: output, shape index: {}]  }
   0x1   :  { %9138 = sst [smem:[#allocation41_spill]] %s9027_s0 }
   0x2   :  { %9139 = sst [smem:[#allocation42_spill]] %s9028_s1 }
   0x3   :  { %9140 = sst [smem:[#allocation43_spill]] %s9029_s2 }
   0x4   :  { %19 = vsyncpa [#allocation3], 0 }
   0x5   :  { %21 = vsyncpa [#allocation3 + $0x1], 0  ;;  %s6212_s29 = smov 0   ;;  %s6214_s30 = smov 0  }
   0x6   :  { %s6216_s15 = smov 0   ;;  %s6218_s16 = smov 0  }
   0x7 LB: > { %9141 = sst [smem:[#allocation5_spill]] %s6092_s29  ;;  %s6233_s17 = sadd.s32 4294967295, %s6104_s16   ;;  %s6104_s16 = sphi %s6218_s16, %s9393_s16   ;;  %s6100_s15 = sphi %s6216_s15, %s9395_s15   ;;  %s6096_s30 = sphi %s6214_s30, %s9397_s30   ;;  %s6092_s29 = sphi %s6212_s29, %s9396_s29  }
   0x8   : > { %9142 = sst [smem:[#allocation6_spill]] %s6100_s15  ;;  %s4927_s18 = sadd.s32 4294967294, %s6104_s16  }
   0x9   : > { %9143 = sst [smem:[#allocation7_spill]] %s6104_s16  ;;  %s6237_s19 = sadd.s32 1, %s6104_s16  }
   0xa   : > { %9144 = sst [smem:[#allocation8_spill]] %s6237_s19  ;;  %s333_s20 = sadd.s32 1, %s6100_s15 }
   0xb   : > { %s330_s21 = ssub.s32 %s6104_s16, %s6237_s19  ;;  %p343_p0 = scmp.ne.s32.totalorder %s6100_s15, %s6096_s30 }
   0xc   : > { %p331_p1 = scmp.eq.s32.totalorder %s330_s21, 0  ;;  %p344_p2 = scmp.eq.s32.totalorder %s6233_s17, 1 }
   0xd   : > { %p349_p3 = scmp.ne.s32.totalorder %s6096_s30, %s6092_s29  ;;  %p350_p4 = scmp.eq.s32.totalorder %s4927_s18, 1 }
   0xe   : > { %s6248_s22 = scalar_select %p331_p1, %s6100_s15, %s333_s20  }
   0xf   : > { %p6250_p5 = por %p344_p2, %p343_p0  ;;  %p6254_p6 = por %p350_p4, %p349_p3 }
  0x10   : > { %9145 = sst [smem:[#allocation9_spill]] %s6248_s22  ;;  %p4930_p7 = scmp.ge.s32.totalorder %s6104_s16, 1 }
  0x11   : > { %s9147_s24 = scalar_select %p6254_p6, 1, 0 }
  0x12   : > { %p414_p8 = scmp.lt.s32.totalorder %s6104_s16, 3 }
  0x13   : > { %9148 = sst [smem:[#allocation10_spill]] %s9147_s24 }
  0x14   : > { %p415_p9 = pnand %p4930_p7, %p414_p8 }
  0x16   : > { %418 = sbr.rel (%p415_p9) target bundleno = 2734 (0xaae), region = 76 }
  0x1b   : > { %p458_p10 = scmp.lt.s32.totalorder %s6233_s17, 1  ;;  %v470_v0 = vlaneseq  ;;  %v6106_v1 = vmov 1966171168   ;;  %s9149_s0 = sld [smem:[#allocation41_spill]]  ;;  %vm9063_vm0 = vcmask 1039360   ;;  %vm9122_vm1 = vcmask 1040384  }
  0x1c   : > { %v468_v2 = vunpack.c.l.s4 %v6106_v1  ;;  %s9044_s20 = smov 126   ;;  %s9053_s21 = smov 127   ;;  %vm1194_vm2 = vsmask.f32 256  ;;  %vm9123_vm3 = vcmask 1031168   ;;  %vm9124_vm5 = vcmask 1022976  }
  0x1d   : > { %s459_s25 = scalar_select %p458_p10, %s6233_s17, 1  ;;  %v471_v3 = vshrl.u32 %v470_v0, 7  ;;  %vm6603_vm4 = vmand %vm9122_vm1, %vm1194_vm2  ;;  %vm9129_vm6 = vcmask 1041408   ;;  %vm1238_vm7 = vsmask.f32 1280  ;;  %vm1531_vm8 = vcmask 793600  }
  0x1e   : > { %v469_v4 = vunpack.c.0.s8 %v468_v2  ;;  %s9042_s27 = smov 96   ;;  %s9051_s28 = smov 95   ;;  %vm9125_vm9 = vcmask 785408   ;;  %vm9127_vm10 = vcmask 1042432   ;;  %vm1282_vm11 = vsmask.f32 2304 }
  0x1f   : > { %s5399_s26 = smul.u32 10, %s459_s25  ;;  %s9049_s25 = smov 125   ;;  %vm9121_vm12 = vcmask 777216   ;;  %vm9100_vm13 = vcmask 769024   ;;  %vm9130_vm14 = vcmask 1043456   ;;  %vm9099_vm2 = vcmask 760832  }
  0x20   : > { %v6262_v5 = vsub.s32 %v469_v4, %v471_v3  ;;  %vm1326_vm15 = vsmask.f32 3328  ;;  %s9231_s22 = smov 60   ;;  %s9237_s15 = smov 32  }
  0x21   : > { %s461_s18 = scalar_lea.vmem %s9149_s0, %s5399_s26  ;;  %s9046_s26 = smov 97  }
  0x22   : > { %v463_v6 = vld [vmem:[%s461_s18] sm:$0xff]  ;;  %v464_v7 = vld [vmem:[%s461_s18 + $0x8] sm:$0x3]  ;;  %s9047_s18 = smov 94   ;;  %s9219_s0 = smov 62  }
  0x23   : > { %v473_v8 = vrot.slane %v463_v6, %v6262_v5  ;;  %v600_v9 = vcombine.low %v463_v6, %v463_v6  ;;  %v466_v10 = vcombine.high %v463_v6, %v463_v6  ;;  %v530_v11 = vrot.slane %v464_v7, %v6262_v5  ;;  %s9238_s19 = smov 124   ;;  %s9247_s24 = smov 31  }
  0x24   : > { %v625_v12 = vcombine.low %v464_v7, %v464_v7  ;;  %s9249_s2 = sld [smem:[#allocation43_spill]]  ;;  %s9329_s29 = smov 125  }
  0x25   : > { %v6270_v13 = vrot.slane %v473_v8, %v6262_v5  ;;  %v481_v14 = vcombine.high %v473_v8, %v473_v8  ;;  %v6273_v15 = vrot.slane %v600_v9, %v6262_v5  ;;  %v6276_v16 = vrot.slane %v466_v10, %v6262_v5  ;;  %s9265_s1 = sld [smem:[#allocation42_spill]]  ;;  %s6128_s16 = smov 112  }
  0x26   : > { %v6279_v17 = vrot.slane %v530_v11, %v6262_v5  ;;  %v632_v18 = vrot.slane %v625_v12, %v6262_v5  ;;  %v729_v43 = vcombine.low %v530_v11, %v530_v11  ;;  %v711_v47 = vcombine.low %v473_v8, %v473_v8 }
  0x27   : > { %648 = vrot.lane.b32.xlu0 %v6270_v13, %s9044_s20  ;;  %v6285_v19 = vrot.slane %v481_v14, %v6262_v5  ;;  %v6289_v20 = vrot.slane %v6273_v15, %v6262_v5  ;;  %v608_v21 = vcombine.high %v6273_v15, %v6273_v15  ;;  %v6295_v22 = vcombine.high %v6270_v13, %v6270_v13 }
  0x28   : > { %9150 = vst [vmem:[#allocation11_spill] sm:$0xff] %v6279_v17  ;;  %v482_v23 = vcombine.high %v6276_v16, %v6276_v16  ;;  %v6314_v28 = vshll.u32 %v6270_v13, 16  ;;  %v6322_v30 = vrot.slane %v6276_v16, %v6262_v5  ;;  %v6362_v49 = vrot.slane %v632_v18, %v6262_v5 }
  0x29   : > { %9151 = vst [vmem:[#allocation12_spill] sm:$0xff] %v6285_v19  ;;  %650 = vrot.lane.b32.xlu1 %v6285_v19, %s9044_s20  ;;  %v6302_v24 = vrot.slane %v608_v21, %v6262_v5  ;;  %v6305_v25 = vshll.u32 %v6285_v19, 16  ;;  %v6308_v26 = vshll.u32 %v6295_v22, 16  ;;  %v6326_v31 = vcombine.high %v6285_v19, %v6285_v19 }
  0x2a   : > { %v6311_v27 = vrot.slane %v482_v23, %v6262_v5  ;;  %9152 = vst [vmem:[#allocation13_spill] sm:$0xff] %v6322_v30  ;;  %v6338_v34 = vcombine.high %v6289_v20, %v6289_v20  ;;  %v6344_v36 = vshll.u32 %v6322_v30, 16  ;;  %v667_v45 = vrot.slane %v6314_v28, 7  ;;  %9154 = vst [vmem:[#allocation15_spill] sm:$0xff] %v6362_v49 }
  0x2b   : > { %640 = vrot.lane.b32.xlu0 %v6289_v20, %s9044_s20  ;;  %v5469_v29 = vpack.i.bf16 %v6308_v26, %v6305_v25  ;;  %v6341_v35 = vshll.u32 %v6326_v31, 16  ;;  %v624_v37 = vcombine.high %v6302_v24, %v6302_v24  ;;  %v668_v38 = vrot.slane %v6305_v25, 7 }
  0x2c   : > { %v6329_v32 = vshll.u32 %v6311_v27, 16  ;;  %v669_v39 = vrot.slane %v6308_v26, 7  ;;  %v671_v42 = vrot.slane %v6344_v36, 7  ;;  %v6365_v50 = vrot.slane %v729_v43, %v6262_v5 }
  0x2d   : > { %642 = vrot.lane.b32.xlu1 %v6302_v24, %s9044_s20  ;;  %v5474_v40 = vpack.i.bf16 %v6344_v36, %v6341_v35  ;;  %v670_v41 = vrot.slane %v6341_v35, 7  ;;  %v1539_v51 = vcombine.high %v530_v11, %v530_v11  ;;  %v817_v52 = vcombine.low %v632_v18, %v632_v18 }
  0x2e   : > { %9153 = vst [vmem:[#allocation14_spill] sm:$0xff] %v6329_v32  ;;  %v5479_v33 = vpack.i.bf16 %v6314_v28, %v6329_v32  ;;  %v5484_v44 = vpack.i.bf16 %v669_v39, %v668_v38  ;;  %v672_v46 = vrot.slane %v6329_v32, 7  ;;  %9155 = vst [vmem:[#allocation16_spill] sm:$0xff] %v6365_v50  ;;  %v6369_v54 = vrot.slane %v711_v47, %v6262_v5 }
  0x2f   : > { %5470 = vrot.lane.b32.xlu0 %v5469_v29, %s9053_s21  ;;  %v5489_v48 = vpack.i.bf16 %v671_v42, %v670_v41  ;;  %v6372_v55 = vrot.slane %v1539_v51, %v6262_v5  ;;  %v6375_v56 = vrot.slane %v817_v52, %v6262_v5  ;;  %v6380_v57 = vcombine.high %v6322_v30, %v6322_v30 }
  0x30   : > { %v5494_v53 = vpack.i.bf16 %v667_v45, %v672_v46  ;;  %9156 = vst [vmem:[#allocation17_spill] sm:$0xff] %v6369_v54  ;;  %v6385_v58 = vcombine.high %v6369_v54, %v6369_v54  ;;  %v712_v59 = vcombine.low %v6276_v16, %v6276_v16  ;;  %v765_v62 = vrot.slane %v6305_v25, 6 }
  0x31   : > { %5480 = vrot.lane.b32.xlu1 %v5479_v33, %s9053_s21  ;;  %9157 = vst [vmem:[#allocation18_spill] sm:$0xff] %v6375_v56  ;;  %9158 = vst [vmem:[#allocation19_spill] sm:$0xff] %v6380_v57  ;;  %v6392_v60 = vshll.u32 %v6380_v57, 16  ;;  %v766_v63 = vrot.slane %v6308_v26, 6  ;;  %v767_v0 = vrot.slane %v6341_v35, 6  ;;  %v768_v1 = vrot.slane %v6344_v36, 6 }
  0x32   : > { %v6397_v61 = vrot.slane %v712_v59, %v6262_v5  ;;  %v769_v2 = vrot.slane %v6329_v32, 6  ;;  %v808_v6 = vcombine.low %v6273_v15, %v6273_v15  ;;  %v853_v11 = vrot.slane %v6305_v25, 5 }
  0x33   : > { %644 = vrot.lane.b32.xlu0 %v6338_v34, %s9044_s20  ;;  %9159 = vst [vmem:[#allocation20_spill] sm:$0xff] %v6392_v60  ;;  %v770_v3 = vrot.slane %v6392_v60, 6  ;;  %v5499_v4 = vpack.i.bf16 %v766_v63, %v765_v62  ;;  %v5504_v7 = vpack.i.bf16 %v768_v1, %v767_v0  ;;  %v854_v12 = vrot.slane %v6308_v26, 5 }
  0x34   : > { %9160 = vst [vmem:[#allocation21_spill] sm:$0xff] %v6397_v61  ;;  %v6415_v9 = vrot.slane %v808_v6, %v6262_v5  ;;  %v855_v14 = vrot.slane %v6341_v35, 5  ;;  %v856_v5 = vrot.slane %v6344_v36, 5  ;;  %v857_v15 = vrot.slane %v6329_v32, 5 }
  0x35   : > { %646 = vrot.lane.b32.xlu1 %v624_v37, %s9044_s20  ;;  %v5509_v8 = vpack.i.bf16 %v770_v3, %v769_v2  ;;  %v858_v16 = vrot.slane %v6392_v60, 5  ;;  %v5514_v18 = vpack.i.bf16 %v854_v12, %v853_v11  ;;  %v6440_v29 = vcombine.low %v6285_v19, %v6285_v19 }
  0x36   : > { %v816_v10 = vcombine.high %v6415_v9, %v6415_v9  ;;  %v5519_v21 = vpack.i.bf16 %v856_v5, %v855_v14  ;;  %v6445_v33 = vcombine.high %v6311_v27, %v6311_v27  ;;  %v6454_v37 = vcombine.low %v6322_v30, %v6322_v30 }
  0x37   : > { %5475 = vrot.lane.b32.xlu0 %v5474_v40, %s9053_s21  ;;  %v5524_v23 = vpack.i.bf16 %v858_v16, %v857_v15  ;;  %9161 = vst [vmem:[#allocation22_spill] sm:$0xff] %v6440_v29  ;;  %v899_v39 = vcombine.low %v6311_v27, %v6311_v27  ;;  %v6476_v43 = vcombine.high %v6397_v61, %v6397_v61  ;;  %v852_v47 = vrot.slane %v6314_v28, 5 }
  0x38   : > { %9162 = vst [vmem:[#allocation23_spill] sm:$0xff] %v6445_v33  ;;  %9163 = vst [vmem:[#allocation24_spill] sm:$0xff] %v6454_v37  ;;  %v6457_v38 = vshll.u32 %v6445_v33, 16  ;;  %v6493_v52 = vshll.u32 %v6279_v17, 16  ;;  %v1548_v59 = vshll.u32 %v6372_v55, 16  ;;  %v929_v3 = vrot.slane %v6305_v25, 4 }
  0x39   : > { %5485 = vrot.lane.b32.xlu1 %v5484_v44, %s9049_s25  ;;  %9165 = vst [vmem:[#allocation26_spill] sm:$0xff] %v6476_v43  ;;  %v764_v44 = vrot.slane %v6314_v28, 6  ;;  %v900_v12 = vcombine.low %v6279_v17, %v6279_v17 }
  0x3a   : > { %9164 = vst [vmem:[#allocation25_spill] sm:$0xff] %v6457_v38  ;;  %v5529_v40 = vpack.i.bf16 %v6457_v38, %v6392_v60  ;;  %v674_v41 = vrot.slane %v6457_v38, 7  ;;  %v771_v45 = vrot.slane %v6457_v38, 6  ;;  %9167 = vst [vmem:[#allocation27_spill] sm:$0xff] %v6493_v52  ;;  %v772_v62 = vrot.slane %v6493_v52, 6 }
  0x3b   : > { %5490 = vrot.lane.b32.xlu0 %v5489_v48, %s9049_s25  ;;  %v859_v48 = vrot.slane %v6457_v38, 5  ;;  %v1550_v63 = vrot.slane %v1548_v59, 6  ;;  %v860_v1 = vrot.slane %v6493_v52, 5  ;;  %v1559_v2 = vrot.slane %v1548_v59, 5 }
  0x3c   : > { %v5539_v46 = vpack.i.bf16 %v764_v44, %v771_v45 }
  0x3d   : > { %5495 = vrot.lane.b32.xlu1 %v5494_v53, %s9049_s25  ;;  %v5544_v51 = vpack.i.bf16 %v852_v47, %v859_v48  ;;  %v675_v53 = vrot.slane %v6493_v52, 7  ;;  %v5549_v0 = vpack.i.bf16 %v1550_v63, %v772_v62 }
  0x3f   : > { %1515 = vrot.lane.b32.xlu0 %v6270_v13, %s9046_s26 }
  0x41   : > { %1517 = vrot.lane.b32.xlu1 %v6385_v58, %s9046_s26 }
  0x43   : > { %1519 = vrot.lane.b32.xlu0 %v6295_v22, %s9046_s26 }
  0x45   : > { %1521 = vrot.lane.b32.xlu1 %v6397_v61, %s9046_s26 }
  0x47   : > { %1523 = vrot.lane.b32.xlu0 %v6322_v30, %s9046_s26 }
  0x49   : > { %5500 = vrot.lane.b32.xlu1 %v5499_v4, %s9042_s27  ;;  %v930_v4 = vrot.slane %v6308_v26, 4 }
  0x4b   : > { %5505 = vrot.lane.b32.xlu0 %v5504_v7, %s9042_s27  ;;  %v6534_v7 = vcombine.low %v6270_v13, %v6270_v13  ;;  %v5559_v5 = vpack.i.bf16 %v930_v4, %v929_v3 }
  0x4d   : > { %5510 = vrot.lane.b32.xlu1 %v5509_v8, %s9042_s27  ;;  %s9078_s27 = smov 93   ;;  %9170 = vst [vmem:[#allocation28_spill] sm:$0xff] %v6534_v7  ;;  %v931_v8 = vrot.slane %v6341_v35, 4 }
  0x4f   : > { %827 = vrot.lane.b32.xlu0 %v6289_v20, %s9051_s28 }
  0x51   : > { %829 = vrot.lane.b32.xlu1 %v816_v10, %s9051_s28  ;;  %v932_v10 = vrot.slane %v6344_v36, 4 }
  0x53   : > { %831 = vrot.lane.b32.xlu0 %v6338_v34, %s9051_s28  ;;  %v673_v34 = vrot.slane %v6392_v60, 7  ;;  %v5564_v16 = vpack.i.bf16 %v932_v10, %v931_v8  ;;  %v9235_v8 = vld [vmem:[#allocation25_spill] sm:$0xff] }
  0x55   : > { %833 = vrot.lane.b32.xlu1 %v6369_v54, %s9051_s28  ;;  %v5534_v42 = vpack.i.bf16 %v674_v41, %v673_v34  ;;  %v1565_v34 = vcombine.low %v6372_v55, %v6372_v55 }
  0x57   : > { %835 = vrot.lane.b32.xlu0 %v6270_v13, %s9051_s28 }
  0x59   : > { %5515 = vrot.lane.b32.xlu1 %v5514_v18, %s9047_s18  ;;  %v928_v18 = vrot.slane %v6314_v28, 4 }
  0x5b   : > { %5520 = vrot.lane.b32.xlu0 %v5519_v21, %s9047_s18  ;;  %v933_v21 = vrot.slane %v6329_v32, 4 }
  0x5d   : > { %5525 = vrot.lane.b32.xlu1 %v5524_v23, %s9047_s18 }
  0x5f   : > { %903 = vrot.lane.b32.xlu0 %v6440_v29, %s9078_s27 }
  0x61   : > { %905 = vrot.lane.b32.xlu1 %v6270_v13, %s9078_s27 }
  0x63   : > { %907 = vrot.lane.b32.xlu0 %v6285_v19, %s9078_s27 }
  0x65   : > { %909 = vrot.lane.b32.xlu1 %v6454_v37, %s9078_s27 }
  0x67   : > { %911 = vrot.lane.b32.xlu0 %v899_v39, %s9078_s27 }
  0x69   : > { %5530 = vrot.lane.b32.xlu1 %v5529_v40, %s9053_s21  ;;  %v5569_v40 = vpack.i.bf16 %v933_v21, %v928_v18 }
  0x6b   : > { %652 = vrot.lane.b32.xlu0 %v6295_v22, %s9044_s20 }
  0x6d   : > { %654 = vrot.lane.b32.xlu1 %v6326_v31, %s9044_s20  ;;  %s9166_s20 = smov 96  }
  0x6f   : > { %5535 = vrot.lane.b32.xlu0 %v5534_v42, %s9049_s25  ;;  %v973_v42 = vcombine.low %v6302_v24, %v6302_v24 }
  0x71   : > { %1525 = vrot.lane.b32.xlu1 %v6476_v43, %s9046_s26 }
  0x73   : > { %1527 = vrot.lane.b32.xlu0 %v6380_v57, %s9046_s26  ;;  %s9168_s26 = smov 126  }
  0x75   : > { %5540 = vrot.lane.b32.xlu1 %v5539_v46, %s9166_s20 }
  0x77   : > { %837 = vrot.lane.b32.xlu0 %v6385_v58, %s9051_s28 }
  0x79   : > { %839 = vrot.lane.b32.xlu1 %v6295_v22, %s9051_s28 }
  0x7b   : > { %5545 = vrot.lane.b32.xlu0 %v5544_v51, %s9047_s18  ;;  %s9108_s18 = smov 124  }
  0x7d   : > { %913 = vrot.lane.b32.xlu1 %v6322_v30, %s9078_s27 }
  0x7f   : > { %915 = vrot.lane.b32.xlu0 %v6311_v27, %s9078_s27 }
  0x81   : > { %581 = vrot.lane.b32.xlu1 %v6493_v52, %s9053_s21  ;;  %s9082_s21 = smov 64  }
  0x83   : > { %656 = vrot.lane.b32.xlu0 %v6362_v49, %s9168_s26 }
  0x85   : > { %692 = vrot.lane.b32.xlu1 %v675_v53, %s9049_s25  ;;  %s9169_s25 = smov 97  }
  0x87   : > { %739 = vrot.lane.b32.xlu0 %v6270_v13, %s9108_s18 }
  0x89   : > { %741 = vrot.lane.b32.xlu1 %v6385_v58, %s9108_s18  ;;  %v5554_v58 = vpack.i.bf16 %v1559_v2, %v860_v1 }
  0x8b   : > { %743 = vrot.lane.b32.xlu0 %v6295_v22, %s9108_s18 }
  0x8d   : > { %745 = vrot.lane.b32.xlu1 %v6397_v61, %s9108_s18 }
  0x8f   : > { %737 = vrot.lane.b32.xlu0 %v6369_v54, %s9108_s18 }
  0x91   : > { %1529 = vrot.lane.b32.xlu1 %v6365_v50, %s9169_s25  ;;  %s9171_s25 = smov 94  }
  0x93   : > { %5550 = vrot.lane.b32.xlu0 %v5549_v0, %s9166_s20 }
  0x95   : > { %825 = vrot.lane.b32.xlu1 %v6415_v9, %s9051_s28 }
  0x97   : > { %841 = vrot.lane.b32.xlu0 %v6375_v56, %s9051_s28 }
  0x99   : > { %v6528_v6 = vpop.permute.xlu0 %648  ;;  %1556 = vrot.lane.b32.xlu1 %v6362_v49, %s9051_s28  ;;  %s9080_s28 = smov 92  }
  0x9b   : > { %v6538_v11 = vpop.permute.xlu1 %650  ;;  %5555 = vrot.lane.b32.xlu0 %v5554_v58, %s9171_s25 }
  0x9d   : > { %v6543_v14 = vpop.permute.xlu0 %640  ;;  %901 = vrot.lane.b32.xlu1 %v6534_v7, %s9078_s27 }
  0x9f   : > { %v6547_v15 = vpop.permute.xlu1 %642  ;;  %917 = vrot.lane.b32.xlu0 %v900_v12, %s9078_s27 }
  0xa1   : > { %v6552_v23 = vpop.permute.xlu0 %5470  ;;  %5560 = vrot.lane.b32.xlu1 %v5559_v5, %s9080_s28 }
  0xa2   : > { %v5472_v1 = vunpack.i.l.bf16 %v6552_v23 }
  0xa3   : > { %v6557_v39 = vpop.permute.xlu1 %5480  ;;  %5565 = vrot.lane.b32.xlu0 %v5564_v16, %s9080_s28 }
  0xa4   : > { %v9057_v5 = vunpack.i.l.bf16 %v6557_v39  ;;  %v5483_v18 = vunpack.i.h.bf16 %v6557_v39 }
  0xa5   : > { %v6560_v41 = vpop.permute.xlu0 %644  ;;  %1566 = vrot.lane.b32.xlu1 %v1565_v34, %s9078_s27  ;;  %v6619_v34 = vcombine.low %v6289_v20, %v6289_v20  ;;  %s9115_s27 = smov 31  }
  0xa6   : > { %v6644_v52 = vsel %vm9063_vm0, %v5483_v18, %v5472_v1 }
  0xa7   : > { %v6565_v44 = vpop.permute.xlu1 %646  ;;  %5570 = vrot.lane.b32.xlu0 %v5569_v40, %s9080_s28  ;;  %s9090_s28 = smov 63  }
  0xa9   : > { %v5476_v45 = vpop.permute.xlu0 %5475  ;;  %977 = vrot.lane.b32.xlu1 %v973_v42, %s9082_s21 }
  0xaa   : > { %v5477_v58 = vunpack.i.l.bf16 %v5476_v45  ;;  %v5478_v10 = vunpack.i.h.bf16 %v5476_v45 }
  0xab   : > { %v6569_v55 = vpop.permute.xlu1 %5485  ;;  %979 = vrot.lane.b32.xlu0 %v6289_v20, %s9082_s21 }
  0xac   : > { %v587_v40 = vsel %vm9063_vm0, %v5477_v58, %v5478_v10  ;;  %v588_v42 = vsel %vm9063_vm0, %v5478_v10, %v9057_v5  ;;  %v5488_v45 = vunpack.i.h.bf16 %v6569_v55  ;;  %v663_v5 = vsel %vm9123_vm3, %v6528_v6, %v6538_v11 }
  0xad   : > { %v6573_v46 = vpop.permute.xlu0 %5490  ;;  %981 = vrot.lane.b32.xlu1 %v6302_v24, %s9082_s21  ;;  %v5473_v24 = vunpack.i.h.bf16 %v6552_v23  ;;  %v9175_v18 = vunpack.i.l.bf16 %v6569_v55 }
  0xaf   : > { %v6577_v47 = vpop.permute.xlu1 %5495  ;;  %983 = vrot.lane.b32.xlu0 %v6534_v7, %s9082_s21  ;;  %v585_v4 = vsel %vm9063_vm0, %v5472_v1, %v5473_v24  ;;  %v586_v16 = vsel %vm9063_vm0, %v5473_v24, %v5477_v58  ;;  %v5493_v58 = vunpack.i.h.bf16 %v6573_v46  ;;  %v662_v1 = vsel %vm9123_vm3, %v6565_v44, %v6528_v6  ;;  %vm6669_vm0 = vmand %vm9129_vm6, %vm1238_vm7 }
  0xb0   : > { %v1197_v21 = vsel %vm6603_vm4, %v6285_v19, %v585_v4  ;;  %v660_v4 = vsel %vm9123_vm3, %v6547_v15, %v6560_v41  ;;  %v1198_v56 = vsel %vm6603_vm4, %v6295_v22, %v586_v16  ;;  %v5492_v19 = vunpack.i.l.bf16 %v6573_v46  ;;  %vm6714_vm7 = vmand %vm9127_vm10, %vm1282_vm11 }
  0xb1   : > { %v6581_v48 = vpop.permute.xlu0 %1515  ;;  %v661_v22 = vsel %vm9123_vm3, %v6560_v41, %v6565_v44  ;;  %v1199_v46 = vsel %vm6603_vm4, %v6326_v31, %v587_v40  ;;  %v1200_v16 = vsel %vm6603_vm4, %v6322_v30, %v588_v42  ;;  %v1211_v50 = vsel %vm9122_vm1, %v1197_v21, %v660_v4  ;;  %vm6745_vm11 = vmand %vm9130_vm14, %vm1326_vm15 }
  0xb2   : > { %v696_v41 = vsel %vm9124_vm5, %v9175_v18, %v5488_v45  ;;  %v1215_v49 = vsel %vm9122_vm1, %v1198_v56, %v661_v22  ;;  %v697_v31 = vsel %vm9124_vm5, %v5488_v45, %v5492_v19  ;;  %v698_v40 = vsel %vm9124_vm5, %v5492_v19, %v5493_v58 }
  0xb3   : > { %v6583_v51 = vpop.permute.xlu1 %1517  ;;  %v9178_v4 = vunpack.i.l.bf16 %v6577_v47  ;;  %v1219_v45 = vsel %vm9122_vm1, %v1199_v46, %v662_v1  ;;  %v1223_v22 = vsel %vm9122_vm1, %v1200_v16, %v663_v5  ;;  %v6698_v46 = vsel %vm6669_vm0, %v1215_v49, %v697_v31 }
  0xb4   : > { %v1532_v19 = vsel %vm1531_vm8, %v6581_v48, %v6583_v51  ;;  %v6702_v5 = vsel %vm6669_vm0, %v1219_v45, %v698_v40  ;;  %vm9199_vm15 = vcmask 1039360  }
  0xb5   : > { %v6585_v53 = vpop.permute.xlu0 %1519  ;;  %v699_v56 = vsel %vm9124_vm5, %v5493_v58, %v9178_v4  ;;  %v5498_v58 = vunpack.i.h.bf16 %v6577_v47  ;;  %v6694_v4 = vsel %vm6669_vm0, %v1211_v50, %v696_v41 }
  0xb6   : > { %v1533_v18 = vsel %vm1531_vm8, %v6583_v51, %v6585_v53  ;;  %v1579_v31 = vsel %vm9129_vm6, %v6694_v4, %v1532_v19  ;;  %v6726_v40 = vsel %vm6669_vm0, %v1223_v22, %v699_v56 }
  0xb7   : > { %v6587_v59 = vpop.permute.xlu1 %1521  ;;  %9181 = vst [vmem:[#allocation30_spill] sm:$0xff] %v6726_v40 }
  0xb8   : > { %v1534_v51 = vsel %vm1531_vm8, %v6585_v53, %v6587_v59  ;;  %v1582_v53 = vsel %vm9129_vm6, %v6698_v46, %v1533_v18 }
  0xb9   : > { %v6589_v62 = vpop.permute.xlu0 %1523  ;;  %v1585_v22 = vsel %vm9129_vm6, %v6702_v5, %v1534_v51 }
  0xba   : > { %9172 = vst [vmem:[#allocation29_spill] sm:$0xff] %v6589_v62 }
  0xbb   : > { %v6591_v63 = vpop.permute.xlu1 %5500 }
  0xbc   : > { %v5503_v21 = vunpack.i.h.bf16 %v6591_v63  ;;  %v6675_v6 = vunpack.i.l.bf16 %v6591_v63 }
  0xbd   : > { %v6593_v0 = vpop.permute.xlu0 %5505 }
  0xbe   : > { %v5507_v63 = vunpack.i.l.bf16 %v6593_v0  ;;  %v6709_v16 = vsel %vm9125_vm9, %v6675_v6, %v5503_v21  ;;  %v5508_v1 = vunpack.i.h.bf16 %v6593_v0 }
  0xbf   : > { %v6597_v2 = vpop.permute.xlu1 %5510 }
  0xc0   : > { %v6763_v45 = vsel %vm9125_vm9, %v5507_v63, %v5508_v1 }
  0xc1   : > { %v6599_v3 = vpop.permute.xlu0 %827 }
  0xc3   : > { %v6607_v12 = vpop.permute.xlu1 %829 }
  0xc4   : > { %v6731_v0 = vsel %vm9121_vm12, %v6599_v3, %v6607_v12 }
  0xc5   : > { %v6615_v23 = vpop.permute.xlu0 %831 }
  0xc6   : > { %v6760_v18 = vsel %vm9121_vm12, %v6607_v12, %v6615_v23 }
  0xc7   : > { %v6635_v10 = vpop.permute.xlu1 %833 }
  0xc8   : > { %v6777_v12 = vsel %vm9121_vm12, %v6615_v23, %v6635_v10 }
  0xc9   : > { %v6655_v24 = vpop.permute.xlu0 %835 }
  0xcb   : > { %v5516_v44 = vpop.permute.xlu1 %5515 }
  0xcc   : > { %v5518_v38 = vunpack.i.h.bf16 %v5516_v44  ;;  %v6689_v33 = vunpack.i.l.bf16 %v5516_v44  ;;  %v6734_v44 = vsel %vm9125_vm9, %v5503_v21, %v5507_v63  ;;  %v1535_v21 = vsel %vm1531_vm8, %v6587_v59, %v6589_v62 }
  0xcd   : > { %v5521_v17 = vpop.permute.xlu0 %5520  ;;  %v1606_v62 = vsel %vm6714_vm7, %v1585_v22, %v6763_v45 }
  0xce   : > { %v5522_v49 = vunpack.i.l.bf16 %v5521_v17  ;;  %v5523_v37 = vunpack.i.h.bf16 %v5521_v17  ;;  %v6741_v19 = vsel %vm9100_vm13, %v6689_v33, %v5518_v38  ;;  %v1604_v17 = vsel %vm6714_vm7, %v1579_v31, %v6709_v16 }
  0xcf   : > { %v6718_v41 = vpop.permute.xlu1 %5525  ;;  %v1617_v29 = vsel %vm9127_vm10, %v1604_v17, %v6731_v0  ;;  %v1605_v31 = vsel %vm6714_vm7, %v1582_v53, %v6734_v44  ;;  %v1623_v22 = vsel %vm9127_vm10, %v1606_v62, %v6777_v12 }
  0xd0   : > { %v6769_v59 = vsel %vm9100_vm13, %v5518_v38, %v5522_v49  ;;  %v1642_v17 = vsel %vm6745_vm11, %v1617_v29, %v6741_v19  ;;  %v9185_v38 = vunpack.i.l.bf16 %v6597_v2  ;;  %v1620_v53 = vsel %vm9127_vm10, %v1605_v31, %v6760_v18 }
  0xd1   : > { %v6737_v32 = vpop.permute.xlu0 %903  ;;  %v6796_v60 = vsel %vm9100_vm13, %v5522_v49, %v5523_v37  ;;  %v6804_v29 = vsel %vm9121_vm12, %v6635_v10, %v6655_v24  ;;  %v1643_v49 = vsel %vm6745_vm11, %v1620_v53, %v6769_v59  ;;  %v1588_v31 = vsel %vm9129_vm6, %v6726_v40, %v1535_v21 }
  0xd2   : > { %9182 = vst [vmem:[#allocation31_spill] sm:$0xff] %v6737_v32  ;;  %v6789_v51 = vsel %vm9125_vm9, %v5508_v1, %v9185_v38  ;;  %9187 = vst [vmem:[#allocation33_spill] sm:$0xff] %v6804_v29  ;;  %v1196_v53 = vsel %vm6603_vm4, %v6270_v13, %v6644_v52 }
  0xd3   : > { %v906_v43 = vpop.permute.xlu1 %905  ;;  %9186 = vst [vmem:[#allocation32_spill] sm:$0xff] %v6789_v51  ;;  %v1607_v21 = vsel %vm6714_vm7, %v1588_v31, %v6789_v51 }
  0xd4   : > { %v6781_v63 = vsel %vm9099_vm2, %v6737_v32, %v906_v43  ;;  %v1626_v52 = vsel %vm9127_vm10, %v1607_v21, %v6804_v29 }
  0xd5   : > { %v908_v30 = vpop.permute.xlu0 %907  ;;  %v1654_v23 = vsel %vm9130_vm14, %v1642_v17, %v6781_v63 }
  0xd6   : > { %v6807_v1 = vsel %vm9099_vm2, %v906_v43, %v908_v30  ;;  %1681 = vrot.lane.b32.xlu1 %v1654_v23, %s9115_s27  ;;  %v9188_v43 = vunpack.i.l.bf16 %v6718_v41  ;;  %v1644_v23 = vsel %vm6745_vm11, %v1623_v22, %v6796_v60 }
  0xd7   : > { %v910_v17 = vpop.permute.xlu1 %909  ;;  %v1656_v10 = vsel %vm9130_vm14, %v1643_v49, %v6807_v1 }
  0xd8   : > { %v6822_v38 = vsel %vm9100_vm13, %v5523_v37, %v9188_v43  ;;  %v6832_v62 = vsel %vm9099_vm2, %v908_v30, %v910_v17  ;;  %1683 = vrot.lane.b32.xlu0 %v1656_v10, %s9115_s27  ;;  %v9190_v37 = vunpack.i.l.bf16 %v6569_v55  ;;  %v1005_v30 = vrot.slane %v6341_v35, 3  ;;  %vm9201_vm13 = vmmov %vm9199_vm15 }
  0xd9   : > { %9189 = vst [vmem:[#allocation34_spill] sm:$0xff] %v6822_v38  ;;  %v6843_v43 = vpop.permute.xlu0 %911  ;;  %v1658_v31 = vsel %vm9130_vm14, %v1644_v23, %v6832_v62  ;;  %v659_v10 = vsel %vm9123_vm3, %v6543_v14, %v6547_v15  ;;  %v1645_v55 = vsel %vm6745_vm11, %v1626_v52, %v6822_v38  ;;  %v9193_v15 = vrot.slane %v6305_v25, 3 }
  0xda   : > { %v695_v49 = vsel %vm9124_vm5, %v5498_v58, %v9190_v37  ;;  %v6853_v22 = vsel %vm9099_vm2, %v910_v17, %v6843_v43  ;;  %1685 = vrot.lane.b32.xlu1 %v1658_v31, %s9115_s27  ;;  %v1006_v58 = vrot.slane %v6344_v36, 3  ;;  %v1207_v21 = vsel %vm9122_vm1, %v1196_v53, %v659_v10 }
  0xdb   : > { %9191 = vst [vmem:[#allocation35_spill] sm:$0xff] %v6853_v22  ;;  %v6861_v23 = vpop.permute.xlu1 %5530  ;;  %v1660_v37 = vsel %vm9130_vm14, %v1645_v55, %v6853_v22  ;;  %v6867_v14 = vsel %vm6669_vm0, %v1207_v21, %v695_v49  ;;  %v9194_v17 = vrot.slane %v6308_v26, 3  ;;  %v1080_v22 = vrot.slane %v6344_v36, 2 }
  0xdc   : > { %9192 = vst [vmem:[#allocation36_spill] sm:$0xff] %v6861_v23  ;;  %1687 = vrot.lane.b32.xlu0 %v1660_v37, %s9115_s27  ;;  %v5579_v53 = vpack.i.bf16 %v1006_v58, %v1005_v30  ;;  %v1576_v10 = vsel %vm9129_vm6, %v6867_v14, %v6581_v48  ;;  %v1002_v30 = vrot.slane %v6314_v28, 3  ;;  %vm9112_vm2 = vcmask 1014784  }
  0xdd   : > { %v5574_v52 = vpack.i.bf16 %v9194_v17, %v9193_v15  ;;  %v6874_v31 = vpop.permute.xlu0 %652  ;;  %v1603_v49 = vsel %vm6714_vm7, %v1576_v10, %v6675_v6  ;;  %v1047_v10 = vcombine.low %v6397_v61, %v6397_v61  ;;  %v9101_v61 = vunpack.i.h.bf16 %v6861_v23 }
  0xde   : > { %975 = vrot.lane.b32.xlu1 %v6619_v34, %s9082_s21  ;;  %v1614_v21 = vsel %vm9127_vm10, %v1603_v49, %v6599_v3  ;;  %s9095_s21 = smov 62   ;;  %v1077_v49 = vrot.slane %v6305_v25, 2 }
  0xdf   : > { %v6881_v55 = vpop.permute.xlu1 %654  ;;  %v1641_v48 = vsel %vm6745_vm11, %v1614_v21, %v6689_v33  ;;  %v1078_v21 = vrot.slane %v6308_v26, 2 }
  0xe0   : > { %9195 = vst [vmem:[#allocation37_spill] sm:$0xff] %v6881_v55  ;;  %5575 = vrot.lane.b32.xlu0 %v5574_v52, %s9090_s28  ;;  %v1652_v15 = vsel %vm9130_vm14, %v1641_v48, %v6737_v32 }
  0xe1   : > { %v6889_v37 = vpop.permute.xlu0 %5535  ;;  %v5584_v29 = vpack.i.bf16 %v1078_v21, %v1077_v49  ;;  %v5532_v49 = vunpack.i.l.bf16 %v6861_v23  ;;  %v1150_v21 = vrot.slane %v6305_v25, 1 }
  0xe2   : > { %5580 = vrot.lane.b32.xlu1 %v5579_v53, %s9090_s28 }
  0xe3   : > { %v6896_v58 = vpop.permute.xlu1 %1525 }
  0xe4   : > { %1679 = vrot.lane.b32.xlu0 %v1652_v15, %s9115_s27  ;;  %v1079_v15 = vrot.slane %v6341_v35, 2 }
  0xe5   : > { %v6901_v17 = vpop.permute.xlu0 %1527 }
  0xe6   : > { %1011 = vrot.lane.b32.xlu1 %v1002_v30, %s9090_s28  ;;  %v1046_v30 = vcombine.low %v6369_v54, %v6369_v54  ;;  %v5589_v40 = vpack.i.bf16 %v1080_v22, %v1079_v15  ;;  %s9113_s28 = smov 61   ;;  %v1152_v15 = vrot.slane %v6341_v35, 1  ;;  %v5537_v35 = vunpack.i.l.bf16 %v6889_v37 }
  0xe7   : > { %v6904_v52 = vpop.permute.xlu1 %5540 }
  0xe8   : > { %1051 = vrot.lane.b32.xlu0 %v6534_v7, %s9095_s21 }
  0xe9   : > { %v6908_v53 = vpop.permute.xlu0 %837 }
  0xea   : > { %1053 = vrot.lane.b32.xlu1 %v6369_v54, %s9095_s21  ;;  %v1076_v54 = vrot.slane %v6314_v28, 2 }
  0xeb   : > { %v6916_v48 = vpop.permute.xlu1 %839 }
  0xec   : > { %1055 = vrot.lane.b32.xlu0 %v6270_v13, %s9095_s21 }
  0xed   : > { %v6924_v38 = vpop.permute.xlu0 %5545 }
  0xee   : > { %1057 = vrot.lane.b32.xlu1 %v1047_v10, %s9095_s21 }
  0xef   : > { %v6927_v51 = vpop.permute.xlu1 %913 }
  0xf0   : > { %1049 = vrot.lane.b32.xlu0 %v1046_v30, %s9095_s21  ;;  %s9106_s21 = smov 60  }
  0xf1   : > { %v6930_v32 = vpop.permute.xlu0 %915 }
  0xf2   : > { %5585 = vrot.lane.b32.xlu1 %v5584_v29, %s9113_s28  ;;  %v590_v29 = vsel %vm9199_vm15, %v5532_v49, %v9101_v61  ;;  %v665_v61 = vsel %vm9123_vm3, %v6874_v31, %v6881_v55 }
  0xf3   : > { %v6934_v7 = vpop.permute.xlu1 %581 }
  0xf4   : > { %9196 = vst [vmem:[#allocation38_spill] sm:$0xff] %v6934_v7  ;;  %5590 = vrot.lane.b32.xlu0 %v5589_v40, %s9113_s28  ;;  %v1151_v40 = vrot.slane %v6308_v26, 1  ;;  %v1202_v26 = vsel %vm6603_vm4, %v6380_v57, %v590_v29  ;;  %v5538_v57 = vunpack.i.h.bf16 %v6889_v37 }
  0xf5   : > { %v6938_v10 = vpop.permute.xlu0 %656 }
  0xf6   : > { %9197 = vst [vmem:[#allocation39_spill] sm:$0xff] %v6938_v10  ;;  %1085 = vrot.lane.b32.xlu1 %v1076_v54, %s9113_s28  ;;  %v1153_v10 = vrot.slane %v6344_v36, 1  ;;  %v9200_v54 = vunpack.i.l.bf16 %v6557_v39  ;;  %v1120_v39 = vcombine.low %v6415_v9, %v6415_v9  ;;  %s9218_s28 = smov 63  }
  0xf7   : > { %v6942_v22 = vpop.permute.xlu1 %692 }
  0xf8   : > { %9198 = vst [vmem:[#allocation40_spill] sm:$0xff] %v6942_v22  ;;  %1124 = vrot.lane.b32.xlu0 %v6619_v34, %s9106_s21  ;;  %v589_v25 = vsel %vm9201_vm13, %v9200_v54, %v5532_v49  ;;  %v5594_v49 = vpack.i.bf16 %v1151_v40, %v1150_v21  ;;  %v5599_v54 = vpack.i.bf16 %v1153_v10, %v1152_v15  ;;  %vm9206_vm13 = vcmask 769024  }
  0xf9   : > { %v740_v7 = vpop.permute.xlu0 %739  ;;  %v664_v22 = vsel %vm9123_vm3, %v6538_v11, %v6874_v31  ;;  %v1201_v29 = vsel %vm6603_vm4, %v6311_v27, %v589_v25  ;;  %v9202_v11 = vunpack.i.l.bf16 %v6577_v47  ;;  %v5543_v25 = vunpack.i.h.bf16 %v6904_v52  ;;  %vm9210_vm15 = vmmov %vm9206_vm13 }
  0xfa   : > { %1126 = vrot.lane.b32.xlu1 %v6415_v9, %s9106_s21 }
  0xfb   : > { %v742_v36 = vpop.permute.xlu1 %741  ;;  %v700_v27 = vsel %vm9124_vm5, %v9202_v11, %v5537_v35 }
  0xfc   : > { %v757_v34 = vsel %vm9112_vm2, %v740_v7, %v742_v36  ;;  %1128 = vrot.lane.b32.xlu0 %v6289_v20, %s9106_s21  ;;  %v1231_v20 = vsel %vm9122_vm1, %v1202_v26, %v665_v61  ;;  %v6123_v61 = vmov 0  }
  0xfd   : > { %v1255_v55 = vsel %vm9129_vm6, %v6694_v4, %v757_v34  ;;  %v744_v23 = vpop.permute.xlu0 %743  ;;  %1775 = vmatprep.mubr.bf16.mxu0 %v6123_v61  ;;  %1816 = vmatprep.mubr.bf16.mxu1 %v6123_v61 }
  0xfe   : > { %v1285_v9 = vsel %vm6714_vm7, %v1255_v55, %v6709_v16  ;;  %v758_v10 = vsel %vm9112_vm2, %v742_v36, %v744_v23  ;;  %1130 = vrot.lane.b32.xlu1 %v1046_v30, %s9106_s21  ;;  %v701_v55 = vsel %vm9124_vm5, %v5537_v35, %v5538_v57  ;;  %5639 = vset.pattern.permute.xlu0 %v6123_v61  ;;  %v5548_v36 = vunpack.i.h.bf16 %v6924_v38 }
  0xff   : > { %v1299_v31 = vsel %vm9127_vm10, %v1285_v9, %v6731_v0  ;;  %v1259_v4 = vsel %vm9129_vm6, %v6698_v46, %v758_v10  ;;  %v6992_v21 = vpop.permute.xlu1 %745  ;;  %v1149_v0 = vrot.slane %v6314_v28, 1  ;;  %5675 = vset.pattern.permute.xlu1 %v6123_v61  ;;  %v1537_v35 = vsel %vm1531_vm8, %v6896_v58, %v6901_v17  ;;  %v9205_v10 = vld [vmem:[#allocation13_spill] sm:$0xff] }
 0x100   : > { %v1286_v16 = vsel %vm6714_vm7, %v1259_v4, %v6734_v44  ;;  %v759_v47 = vsel %vm9112_vm2, %v744_v23, %v6992_v21  ;;  %1122 = vrot.lane.b32.xlu0 %v1120_v39, %s9106_s21  ;;  %v1329_v46 = vsel %vm6745_vm11, %v1299_v31, %v6741_v19  ;;  %v1227_v19 = vsel %vm9122_vm1, %v1201_v29, %v664_v22  ;;  %s9110_s21 = smov 32   ;;  %v9207_v4 = vld [vmem:[#allocation26_spill] sm:$0xff] }
 0x101   : > { %v1303_v44 = vsel %vm9127_vm10, %v1286_v16, %v6760_v18  ;;  %v1263_v23 = vsel %vm9129_vm6, %v6702_v5, %v759_v47  ;;  %v738_v30 = vpop.permute.xlu0 %737  ;;  %v7016_v28 = vsel %vm9130_vm14, %v1329_v46, %v6781_v63  ;;  %v9203_v18 = vld [vmem:[#allocation29_spill] sm:$0xff]  ;;  %v7085_v11 = vsel %vm9206_vm13, %v5548_v36, %v6689_v33 }
 0x102   : > { %v1287_v40 = vsel %vm6714_vm7, %v1263_v23, %v6763_v45  ;;  %v756_v15 = vsel %vm9112_vm2, %v738_v30, %v740_v7  ;;  %5595 = vrot.lane.b32.xlu1 %v5594_v49, %s9110_s21  ;;  %v1330_v5 = vsel %vm6745_vm11, %v1303_v44, %v6769_v59  ;;  %v1536_v63 = vsel %vm1531_vm8, %v9203_v18, %v6896_v58  ;;  %v9214_v30 = vld [vmem:[#allocation14_spill] sm:$0xff]  ;;  %vm9216_vm2 = vmmov %vm9210_vm15 }
 0x103   : > { %v1307_v22 = vsel %vm9127_vm10, %v1287_v40, %v6777_v12  ;;  %v7034_v26 = vpop.permute.xlu1 %1529  ;;  %v7038_v7 = vsel %vm9130_vm14, %v1330_v5, %v6807_v1  ;;  %v7042_v45 = vsel %vm6669_vm0, %v1227_v19, %v700_v27  ;;  %v7046_v59 = vsel %vm6669_vm0, %v1231_v20, %v701_v55 }
 0x104   : > { %5600 = vrot.lane.b32.xlu0 %v5599_v54, %s9110_s21  ;;  %v1331_v12 = vsel %vm6745_vm11, %v1307_v22, %v6796_v60  ;;  %v5542_v1 = vunpack.i.l.bf16 %v6904_v52  ;;  %v1251_v34 = vsel %vm9129_vm6, %v6867_v14, %v756_v15  ;;  %v5513_v58 = vunpack.i.h.bf16 %v6597_v2  ;;  %v9204_v60 = vld [vmem:[#allocation20_spill] sm:$0xff] }
 0x105   : > { %v7061_v39 = vsel %vm9130_vm14, %v1331_v12, %v6832_v62  ;;  %v792_v49 = vsel %vm9125_vm9, %v5543_v25, %v6675_v6  ;;  %v934_v29 = vrot.slane %v9204_v60, 4  ;;  %v1591_v20 = vsel %vm9129_vm6, %v7042_v45, %v1536_v63 }
 0x106   : > { %1158 = vrot.lane.b32.xlu1 %v1149_v0, %s9110_s21  ;;  %v1594_v14 = vsel %vm9129_vm6, %v7046_v59, %v1537_v35  ;;  %v1284_v9 = vsel %vm6714_vm7, %v1251_v34, %v792_v49  ;;  %v7081_v6 = vsel %vm9125_vm9, %v5513_v58, %v5542_v1  ;;  %v5547_v27 = vunpack.i.l.bf16 %v6924_v38  ;;  %s9212_s21 = smov 64   ;;  %v5551_v35 = vpop.permute.xlu0 %5550  ;;  %v9245_v38 = vld [vmem:[#allocation12_spill] sm:$0xff] }
 0x107   : > { %v826_v54 = vpop.permute.xlu1 %825  ;;  %v9208_v33 = vunpack.i.l.bf16 %v6597_v2  ;;  %v5528_v0 = vunpack.i.h.bf16 %v6718_v41  ;;  %v7114_v46 = vsel %vm9121_vm12, %v6908_v53, %v6916_v48  ;;  %v1609_v55 = vsel %vm6714_vm7, %v1594_v14, %v7081_v6 }
 0x108   : > { %v844_v62 = vsel %vm9121_vm12, %v826_v54, %v6599_v3  ;;  %747 = vrot.lane.b32.xlu0 %v9205_v10, %s9108_s18  ;;  %v7094_v3 = vsel %vm9121_vm12, %v6655_v24, %v6908_v53  ;;  %vm9211_vm13 = vcmask 760832   ;;  %v9213_v53 = vld [vmem:[#allocation22_spill] sm:$0xff]  ;;  %v1007_v19 = vrot.slane %v9214_v30, 3 }
 0x109   : > { %v7089_v31 = vsel %vm9127_vm10, %v1284_v9, %v844_v62  ;;  %v7105_v47 = vsel %vm9125_vm9, %v9208_v33, %v5513_v58  ;;  %v7125_v44 = vsel %vm9210_vm15, %v5528_v0, %v5547_v27  ;;  %v7130_v23 = vsel %vm9211_vm13, %v6843_v43, %v6927_v51  ;;  %vm9217_vm15 = vmmov %vm9211_vm13  ;;  %v9220_v58 = vld [vmem:[#allocation24_spill] sm:$0xff]  ;;  %v9221_v54 = vld [vmem:[#allocation38_spill] sm:$0xff] }
 0x10a   : > { %749 = vrot.lane.b32.xlu1 %v9207_v4, %s9108_s18  ;;  %v1328_v16 = vsel %vm6745_vm11, %v7089_v31, %v7085_v11  ;;  %v1608_v24 = vsel %vm6714_vm7, %v1591_v20, %v7105_v47  ;;  %s9209_s18 = smov 92   ;;  %v1008_v40 = vrot.slane %v9204_v60, 3  ;;  %v1632_v15 = vsel %vm9127_vm10, %v1609_v55, %v7114_v46  ;;  %v842_v14 = vpop.permute.xlu0 %841  ;;  %v9223_v62 = vld [vmem:[#allocation21_spill] sm:$0xff]  ;;  %v9224_v33 = vld [vmem:[#allocation36_spill] sm:$0xff]  ;;  %v9228_v55 = vld [vmem:[#allocation39_spill] sm:$0xff] }
 0x10b   : > { %v1629_v2 = vsel %vm9127_vm10, %v1608_v24, %v7094_v3  ;;  %v9215_v5 = vunpack.i.l.bf16 %v6718_v41  ;;  %v7146_v43 = vsel %vm9217_vm15, %v6927_v51, %v6930_v32  ;;  %v1647_v25 = vsel %vm6745_vm11, %v1632_v15, %v7125_v44  ;;  %v1557_v34 = vpop.permute.xlu1 %1556  ;;  %v9232_v15 = vld [vmem:[#allocation28_spill] sm:$0xff] }
 0x10c   : > { %949 = vrot.lane.b32.xlu0 %v934_v29, %s9209_s18  ;;  %v5604_v22 = vpack.i.bf16 %v1008_v40, %v1007_v19  ;;  %v1664_v51 = vsel %vm9130_vm14, %v1647_v25, %v7146_v43  ;;  %v1081_v12 = vrot.slane %v9214_v30, 2  ;;  %v1082_v36 = vrot.slane %v9204_v60, 2  ;;  %v9222_v29 = vld [vmem:[#allocation11_spill] sm:$0xff] }
 0x10d   : > { %v7141_v18 = vsel %vm9216_vm2, %v9215_v5, %v5528_v0  ;;  %v1569_v20 = vsel %vm6603_vm4, %v9222_v29, %v9221_v54  ;;  %v1154_v9 = vrot.slane %v9214_v30, 1  ;;  %v1155_v4 = vrot.slane %v9204_v60, 1  ;;  %v9229_v19 = vld [vmem:[#allocation23_spill] sm:$0xff]  ;;  %v9230_v30 = vld [vmem:[#allocation37_spill] sm:$0xff] }
 0x10e   : > { %985 = vrot.lane.b32.xlu1 %v9213_v53, %s9212_s21  ;;  %v1646_v63 = vsel %vm6745_vm11, %v1629_v2, %v7141_v18  ;;  %v5609_v49 = vpack.i.bf16 %v1082_v36, %v1081_v12  ;;  %v9225_v0 = vunpack.i.h.bf16 %v9224_v33  ;;  %vm9226_vm2 = vcmask 1039360   ;;  %v9234_v12 = vld [vmem:[#allocation17_spill] sm:$0xff] }
 0x10f   : > { %v1662_v41 = vsel %vm9130_vm14, %v1646_v63, %v7130_v23  ;;  %v1572_v2 = vsel %vm9122_vm1, %v1569_v20, %v9228_v55  ;;  %v7182_v53 = vpop.permute.xlu1 %901  ;;  %v666_v60 = vsel %vm9123_vm3, %v9230_v30, %v9228_v55  ;;  %v5614_v5 = vpack.i.bf16 %v1155_v4, %v1154_v9  ;;  %v9240_v55 = vld [vmem:[#allocation16_spill] sm:$0xff] }
 0x110   : > { %987 = vrot.lane.b32.xlu0 %v6270_v13, %s9212_s21  ;;  %v591_v24 = vsel %vm9226_vm2, %v9225_v0, %v9221_v54  ;;  %v5553_v63 = vunpack.i.h.bf16 %v5551_v35  ;;  %v5552_v25 = vunpack.i.l.bf16 %v5551_v35  ;;  %v935_v36 = vrot.slane %v9235_v8, 4 }
 0x111   : > { %v1203_v40 = vsel %vm6603_vm4, %v9229_v19, %v591_v24  ;;  %v1538_v35 = vsel %vm1531_vm8, %v6901_v17, %v7034_v26  ;;  %v9239_v17 = vld [vmem:[#allocation19_spill] sm:$0xff]  ;;  %v1558_v42 = vsel %vm9121_vm12, %v842_v14, %v1557_v34  ;;  %vm9244_vm8 = vmmov %vm9211_vm13  ;;  %vm1369_vm15 = vcmask 1044480  }
 0x112   : > { %1689 = vrot.lane.b32.xlu1 %v1662_v41, %s9115_s27  ;;  %v9233_v41 = vld [vmem:[#allocation40_spill] sm:$0xff]  ;;  %v1235_v54 = vsel %vm9122_vm1, %v1203_v40, %v666_v60  ;;  %v1553_v9 = vsel %vm9125_vm9, %v5552_v25, %v5553_v63  ;;  %vm9246_vm13 = vmmov %vm9244_vm8  ;;  %vm9126_vm2 = vcmask 252928   ;;  %vm1414_vm1 = vsmask.f32 5376 }
 0x113   : > { %v702_v29 = vsel %vm9124_vm5, %v5538_v57, %v9233_v41  ;;  %v7216_v37 = vpop.permute.xlu1 %5560  ;;  %vm9135_vm3 = vcmask 506880   ;;  %vm9251_vm5 = vcmask 760832  }
 0x114   : > { %1691 = vrot.lane.b32.xlu0 %v1664_v51, %s9115_s27  ;;  %s9227_s27 = smov 61   ;;  %v5556_v51 = vpop.permute.xlu0 %5555  ;;  %v7220_v57 = vsel %vm6669_vm0, %v1235_v54, %v702_v29 }
 0x115   : > { %v5557_v4 = vunpack.i.l.bf16 %v5556_v51  ;;  %v5558_v52 = vunpack.i.h.bf16 %v5556_v51 }
 0x116   : > { %5605 = vrot.lane.b32.xlu1 %v5604_v22, %s9218_s28  ;;  %v1574_v22 = vsel %vm6669_vm0, %v1572_v2, %v9233_v41  ;;  %vm9241_vm0 = vcmask 769024  }
 0x117   : > { %v1601_v20 = vsel %vm9129_vm6, %v1574_v22, %v7034_v26  ;;  %v1597_v26 = vsel %vm9129_vm6, %v7220_v57, %v1538_v35  ;;  %v7241_v19 = vsel %vm9241_vm0, %v5547_v27, %v5557_v4  ;;  %v1567_v30 = vpop.permute.xlu1 %1566  ;;  %vm9243_vm4 = vmmov %vm9241_vm0  ;;  %v1156_v35 = vrot.slane %v9235_v8, 1 }
 0x118   : > { %1059 = vrot.lane.b32.xlu0 %v9220_v58, %s9219_s0  ;;  %v9236_v58 = vld [vmem:[#allocation27_spill] sm:$0xff]  ;;  %v1611_v24 = vsel %vm6714_vm7, %v1601_v20, %v1553_v9  ;;  %v918_v2 = vpop.permute.xlu0 %917  ;;  %v1562_v60 = vsel %vm9243_vm4, %v5557_v4, %v5558_v52  ;;  %v9248_v9 = vld [vmem:[#allocation18_spill] sm:$0xff]  ;;  %vm9128_vm0 = vcmask 752640   ;;  %vm1370_vm4 = vsmask.f32 4352 }
 0x119   : > { %v1010_v63 = vrot.slane %v9236_v58, 3  ;;  %v1157_v20 = vrot.slane %v9236_v58, 1  ;;  %v1121_v4 = vcombine.low %v9248_v9, %v9248_v9  ;;  %vm1502_vm6 = vsmask.f32 7424 }
 0x11a   : > { %1061 = vrot.lane.b32.xlu1 %v9223_v62, %s9219_s0  ;;  %v7213_v62 = vsel %vm9125_vm9, %v5542_v1, %v5552_v25  ;;  %v7228_v1 = vsel %vm9121_vm12, %v6916_v48, %v842_v14  ;;  %v9242_v48 = vld [vmem:[#allocation15_spill] sm:$0xff]  ;;  %v1639_v14 = vsel %vm9127_vm10, %v1611_v24, %v1558_v42  ;;  %v1568_v25 = vsel %vm9246_vm13, %v918_v2, %v1567_v30  ;;  %vm7342_vm9 = vmand %vm1369_vm15, %vm1370_vm4 }
 0x11b   : > { %v1610_v0 = vsel %vm6714_vm7, %v1597_v26, %v7213_v62  ;;  %v974_v40 = vcombine.low %v9242_v48, %v9242_v48  ;;  %v1649_v41 = vsel %vm6745_vm11, %v1639_v14, %v1562_v60  ;;  %vm1029_vm13 = vcmask 515072  }
 0x11c   : > { %5610 = vrot.lane.b32.xlu0 %v5609_v49, %s9227_s27  ;;  %v936_v49 = vrot.slane %v9236_v58, 4  ;;  %v1635_v34 = vsel %vm9127_vm10, %v1610_v0, %v7228_v1  ;;  %v1669_v51 = vsel %vm9130_vm14, %v1649_v41, %v1568_v25  ;;  %v7275_v54 = vpop.permute.xlu0 %5565  ;;  %v6125_v0 = vmov 65535  }
 0x11d   : > { %v1648_v27 = vsel %vm6745_vm11, %v1635_v34, %v7241_v19  ;;  %v5567_v9 = vunpack.i.l.bf16 %v7275_v54  ;;  %vm9133_vm12 = vcmask 1045504   ;;  %vm9132_vm10 = vcmask 1046528  }
 0x11e   : > { %1132 = vrot.lane.b32.xlu1 %v9232_v15, %s9231_s22  ;;  %v5619_v33 = vpack.i.bf16 %v936_v49, %v935_v36  ;;  %v7252_v15 = vsel %vm9244_vm8, %v6930_v32, %v918_v2  ;;  %v1084_v36 = vrot.slane %v9236_v58, 2  ;;  %v1048_v49 = vcombine.low %v9240_v55, %v9240_v55 }
 0x11f   : > { %v1666_v32 = vsel %vm9130_vm14, %v1648_v27, %v7252_v15  ;;  %vm993_vm8 = vcmask 523264   ;;  %vm9131_vm4 = vcmask 490496  }
 0x120   : > { %1134 = vrot.lane.b32.xlu0 %v9234_v12, %s9231_s22  ;;  %v1083_v12 = vrot.slane %v9235_v8, 2 }
 0x122   : > { %5615 = vrot.lane.b32.xlu1 %v5614_v5, %s9237_s15  ;;  %v1009_v5 = vrot.slane %v9235_v8, 3  ;;  %v5629_v29 = vpack.i.bf16 %v1084_v36, %v1083_v12  ;;  %v7293_v8 = vpop.permute.xlu1 %977 }
 0x124   : > { %751 = vrot.lane.b32.xlu0 %v9239_v17, %s9238_s19  ;;  %v5624_v22 = vpack.i.bf16 %v1010_v63, %v1009_v5  ;;  %v7285_v17 = vpop.permute.xlu0 %5570 }
 0x126   : > { %753 = vrot.lane.b32.xlu1 %v9240_v55, %s9238_s19  ;;  %v7298_v26 = vpop.permute.xlu1 %981 }
 0x128   : > { %5620 = vrot.lane.b32.xlu0 %v5619_v33, %s9209_s18  ;;  %v5634_v33 = vpack.i.bf16 %v1157_v20, %v1156_v35  ;;  %v7296_v58 = vpop.permute.xlu0 %979  ;;  %v5563_v35 = vunpack.i.h.bf16 %v7216_v37  ;;  %v5562_v20 = vunpack.i.l.bf16 %v7216_v37 }
 0x12a   : > { %989 = vrot.lane.b32.xlu1 %v9245_v38, %s9212_s21 }
 0x12c   : > { %991 = vrot.lane.b32.xlu0 %v974_v40, %s9212_s21  ;;  %v7300_v52 = vpop.permute.xlu0 %983  ;;  %s9330_s21 = smov 93  }
 0x12e   : > { %1693 = vrot.lane.b32.xlu1 %v1666_v32, %s9247_s24 }
 0x130   : > { %1695 = vrot.lane.b32.xlu0 %v1669_v51, %s9247_s24  ;;  %s6131_s24 = smov 111  }
 0x132   : > { %5625 = vrot.lane.b32.xlu1 %v5624_v22, %s9218_s28  ;;  %s6130_s28 = smov 109  }
 0x134   : > { %1063 = vrot.lane.b32.xlu0 %v9205_v10, %s9219_s0  ;;  %v1707_v10 = vld [vmem:[%s9249_s2] sm:$0x3f] }
 0x136   : > { %1065 = vrot.lane.b32.xlu1 %v1048_v49, %s9219_s0  ;;  %s6132_s0 = smov 80  }
 0x138   : > { %5630 = vrot.lane.b32.xlu0 %v5629_v29, %s9227_s27  ;;  %s6129_s27 = smov 113  }
 0x13a   : > { %1136 = vrot.lane.b32.xlu1 %v6270_v13, %s9231_s22  ;;  %v1717_v13 = vsel %vm9130_vm14, 4294967295, %v6125_v0 }
 0x13b   : > { %v7304_v24 = vsel %vm1369_vm15, %v1717_v13, 0  ;;  %v9250_v13 = vld [vmem:[#allocation31_spill] sm:$0xff] }
 0x13c   : > { %1138 = vrot.lane.b32.xlu0 %v1121_v4, %s9231_s22  ;;  %v920_v37 = vsel %vm9251_vm5, %v7182_v53, %v9250_v13  ;;  %vm1458_vm5 = vsmask.f32 6400  ;;  %s9314_s22 = smov 127  }
 0x13e   : > { %5635 = vrot.lane.b32.xlu1 %v5634_v33, %s9237_s15  ;;  %v5568_v33 = vunpack.i.h.bf16 %v7275_v54  ;;  %s6133_s15 = smov 110  }
 0x140   : > { %1710 = vperm.xlu0 %5639, %v1707_v10   ;;  %v5572_v10 = vunpack.i.l.bf16 %v7285_v17 }
 0x148   : > { %v1682_v42 = vpop.permute.xlu1 %1681 }
 0x14a   : > { %v1684_v55 = vpop.permute.xlu0 %1683 }
 0x14b   : > { %v1699_v2 = vsel %vm9126_vm2, %v1682_v42, %v1684_v55 }
 0x14c   : > { %v1686_v48 = vpop.permute.xlu1 %1685  ;;  %v1723_v40 = vand.u32 %v7304_v24, %v1699_v2 }
 0x14d   : > { %v1700_v14 = vsel %vm9126_vm2, %v1684_v55, %v1686_v48  ;;  %v958_v55 = vsel %vm9128_vm0, %v5563_v35, %v5567_v9 }
 0x14e   : > { %1755 = vmatprep.subr.bf16.mxu0 %v1723_v40  ;;  %v7308_v34 = vpop.permute.xlu0 %1687  ;;  %v1726_v27 = vand.u32 %v7304_v24, %v1700_v14  ;;  %v959_v40 = vsel %vm9128_vm0, %v5567_v9, %v5568_v33  ;;  %v956_v14 = vsel %vm9128_vm0, %v5572_v10, %v5562_v20 }
 0x14f   : > { %v1701_v30 = vsel %vm9126_vm2, %v1686_v48, %v7308_v34  ;;  %v1375_v11 = vsel %vm7342_vm9, %v7061_v39, %v959_v40 }
 0x150   : > { %v976_v60 = vpop.permute.xlu1 %975  ;;  %v1729_v38 = vand.u32 %v7304_v24, %v1701_v30 }
 0x152   : > { %1796 = vmatprep.subr.bf16.mxu1 %v1729_v38  ;;  %v5576_v5 = vpop.permute.xlu0 %5575 }
 0x153   : > { %1797 = vmatpush1.bf16.msra.mxu1 %v1726_v27  ;;  %v5578_v30 = vunpack.i.h.bf16 %v5576_v5  ;;  %v5577_v53 = vunpack.i.l.bf16 %v5576_v5  ;;  %v995_v5 = vsel %vm993_vm8, %v7293_v8, %v7296_v58 }
 0x154   : > { %v7315_v63 = vpop.permute.xlu1 %5580 }
 0x155   : > { %v5583_v38 = vunpack.i.h.bf16 %v7315_v63  ;;  %v5582_v27 = vunpack.i.l.bf16 %v7315_v63  ;;  %v1031_v9 = vsel %vm1029_vm13, %v5577_v53, %v5578_v30 }
 0x156   : > { %v1680_v25 = vpop.permute.xlu0 %1679 }
 0x157   : > { %v1698_v41 = vsel %vm9126_vm2, %v1680_v25, %v1682_v42  ;;  %v957_v42 = vsel %vm9128_vm0, %v5562_v20, %v5563_v35  ;;  %vm9134_vm2 = vcmask 498688   ;;  %vm1501_vm0 = vcmask 1047552  }
 0x158   : > { %v1012_v32 = vpop.permute.xlu1 %1011  ;;  %v1720_v22 = vand.u32 %v7304_v24, %v1698_v41  ;;  %v1339_v41 = vsel %vm9130_vm14, %v1328_v16, %v920_v37  ;;  %v1374_v35 = vsel %vm7342_vm9, %v7038_v7, %v958_v55  ;;  %v997_v20 = vsel %vm993_vm8, %v7298_v26, %v7300_v52  ;;  %vm7387_vm14 = vmand %vm9133_vm12, %vm1414_vm1 }
 0x159   : > { %v1372_v31 = vsel %vm7342_vm9, %v1339_v41, %v956_v14  ;;  %v994_v7 = vsel %vm993_vm8, %v976_v60, %v7293_v8  ;;  %v1032_v39 = vsel %vm1029_vm13, %v5578_v30, %v5582_v27  ;;  %v1033_v10 = vsel %vm1029_vm13, %v5582_v27, %v5583_v38  ;;  %vm7429_vm1 = vmand %vm9132_vm10, %vm1458_vm5 }
 0x15a   : > { %1756 = vmatpush1.bf16.msra.mxu0 %v1720_v22  ;;  %v7319_v51 = vpop.permute.xlu0 %1051  ;;  %v1373_v22 = vsel %vm7342_vm9, %v7016_v28, %v957_v42  ;;  %v996_v28 = vsel %vm993_vm8, %v7296_v58, %v7298_v26  ;;  %v1030_v58 = vsel %vm1029_vm13, %v1012_v32, %v5577_v53  ;;  %v1395_v30 = vsel %vm1369_vm15, %v1375_v11, %v997_v20  ;;  %vm7442_vm5 = vmand %vm1501_vm0, %vm1502_vm6 }
 0x15b   : > { %v1387_v40 = vsel %vm1369_vm15, %v1373_v22, %v995_v5  ;;  %v1391_v14 = vsel %vm1369_vm15, %v1374_v35, %v996_v28  ;;  %v1383_v27 = vsel %vm1369_vm15, %v1372_v31, %v994_v7  ;;  %v1419_v11 = vsel %vm7387_vm14, %v1395_v30, %v1033_v10 }
 0x15c   : > { %v1054_v12 = vpop.permute.xlu1 %1053  ;;  %v1416_v5 = vsel %vm7387_vm14, %v1383_v27, %v1030_v58  ;;  %v1418_v35 = vsel %vm7387_vm14, %v1391_v14, %v1032_v39  ;;  %vm9260_vm6 = vcmask 261120  }
 0x15d   : > { %v1069_v26 = vsel %vm9135_vm3, %v7319_v51, %v1054_v12  ;;  %vm9261_vm0 = vmmov %vm9260_vm6 }
 0x15e   : > { %v7321_v36 = vpop.permute.xlu0 %1055 }
 0x15f   : > { %v1070_v32 = vsel %vm9135_vm3, %v1054_v12, %v7321_v36 }
 0x160   : > { %v7323_v49 = vpop.permute.xlu1 %1057  ;;  %v1435_v28 = vsel %vm9133_vm12, %v1418_v35, %v1070_v32 }
 0x161   : > { %v1071_v41 = vsel %vm9135_vm3, %v7321_v36, %v7323_v49 }
 0x162   : > { %v7325_v29 = vpop.permute.xlu0 %1049  ;;  %v1439_v7 = vsel %vm9133_vm12, %v1419_v11, %v1071_v41 }
 0x163   : > { %v1068_v22 = vsel %vm9135_vm3, %v7325_v29, %v7319_v51 }
 0x164   : > { %v7330_v4 = vpop.permute.xlu1 %5585 }
 0x165   : > { %v5588_v60 = vunpack.i.h.bf16 %v7330_v4  ;;  %v5587_v37 = vunpack.i.l.bf16 %v7330_v4  ;;  %v1417_v4 = vsel %vm7387_vm14, %v1387_v40, %v1031_v9  ;;  %v1427_v9 = vsel %vm9133_vm12, %v1416_v5, %v1068_v22 }
 0x166   : > { %v7334_v0 = vpop.permute.xlu0 %5590  ;;  %v1431_v12 = vsel %vm9133_vm12, %v1417_v4, %v1069_v26 }
 0x167   : > { %v5593_v42 = vunpack.i.h.bf16 %v7334_v0  ;;  %v5592_v55 = vunpack.i.l.bf16 %v7334_v0  ;;  %v1105_v36 = vsel %vm9134_vm2, %v5587_v37, %v5588_v60 }
 0x168   : > { %v1086_v48 = vpop.permute.xlu1 %1085 }
 0x169   : > { %v1106_v20 = vsel %vm9134_vm2, %v5588_v60, %v5592_v55  ;;  %v1107_v51 = vsel %vm9134_vm2, %v5592_v55, %v5593_v42  ;;  %v1104_v39 = vsel %vm9134_vm2, %v1086_v48, %v5587_v37  ;;  %v1461_v48 = vsel %vm7429_vm1, %v1431_v12, %v1105_v36 }
 0x16a   : > { %v1125_v25 = vpop.permute.xlu0 %1124 }
 0x16c   : > { %v1127_v16 = vpop.permute.xlu1 %1126 }
 0x16d   : > { %v1142_v10 = vsel %vm9131_vm4, %v1125_v25, %v1127_v16 }
 0x16e   : > { %v1129_v8 = vpop.permute.xlu0 %1128  ;;  %v1475_v41 = vsel %vm9132_vm10, %v1461_v48, %v1142_v10  ;;  %v7482_v10 = vld [vmem:[%s9265_s1] sm:$0x7] }
 0x16f   : > { %v1143_v26 = vsel %vm9131_vm4, %v1127_v16, %v1129_v8  ;;  %v1463_v16 = vsel %vm7429_vm1, %v1439_v7, %v1107_v51 }
 0x170   : > { %v7403_v53 = vpop.permute.xlu1 %1130 }
 0x171   : > { %v1144_v60 = vsel %vm9131_vm4, %v1129_v8, %v7403_v53  ;;  %v1462_v8 = vsel %vm7429_vm1, %v1435_v28, %v1106_v20 }
 0x172   : > { %v1123_v31 = vpop.permute.xlu0 %1122  ;;  %v1483_v12 = vsel %vm9132_vm10, %v1463_v16, %v1144_v60  ;;  %v1479_v35 = vsel %vm9132_vm10, %v1462_v8, %v1143_v26 }
 0x173   : > { %v1141_v30 = vsel %vm9131_vm4, %v1123_v31, %v1125_v25  ;;  %v1460_v25 = vsel %vm7429_vm1, %v1427_v9, %v1104_v39  ;;  %vm9263_vm4 = vmmov %vm9261_vm0 }
 0x174   : > { %v5596_v58 = vpop.permute.xlu1 %5595  ;;  %v1471_v31 = vsel %vm9132_vm10, %v1460_v25, %v1141_v30  ;;  %v9270_v30 = vld [vmem:[#allocation32_spill] sm:$0xff] }
 0x175   : > { %v5598_v55 = vunpack.i.h.bf16 %v5596_v58  ;;  %v5597_v40 = vunpack.i.l.bf16 %v5596_v58  ;;  %v9266_v58 = vld [vmem:[#allocation30_spill] sm:$0xff] }
 0x176   : > { %v7447_v32 = vpop.permute.xlu0 %5600 }
 0x177   : > { %v5603_v37 = vunpack.i.h.bf16 %v7447_v32  ;;  %v5602_v27 = vunpack.i.l.bf16 %v7447_v32  ;;  %v1178_v4 = vsel %vm9260_vm6, %v5597_v40, %v5598_v55  ;;  %vm9262_vm6 = vmmov %vm9261_vm0 }
 0x178   : > { %v1159_v22 = vpop.permute.xlu1 %1158  ;;  %v1505_v5 = vsel %vm7442_vm5, %v1475_v41, %v1178_v4 }
 0x179   : > { %v1177_v11 = vsel %vm9261_vm0, %v1159_v22, %v5597_v40  ;;  %1757 = vmatprep.subr.bf16.mxu0 %v1505_v5  ;;  %v1180_v28 = vsel %vm9262_vm6, %v5602_v27, %v5603_v37  ;;  %v1179_v36 = vsel %vm9263_vm4, %v5598_v55, %v5602_v27  ;;  %vm9264_vm0 = vcmask 1014784   ;;  %v9274_v22 = vld [vmem:[#allocation34_spill] sm:$0xff] }
 0x17a   : > { %v748_v20 = vpop.permute.xlu0 %747  ;;  %v1504_v51 = vsel %vm7442_vm5, %v1471_v31, %v1177_v11  ;;  %v1507_v7 = vsel %vm7442_vm5, %v1483_v12, %v1180_v28  ;;  %v1506_v9 = vsel %vm7442_vm5, %v1479_v35, %v1179_v36  ;;  %vm1713_vm4 = vcmask 203776   ;;  %vm9268_vm10 = vmmov %vm9264_vm0  ;;  %v9278_v28 = vld [vmem:[#allocation35_spill] sm:$0xff] }
 0x17b   : > { %v760_v39 = vsel %vm9264_vm0, %v6992_v21, %v748_v20  ;;  %1758 = vmatpush1.bf16.msra.mxu0 %v1504_v51  ;;  %1798 = vmatprep.subr.bf16.mxu1 %v1507_v7  ;;  %vm9267_vm6 = vcmask 1041408   ;;  %v5573_v12 = vunpack.i.h.bf16 %v7285_v17  ;;  %vm9275_vm0 = vcmask 252928  }
 0x17c   : > { %v1267_v26 = vsel %vm9267_vm6, %v9266_v58, %v760_v39  ;;  %v7486_v60 = vpop.permute.xlu1 %749  ;;  %1799 = vmatpush1.bf16.msra.mxu1 %v1506_v9  ;;  %vm9269_vm12 = vmmov %vm9267_vm6 }
 0x17d   : > { %v761_v55 = vsel %vm9268_vm10, %v748_v20, %v7486_v60  ;;  %v1288_v48 = vsel %vm6714_vm7, %v1267_v26, %v9270_v30  ;;  %vm9272_vm10 = vcmask 1042432   ;;  %vm9276_vm6 = vmmov %vm9275_vm0 }
 0x17e   : > { %v1271_v21 = vsel %vm9269_vm12, %v7042_v45, %v761_v55  ;;  %v7492_v40 = vpop.permute.xlu0 %949  ;;  %4931 = vmatmul.mubr.msk.bf16.vlgmr.msra.gmra.mxu0 %vm1713_vm4, %v7482_v10  ;;  %v9271_v45 = vld [vmem:[#allocation33_spill] sm:$0xff]  ;;  %vm9273_vm12 = vmmov %vm9272_vm10 }
 0x17f   : > { %v1289_v16 = vsel %vm6714_vm7, %v1271_v21, %v7105_v47  ;;  %4932 = vmatmul.mubr.msk.bf16.vlgmr.msra.gmra.mxu1 %vm1713_vm4, %v7482_v10  ;;  %1857 = vmatprep.mubr.bf16.mxu0 %v6123_v61  ;;  %v1311_v27 = vsel %vm9272_vm10, %v1288_v48, %v9271_v45  ;;  %vm9277_vm10 = vcmask 1043456  }
 0x180   : > { %v986_v8 = vpop.permute.xlu1 %985  ;;  %1898 = vmatprep.mubr.bf16.mxu1 %v6123_v61  ;;  %v1315_v4 = vsel %vm9273_vm12, %v1289_v16, %v7094_v3  ;;  %v1332_v5 = vsel %vm6745_vm11, %v1311_v27, %v9274_v22  ;;  %vm9279_vm12 = vmmov %vm9277_vm10 }
 0x181   : > { %v1333_v47 = vsel %vm6745_vm11, %v1315_v4, %v7141_v18  ;;  %v1355_v18 = vsel %vm9279_vm12, %v1332_v5, %v9278_v28  ;;  %v998_v58 = vsel %vm993_vm8, %v7300_v52, %v986_v8 }
 0x182   : > { %v7510_v41 = vpop.permute.xlu0 %987  ;;  %v1359_v31 = vsel %vm9277_vm10, %v1333_v47, %v7130_v23  ;;  %vm9282_vm10 = vcmask 1045504  }
 0x183   : > { %v999_v55 = vsel %vm993_vm8, %v986_v8, %v7510_v41  ;;  %vm9283_vm12 = vmmov %vm9282_vm10 }
 0x184   : > { %v1690_v25 = vpop.permute.xlu1 %1689 }
 0x185   : > { %v1702_v35 = vsel %vm9275_vm0, %v7308_v34, %v1690_v25  ;;  %vm9280_vm0 = vcmask 752640  }
 0x186   : > { %v7521_v11 = vpop.permute.xlu0 %1691  ;;  %v1732_v17 = vand.u32 %v7304_v24, %v1702_v35  ;;  %v960_v7 = vsel %vm9280_vm0, %v5568_v33, %v5573_v12 }
 0x187   : > { %v1703_v3 = vsel %vm9276_vm6, %v1690_v25, %v7521_v11  ;;  %vm9281_vm6 = vmmov %vm9280_vm0  ;;  %v1376_v26 = vsel %vm7342_vm9, %v1355_v18, %v960_v7  ;;  %vm9284_vm0 = vcmask 490496  }
 0x188   : > { %v1735_v36 = vand.u32 %v7304_v24, %v1703_v3  ;;  %v7530_v20 = vpop.permute.xlu1 %5605  ;;  %v961_v23 = vsel %vm9281_vm6, %v5573_v12, %v7492_v40  ;;  %v1399_v30 = vsel %vm1369_vm15, %v1376_v26, %v998_v58  ;;  %vm9285_vm6 = vmmov %vm9284_vm0 }
 0x189   : > { %v5608_v51 = vunpack.i.h.bf16 %v7530_v20  ;;  %v5607_v34 = vunpack.i.l.bf16 %v7530_v20  ;;  %v1377_v39 = vsel %vm7342_vm9, %v1359_v31, %v961_v23 }
 0x18a   : > { %v1060_v9 = vpop.permute.xlu0 %1059  ;;  %1837 = vmatprep.subr.bf16.mxu0 %v1735_v36  ;;  %v1403_v52 = vsel %vm1369_vm15, %v1377_v39, %v999_v55 }
 0x18b   : > { %1838 = vmatpush1.bf16.msra.mxu0 %v1732_v17  ;;  %v1034_v54 = vsel %vm1029_vm13, %v5583_v38, %v5607_v34  ;;  %v1035_v21 = vsel %vm1029_vm13, %v5607_v34, %v5608_v51  ;;  %v1072_v16 = vsel %vm9135_vm3, %v7323_v49, %v1060_v9 }
 0x18c   : > { %v7551_v33 = vpop.permute.xlu1 %1061  ;;  %v1420_v63 = vsel %vm7387_vm14, %v1399_v30, %v1034_v54  ;;  %v1421_v27 = vsel %vm7387_vm14, %v1403_v52, %v1035_v21 }
 0x18d   : > { %v1073_v45 = vsel %vm9135_vm3, %v1060_v9, %v7551_v33  ;;  %v1443_v47 = vsel %vm9282_vm10, %v1420_v63, %v1072_v16  ;;  %vm9286_vm10 = vcmask 1046528   ;;  %vm9291_vm3 = vcmask 1041408  }
 0x18e   : > { %v7558_v48 = vpop.permute.xlu0 %5610  ;;  %v1447_v5 = vsel %vm9283_vm12, %v1421_v27, %v1073_v45  ;;  %vm9287_vm12 = vcmask 1014784  }
 0x18f   : > { %v5613_v38 = vunpack.i.h.bf16 %v7558_v48  ;;  %v5612_v8 = vunpack.i.l.bf16 %v7558_v48 }
 0x190   : > { %v1133_v4 = vpop.permute.xlu1 %1132 }
 0x191   : > { %v1108_v25 = vsel %vm9134_vm2, %v5593_v42, %v5612_v8  ;;  %v1109_v49 = vsel %vm9134_vm2, %v5612_v8, %v5613_v38  ;;  %v1145_v12 = vsel %vm9284_vm0, %v7403_v53, %v1133_v4  ;;  %vm9288_vm0 = vcmask 261120  }
 0x192   : > { %v7577_v22 = vpop.permute.xlu0 %1134  ;;  %v1464_v35 = vsel %vm7429_vm1, %v1443_v47, %v1108_v25  ;;  %v1465_v3 = vsel %vm7429_vm1, %v1447_v5, %v1109_v49  ;;  %vm9290_vm2 = vmmov %vm9288_vm0 }
 0x193   : > { %v1146_v0 = vsel %vm9285_vm6, %v1133_v4, %v7577_v22  ;;  %v1487_v18 = vsel %vm9286_vm10, %v1464_v35, %v1145_v12  ;;  %vm9289_vm6 = vmmov %vm9286_vm10 }
 0x194   : > { %v7586_v42 = vpop.permute.xlu1 %5615  ;;  %v1491_v34 = vsel %vm9289_vm6, %v1465_v3, %v1146_v0  ;;  %vm9292_vm10 = vmmov %vm9287_vm12  ;;  %vm9298_vm6 = vcmask 752640  }
 0x195   : > { %v5618_v31 = vunpack.i.h.bf16 %v7586_v42  ;;  %v5617_v28 = vunpack.i.l.bf16 %v7586_v42 }
 0x196   : > { %v752_v36 = vpop.permute.xlu0 %751 }
 0x197   : > { %v762_v53 = vsel %vm9287_vm12, %v7486_v60, %v752_v36  ;;  %v1182_v17 = vsel %vm9288_vm0, %v5617_v28, %v5618_v31  ;;  %v1181_v7 = vsel %vm9290_vm2, %v5603_v37, %v5617_v28  ;;  %vm9293_vm12 = vmmov %vm9291_vm3 }
 0x198   : > { %v1275_v23 = vsel %vm9291_vm3, %v7046_v59, %v762_v53  ;;  %v754_v9 = vpop.permute.xlu1 %753  ;;  %v1509_v39 = vsel %vm7442_vm5, %v1491_v34, %v1182_v17  ;;  %v1508_v60 = vsel %vm7442_vm5, %v1487_v18, %v1181_v7  ;;  %vm9294_vm3 = vcmask 1042432  }
 0x199   : > { %v763_v58 = vsel %vm9292_vm10, %v752_v36, %v754_v9  ;;  %1839 = vmatprep.subr.bf16.mxu0 %v1509_v39  ;;  %v1290_v32 = vsel %vm6714_vm7, %v1275_v23, %v7081_v6  ;;  %vm9295_vm2 = vmmov %vm9294_vm3 }
 0x19a   : > { %v1279_v26 = vsel %vm9293_vm12, %v7220_v57, %v763_v58  ;;  %v5621_v55 = vpop.permute.xlu0 %5620  ;;  %1840 = vmatpush1.bf16.msra.mxu0 %v1508_v60  ;;  %v1319_v54 = vsel %vm9294_vm3, %v1290_v32, %v7114_v46  ;;  %vm9299_vm10 = vmmov %vm9298_vm6  ;;  %vm9300_vm12 = vcmask 1043456  }
 0x19b   : > { %v1291_v59 = vsel %vm6714_vm7, %v1279_v26, %v7213_v62  ;;  %v5623_v30 = vunpack.i.h.bf16 %v5621_v55  ;;  %v5622_v52 = vunpack.i.l.bf16 %v5621_v55  ;;  %v1334_v6 = vsel %vm6745_vm11, %v1319_v54, %v7125_v44  ;;  %vm9301_vm3 = vmmov %vm9300_vm12 }
 0x19c   : > { %v990_v37 = vpop.permute.xlu1 %989  ;;  %v1323_v57 = vsel %vm9295_vm2, %v1291_v59, %v7228_v1  ;;  %vm9296_vm7 = vcmask 252928   ;;  %v1363_v45 = vsel %vm9300_vm12, %v1334_v6, %v7146_v43  ;;  %vm9311_vm12 = vcmask 261120  }
 0x19d   : > { %4933 = vmatmul.mubr.msk.bf16.vlgmr.msra.gmra.mxu0 %vm1713_vm4, %v7482_v10  ;;  %v1335_v50 = vsel %vm6745_vm11, %v1323_v57, %v7241_v19  ;;  %vm9297_vm0 = vmmov %vm9296_vm7  ;;  %v962_v1 = vsel %vm9298_vm6, %v7492_v40, %v5622_v52  ;;  %v963_v8 = vsel %vm9299_vm10, %v5622_v52, %v5623_v30  ;;  %v1000_v49 = vsel %vm993_vm8, %v7510_v41, %v990_v37 }
 0x19e   : > { %v992_v21 = vpop.permute.xlu0 %991  ;;  %v1367_v56 = vsel %vm9301_vm3, %v1335_v50, %v7252_v15  ;;  %v1378_v40 = vsel %vm7342_vm9, %v1363_v45, %v962_v1  ;;  %vm9302_vm11 = vcmask 506880   ;;  %vm9308_vm6 = vcmask 490496  }
 0x19f   : > { %v1001_v43 = vsel %vm993_vm8, %v990_v37, %v992_v21  ;;  %v1379_v47 = vsel %vm7342_vm9, %v1367_v56, %v963_v8  ;;  %v1407_v35 = vsel %vm1369_vm15, %v1378_v40, %v1000_v49  ;;  %vm9303_vm9 = vmmov %vm9302_vm11 }
 0x1a0   : > { %v1694_v16 = vpop.permute.xlu1 %1693  ;;  %v1411_v0 = vsel %vm1369_vm15, %v1379_v47, %v1001_v43  ;;  %vm9309_vm10 = vmmov %vm9308_vm6 }
 0x1a1   : > { %v1704_v62 = vsel %vm9296_vm7, %v7521_v11, %v1694_v16  ;;  %vm9306_vm7 = vcmask 1045504  }
 0x1a2   : > { %v1696_v63 = vpop.permute.xlu0 %1695  ;;  %v1738_v19 = vand.u32 %v7304_v24, %v1704_v62 }
 0x1a3   : > { %v1705_v46 = vsel %vm9297_vm0, %v1694_v16, %v1696_v63  ;;  %vm9307_vm0 = vmmov %vm9306_vm7 }
 0x1a4   : > { %v1741_v44 = vand.u32 %v7304_v24, %v1705_v46  ;;  %v5626_v27 = vpop.permute.xlu1 %5625 }
 0x1a5   : > { %v5628_v11 = vunpack.i.h.bf16 %v5626_v27  ;;  %v5627_v4 = vunpack.i.l.bf16 %v5626_v27 }
 0x1a6   : > { %v1064_v25 = vpop.permute.xlu0 %1063  ;;  %1878 = vmatprep.subr.bf16.mxu1 %v1741_v44 }
 0x1a7   : > { %1879 = vmatpush1.bf16.msra.mxu1 %v1738_v19  ;;  %v1036_v15 = vsel %vm1029_vm13, %v5608_v51, %v5627_v4  ;;  %v1037_v24 = vsel %vm1029_vm13, %v5627_v4, %v5628_v11  ;;  %v1074_v41 = vsel %vm9302_vm11, %v7551_v33, %v1064_v25  ;;  %vm9304_vm13 = vcmask 498688   ;;  %vm9313_vm11 = vmmov %vm9311_vm12 }
 0x1a8   : > { %v1066_v5 = vpop.permute.xlu1 %1065  ;;  %v1422_v2 = vsel %vm7387_vm14, %v1407_v35, %v1036_v15  ;;  %v1423_v20 = vsel %vm7387_vm14, %v1411_v0, %v1037_v24  ;;  %vm9305_vm2 = vmmov %vm9304_vm13  ;;  %vm9310_vm14 = vcmask 1046528   ;;  %v5701_v15 = vld [vmem:[%s9032_s5 + $0xac] ss:$12 sps:$4 sm:$0xff]  }
 0x1a9   : > { %v1075_v18 = vsel %vm9303_vm9, %v1064_v25, %v1066_v5  ;;  %v1451_v34 = vsel %vm9306_vm7, %v1422_v2, %v1074_v41  ;;  %vm9312_vm3 = vmmov %vm9310_vm14  ;;  %v5699_v5 = vld [vmem:[%s9032_s5 + $0xa8] ss:$12 sps:$4 sm:$0xff]   ;;  %3136 = vmatprep.subr.bf16.mxu0 %v5701_v15 }
 0x1aa   : > { %v5631_v12 = vpop.permute.xlu0 %5630  ;;  %v1455_v33 = vsel %vm9307_vm0, %v1423_v20, %v1075_v18  ;;  %3137 = vmatpush1.bf16.msra.mxu0 %v5699_v5  ;;  %v5707_v2 = vld [vmem:[%s9032_s5 + $0x7c] ss:$12 sps:$4 sm:$0xff]   ;;  %v5722_v20 = vld [vmem:[%s9032_s5 + $0x22c] ss:$12 sps:$4 sm:$0xff]   ;;  %vm9322_vm0 = vcmask 785408  }
 0x1ab   : > { %v5633_v3 = vunpack.i.h.bf16 %v5631_v12  ;;  %v5632_v28 = vunpack.i.l.bf16 %v5631_v12  ;;  %v5704_v12 = vld [vmem:[%s9032_s5 + $0x94] ss:$12 sps:$4 sm:$0xff]   ;;  %v5765_v5 = vld [vmem:[%s9032_s5 + $0xd8] ss:$12 sps:$4 sm:$0xff]   ;;  %v5767_v15 = vld [vmem:[%s9032_s5 + $0xdc] ss:$12 sps:$4 sm:$0xff]  }
 0x1ac   : > { %v1137_v51 = vpop.permute.xlu1 %1136  ;;  %3138 = vmatprep.subr.bf16.mxu0 %v5704_v12  ;;  %v5720_v18 = vld [vmem:[%s9032_s5 + $0x228] ss:$12 sps:$4 sm:$0xff]  }
 0x1ad   : > { %v1110_v36 = vsel %vm9304_vm13, %v5613_v38, %v5632_v28  ;;  %v1111_v53 = vsel %vm9305_vm2, %v5632_v28, %v5633_v3  ;;  %v1147_v7 = vsel %vm9308_vm6, %v7577_v22, %v1137_v51  ;;  %v5702_v28 = vld [vmem:[%s9032_s5 + $0x90] ss:$12 sps:$4 sm:$0xff]   ;;  %vm9323_vm6 = vmmov %vm9322_vm0 }
 0x1ae   : > { %v1139_v17 = vpop.permute.xlu0 %1138  ;;  %v1466_v23 = vsel %vm7429_vm1, %v1451_v34, %v1110_v36  ;;  %v1467_v48 = vsel %vm7429_vm1, %v1455_v33, %v1111_v53  ;;  %3139 = vmatpush1.bf16.msra.mxu0 %v5702_v28  ;;  %v5728_v36 = vld [vmem:[%s9032_s5 + $0x214] ss:$12 sps:$4 sm:$0xff]   ;;  %v5710_v53 = vld [vmem:[%s9032_s5 + $0x64] ss:$12 sps:$4 sm:$0xff]   ;;  %v5734_v34 = vld [vmem:[%s9032_s5 + $0x1fc] ss:$12 sps:$4 sm:$0xff]  }
 0x1af   : > { %v1148_v13 = vsel %vm9309_vm10, %v1137_v51, %v1139_v17  ;;  %v1495_v60 = vsel %vm9310_vm14, %v1466_v23, %v1147_v7  ;;  %v5705_v51 = vld [vmem:[%s9032_s5 + $0x78] ss:$12 sps:$4 sm:$0xff]   ;;  %3140 = vmatprep.subr.bf16.mxu0 %v5707_v2  ;;  %v5726_v17 = vld [vmem:[%s9032_s5 + $0x210] ss:$12 sps:$4 sm:$0xff]   ;;  %v5708_v33 = vld [vmem:[%s9032_s5 + $0x60] ss:$12 sps:$4 sm:$0xff]  }
 0x1b0   : > { %v5636_v9 = vpop.permute.xlu1 %5635  ;;  %v1499_v26 = vsel %vm9312_vm3, %v1467_v48, %v1148_v13  ;;  %v5713_v7 = vld [vmem:[%s9032_s5 + $0x4c] ss:$12 sps:$4 sm:$0xff]   ;;  %v5740_v13 = vld [vmem:[%s9032_s5 + $0x1e4] ss:$12 sps:$4 sm:$0xff]   ;;  %v5716_v48 = vld [vmem:[%s9032_s5 + $0x34] ss:$12 sps:$4 sm:$0xff]  }
 0x1b1   : > { %v5638_v38 = vunpack.i.h.bf16 %v5636_v9  ;;  %v5637_v39 = vunpack.i.l.bf16 %v5636_v9  ;;  %v5732_v23 = vld [vmem:[%s9032_s5 + $0x1f8] ss:$12 sps:$4 sm:$0xff]   ;;  %v5711_v9 = vld [vmem:[%s9032_s5 + $0x48] ss:$12 sps:$4 sm:$0xff]   ;;  %v5771_v2 = vld [vmem:[%s9032_s5 + $0xc0] ss:$12 sps:$4 sm:$0xff]  }
 0x1b2   : > { %3141 = vmatpush1.bf16.msra.mxu0 %v5705_v51  ;;  %v5770_v28 = vld [vmem:[%s9032_s5 + $0x2ec] ss:$12 sps:$4 sm:$0xff]   ;;  %vm9315_vm1 = vcmask 1039360   ;;  %vm9324_vm10 = vmmov %vm9322_vm0 }
 0x1b3   : > { %v1184_v58 = vsel %vm9311_vm12, %v5637_v39, %v5638_v38  ;;  %v1183_v22 = vsel %vm9313_vm11, %v5618_v31, %v5637_v39  ;;  %3142 = vmatprep.subr.bf16.mxu0 %v5710_v53  ;;  %v5738_v38 = vld [vmem:[%s9032_s5 + $0x1e0] ss:$12 sps:$4 sm:$0xff]   ;;  %vm9318_vm9 = vmmov %vm9315_vm1 }
 0x1b4   : > { %v1511_v55 = vsel %vm7442_vm5, %v1499_v26, %v1184_v58  ;;  %v1510_v32 = vsel %vm7442_vm5, %v1495_v60, %v1183_v22  ;;  %v5746_v39 = vld [vmem:[%s9032_s5 + $0x1cc] ss:$12 sps:$4 sm:$0xff]   ;;  %v5714_v60 = vld [vmem:[%s9032_s5 + $0x30] ss:$12 sps:$4 sm:$0xff]   ;;  %v5744_v26 = vld [vmem:[%s9032_s5 + $0x1c8] ss:$12 sps:$4 sm:$0xff]  }
 0x1b5   : > { %1880 = vmatprep.subr.bf16.mxu1 %v1511_v55  ;;  %v5719_v58 = vld [vmem:[%s9032_s5 + $0x1c] ss:$12 sps:$4 sm:$0xff]   ;;  %v5752_v22 = vld [vmem:[%s9032_s5 + $0x1b4] ss:$12 sps:$4 sm:$0xff]   ;;  %v5717_v55 = vld [vmem:[%s9032_s5 + $0x18] ss:$12 sps:$4 sm:$0xff]  }
 0x1b6   : > { %1881 = vmatpush1.bf16.msra.mxu1 %v1510_v32  ;;  %3143 = vmatpush1.bf16.msra.mxu0 %v5708_v33  ;;  %v5725_v32 = vld [vmem:[%s9032_s5 + $0x4] ss:$12 sps:$4 sm:$0xff]   ;;  %v5779_v33 = vld [vmem:[%s9032_s5 + $0x3ac] ss:$12 sps:$4 sm:$0xff]   ;;  %vm9316_vm5 = vmmov %vm9315_vm1 }
 0x1b7   : > { %3177 = vmatprep.subr.bf16.mxu1 %v5722_v20  ;;  %3144 = vmatprep.subr.bf16.mxu0 %v5713_v7  ;;  %v5776_v20 = vld [vmem:[%s9032_s5 + $0x2d4] ss:$12 sps:$4 sm:$0xff]   ;;  %vm9319_vm13 = vmmov %vm9315_vm1 }
 0x1b8   : > { %vm9320_vm2 = vmmov %vm9315_vm1 }
 0x1b9   : > { %4934 = vmatmul.mubr.msk.bf16.vlgmr.msra.gmra.mxu1 %vm1713_vm4, %v7482_v10  ;;  %vm9317_vm4 = vmmov %vm9315_vm1 }
 0x1ba   : > { %3178 = vmatpush1.bf16.msra.mxu1 %v5720_v18  ;;  %3145 = vmatpush1.bf16.msra.mxu0 %v5711_v9  ;;  %v5773_v18 = vld [vmem:[%s9032_s5 + $0xc4] ss:$12 sps:$4 sm:$0xff]   ;;  %vm9321_vm7 = vmmov %vm9315_vm1 }
 0x1bb   : > { %v1711_v29 = vpop.permute.xlu0 %1710  ;;  %3179 = vmatprep.subr.bf16.mxu1 %v5728_v36  ;;  %3146 = vmatprep.subr.bf16.mxu0 %v5716_v48  ;;  %v5774_v36 = vld [vmem:[%s9032_s5 + $0x2d0] ss:$12 sps:$4 sm:$0xff]   ;;  %vm9325_vm14 = vmmov %vm9322_vm0 }
 0x1bc   : > { %vm9326_vm12 = vmmov %vm9322_vm0 }
 0x1bd   : > { %vm9327_vm3 = vmmov %vm9322_vm0 }
 0x1be   : > { %3180 = vmatpush1.bf16.msra.mxu1 %v5726_v17  ;;  %3147 = vmatpush1.bf16.msra.mxu0 %v5714_v60  ;;  %v5800_v60 = vld [vmem:[%s9032_s5 + $0x274] ss:$12 sps:$4 sm:$0xff]   ;;  %vm9328_vm11 = vmmov %vm9322_vm0 }
 0x1bf   : > { %3181 = vmatprep.subr.bf16.mxu1 %v5734_v34  ;;  %3148 = vmatprep.subr.bf16.mxu0 %v5719_v58  ;;  %v5804_v58 = vld [vmem:[%s9032_s5 + $0x258] ss:$12 sps:$4 sm:$0xff]  }
 0x1c2   : > { %3182 = vmatpush1.bf16.msra.mxu1 %v5732_v23  ;;  %3149 = vmatpush1.bf16.msra.mxu0 %v5717_v55  ;;  %v5812_v55 = vld [vmem:[%s9032_s5 + $0x244] ss:$12 sps:$4 sm:$0xff]  }
 0x1c3   : > { %3183 = vmatprep.subr.bf16.mxu1 %v5740_v13  ;;  %3150 = vmatprep.subr.bf16.mxu0 %v5725_v32 }
 0x1c6   : > { %3184 = vmatpush1.bf16.msra.mxu1 %v5738_v38  ;;  %v5780_v38 = vld [vmem:[%s9032_s5 + $0x2b8] ss:$12 sps:$4 sm:$0xff]  }
 0x1c7   : > { %3185 = vmatprep.subr.bf16.mxu1 %v5746_v39  ;;  %v5782_v39 = vld [vmem:[%s9032_s5 + $0x2bc] ss:$12 sps:$4 sm:$0xff]  }
 0x1ca   : > { %3186 = vmatpush1.bf16.msra.mxu1 %v5744_v26  ;;  %v5806_v26 = vld [vmem:[%s9032_s5 + $0x25c] ss:$12 sps:$4 sm:$0xff]  }
 0x1cb   : > { %3187 = vmatprep.subr.bf16.mxu1 %v5752_v22  ;;  %v5810_v22 = vld [vmem:[%s9032_s5 + $0x240] ss:$12 sps:$4 sm:$0xff]  }
 0x23e   : > { %v1777_v59 = vpop.f32.mrf.mxu0 }
 0x23f   : > { %v1818_v37 = vpop.f32.mrf.mxu1  ;;  %v7693_v52 = vadd.f32 %v1777_v59, %v1711_v29  ;;  %v5758_v59 = vld [vmem:[%s9032_s5 + $0x19c] ss:$12 sps:$4 sm:$0xff]  }
 0x240   : > { %v1779_v54 = vpop.f32.mrf.mxu0  ;;  %v7686_v21 = vadd.f32 %v1818_v37, %v1711_v29  ;;  %v5723_v37 = vld [vmem:[%s9032_s5] ss:$12 sps:$4 sm:$0xff]  }
 0x241   : > { %v1820_v42 = vpop.f32.mrf.mxu1  ;;  %v7688_v57 = vadd.f32 %v1779_v54, %v1711_v29  ;;  %v1907_v46 = vmax.f32 %v7693_v52, 0.0  ;;  %v5731_v54 = vld [vmem:[%s9032_s5 + $0x16c] ss:$12 sps:$4 sm:$0xff]   ;;  %3151 = vmatpush1.bf16.msra.mxu0 %v5723_v37  ;;  %v5792_v52 = vld [vmem:[%s9032_s5 + $0x288] ss:$12 sps:$4 sm:$0xff]  }
 0x242   : > { %v7690_v31 = vadd.f32 %v1820_v42, %v1711_v29  ;;  %v1781_v30 = vpop.f32.mrf.mxu0  ;;  %v1909_v14 = vmax.f32 %v7686_v21, 0.0  ;;  %v5756_v42 = vld [vmem:[%s9032_s5 + $0x198] ss:$12 sps:$4 sm:$0xff]   ;;  %3152 = vmatprep.subr.bf16.mxu0 %v5731_v54  ;;  %v5786_v21 = vld [vmem:[%s9032_s5 + $0x2a0] ss:$12 sps:$4 sm:$0xff]  }
 0x243   : > { %v1822_v16 = vpop.f32.mrf.mxu1  ;;  %v1908_v6 = vmax.f32 %v7688_v57, 0.0  ;;  %v5729_v30 = vld [vmem:[%s9032_s5 + $0x168] ss:$12 sps:$4 sm:$0xff]   ;;  %v5818_v37 = vld [vmem:[%s9032_s5 + $0x52c] ss:$12 sps:$4 sm:$0xff]  }
 0x244   : > { %v1782_v10 = vpop.f32.mrf.mxu0  ;;  %v1910_v50 = vmax.f32 %v7690_v31, 0.0  ;;  %v5737_v16 = vld [vmem:[%s9032_s5 + $0x154] ss:$12 sps:$4 sm:$0xff]  }
 0x245   : > { %v1823_v62 = vpop.f32.mrf.mxu1  ;;  %v5640_v63 = vpack.i.bf16 %v1909_v14, %v1908_v6  ;;  %3153 = vmatpush2.bf16.msra.mxu0 %v5729_v30  ;;  %v5735_v10 = vld [vmem:[%s9032_s5 + $0x150] ss:$12 sps:$4 sm:$0xff]  }
 0x246   : > { %v5645_v1 = vpack.i.bf16 %v1907_v46, %v1910_v50  ;;  %3154 = vmatprep.subr.bf16.mxu0 %v5737_v16  ;;  %v5743_v62 = vld [vmem:[%s9032_s5 + $0x13c] ss:$12 sps:$4 sm:$0xff]  }
 0x247   : > { %5641 = vrot.lane.b32.xlu1 %v5640_v63, %s9314_s22  ;;  %v5741_v63 = vld [vmem:[%s9032_s5 + $0x138] ss:$12 sps:$4 sm:$0xff]  }
 0x249   : > { %3155 = vmatpush2.bf16.msra.mxu0 %v5735_v10 }
 0x24a   : > { %3156 = vmatprep.subr.bf16.mxu0 %v5743_v62 }
 0x24b   : > { %5646 = vrot.lane.b32.xlu1 %v5645_v1, %s9314_s22  ;;  %v5749_v1 = vld [vmem:[%s9032_s5 + $0x124] ss:$12 sps:$4 sm:$0xff]  }
 0x24d   : > { %3157 = vmatpush2.bf16.msra.mxu0 %v5741_v63 }
 0x24e   : > { %3158 = vmatprep.subr.bf16.mxu0 %v5749_v1 }
 0x25d   : > { %v1859_v8 = vpop.f32.mrf.mxu0 }
 0x25e   : > { %v7708_v45 = vadd.f32 %v1859_v8, %v1711_v29  ;;  %v5747_v8 = vld [vmem:[%s9032_s5 + $0x120] ss:$12 sps:$4 sm:$0xff]  }
 0x25f   : > { %v1861_v44 = vpop.f32.mrf.mxu0  ;;  %3159 = vmatpush2.bf16.msra.mxu0 %v5747_v8 }
 0x260   : > { %v7710_v27 = vadd.f32 %v1861_v44, %v1711_v29  ;;  %v1911_v19 = vmax.f32 %v7708_v45, 0.0  ;;  %v5755_v44 = vld [vmem:[%s9032_s5 + $0x10c] ss:$12 sps:$4 sm:$0xff]  }
 0x261   : > { %v1863_v56 = vpop.f32.mrf.mxu0  ;;  %3160 = vmatprep.subr.bf16.mxu0 %v5755_v44 }
 0x262   : > { %v1912_v11 = vmax.f32 %v7710_v27, 0.0  ;;  %v5753_v56 = vld [vmem:[%s9032_s5 + $0x108] ss:$12 sps:$4 sm:$0xff]  }
 0x263   : > { %v1864_v4 = vpop.f32.mrf.mxu0  ;;  %3161 = vmatpush2.bf16.msra.mxu0 %v5753_v56 }
 0x264   : > { %v5650_v25 = vpack.i.bf16 %v1912_v11, %v1911_v19  ;;  %v5761_v4 = vld [vmem:[%s9032_s5 + $0xf4] ss:$12 sps:$4 sm:$0xff]  }
 0x265   : > { %3162 = vmatprep.subr.bf16.mxu0 %v5761_v4 }
 0x266   : > { %5651 = vrot.lane.b32.xlu0 %v5650_v25, %s9314_s22  ;;  %v5759_v25 = vld [vmem:[%s9032_s5 + $0xf0] ss:$12 sps:$4 sm:$0xff]  }
 0x267   : > { %3163 = vmatpush2.bf16.msra.mxu0 %v5759_v25 }
 0x268   : > { %3164 = vmatprep.subr.bf16.mxu0 %v5767_v15  ;;  %v5783_v15 = vld [vmem:[%s9032_s5 + $0x390] ss:$12 sps:$4 sm:$0xff]  }
 0x26b   : > { %3165 = vmatpush2.bf16.msra.mxu0 %v5765_v5  ;;  %v5785_v5 = vld [vmem:[%s9032_s5 + $0x394] ss:$12 sps:$4 sm:$0xff]  }
 0x26c   : > { %3166 = vmatprep.subr.bf16.mxu0 %v5773_v18  ;;  %v5809_v18 = vld [vmem:[%s9032_s5 + $0x334] ss:$12 sps:$4 sm:$0xff]  }
 0x26f   : > { %3167 = vmatpush2.bf16.msra.mxu0 %v5771_v2  ;;  %v5801_v2 = vld [vmem:[%s9032_s5 + $0x348] ss:$12 sps:$4 sm:$0xff]  }
 0x270   : > { %3218 = vmatprep.subr.bf16.mxu0 %v5779_v33  ;;  %v5813_v33 = vld [vmem:[%s9032_s5 + $0x318] ss:$12 sps:$4 sm:$0xff]  }
 0x279   : > { %v1900_v40 = vpop.f32.mrf.mxu1 }
 0x27a   : > { %v7719_v49 = vadd.f32 %v1900_v40, %v1711_v29  ;;  %v5762_v40 = vld [vmem:[%s9032_s5 + $0x180] ss:$12 sps:$4 sm:$0xff]  }
 0x27b   : > { %v1902_v43 = vpop.f32.mrf.mxu1 }
 0x27c   : > { %v7721_v47 = vadd.f32 %v1902_v43, %v1711_v29  ;;  %v1913_v35 = vmax.f32 %v7719_v49, 0.0  ;;  %v5750_v29 = vld [vmem:[%s9032_s5 + $0x1b0] ss:$12 sps:$4 sm:$0xff]  }
 0x27d   : > { %v1904_v24 = vpop.f32.mrf.mxu1  ;;  %3188 = vmatpush1.bf16.msra.mxu1 %v5750_v29  ;;  %v5764_v43 = vld [vmem:[%s9032_s5 + $0x184] ss:$12 sps:$4 sm:$0xff]  }
 0x27e   : > { %v1914_v0 = vmax.f32 %v7721_v47, 0.0  ;;  %3189 = vmatprep.subr.bf16.mxu1 %v5758_v59 }
 0x27f   : > { %v1905_v3 = vpop.f32.mrf.mxu1 }
 0x280   : > { %v5655_v41 = vpack.i.bf16 %v1914_v0, %v1913_v35 }
 0x281   : > { %3190 = vmatpush1.bf16.msra.mxu1 %v5756_v42 }
 0x282   : > { %5656 = vrot.lane.b32.xlu1 %v5655_v41, %s9314_s22  ;;  %3191 = vmatprep.subr.bf16.mxu1 %v5764_v43  ;;  %v5768_v41 = vld [vmem:[%s9032_s5 + $0x2e8] ss:$12 sps:$4 sm:$0xff]  }
 0x285   : > { %3192 = vmatpush1.bf16.msra.mxu1 %v5762_v40 }
 0x286   : > { %3193 = vmatprep.subr.bf16.mxu1 %v5770_v28  ;;  %v5795_v28 = vld [vmem:[%s9032_s5 + $0x360] ss:$12 sps:$4 sm:$0xff]  }
 0x289   : > { %3194 = vmatpush2.bf16.msra.mxu1 %v5768_v41  ;;  %v5803_v41 = vld [vmem:[%s9032_s5 + $0x34c] ss:$12 sps:$4 sm:$0xff]  }
 0x28a   : > { %3195 = vmatprep.subr.bf16.mxu1 %v5776_v20  ;;  %v5807_v20 = vld [vmem:[%s9032_s5 + $0x330] ss:$12 sps:$4 sm:$0xff]  }
 0x28d   : > { %3196 = vmatpush2.bf16.msra.mxu1 %v5774_v36  ;;  %v5815_v36 = vld [vmem:[%s9032_s5 + $0x31c] ss:$12 sps:$4 sm:$0xff]  }
 0x28e   : > { %3197 = vmatprep.subr.bf16.mxu1 %v5782_v39  ;;  %v5816_v39 = vld [vmem:[%s9032_s5 + $0x528] ss:$12 sps:$4 sm:$0xff]  }
 0x291   : > { %3198 = vmatpush2.bf16.msra.mxu1 %v5780_v38 }
 0x2b9   : > { %v5642_v24 = vpop.permute.xlu1 %5641 }
 0x2ba   : > { %v5644_v12 = vunpack.i.h.bf16 %v5642_v24  ;;  %v5643_v3 = vunpack.i.l.bf16 %v5642_v24  ;;  %v5791_v24 = vld [vmem:[%s9032_s5 + $0x37c] ss:$12 sps:$4 sm:$0xff]  }
 0x2bc   : > { %v1941_v53 = vsel %vm9315_vm1, %v5643_v3, %v5644_v12  ;;  %vm6127_vm1 = vmmov 0  }
 0x2bd   : > { %v5647_v51 = vpop.permute.xlu1 %5646  ;;  %v1955_v13 = vmax.f32 %v1908_v6, %v1941_v53  ;;  %v5794_v6 = vld [vmem:[%s9032_s5 + $0x28c] ss:$12 sps:$4 sm:$0xff]  }
 0x2be   : > { %v5649_v17 = vunpack.i.h.bf16 %v5647_v51  ;;  %v5648_v34 = vunpack.i.l.bf16 %v5647_v51 }
 0x2c0   : > { %v1940_v7 = vsel %vm9316_vm5, %v5649_v17, %v5643_v3  ;;  %v1942_v23 = vsel %vm9317_vm4, %v5644_v12, %v5648_v34  ;;  %v5789_v12 = vld [vmem:[%s9032_s5 + $0x378] ss:$12 sps:$4 sm:$0xff]   ;;  %vm3691_vm5 = vcmask 924672   ;;  %vm9332_vm4 = vcmask 1022976  }
 0x2c1   : > { %v1954_v9 = vmax.f32 %v1907_v46, %v1940_v7  ;;  %v7898_v48 = vmax.f32 %v1909_v14, %v1942_v23  ;;  %v5788_v14 = vld [vmem:[%s9032_s5 + $0x2a4] ss:$12 sps:$4 sm:$0xff]  }
 0x2c2   : > { %3199 = vmatprep.subr.bf16.mxu1 %v5788_v14  ;;  %v5798_v46 = vld [vmem:[%s9032_s5 + $0x270] ss:$12 sps:$4 sm:$0xff]   ;;  %v5827_v14 = vld [vmem:[%s9032_s5 + $0x46c] ss:$12 sps:$4 sm:$0xff]  }
 0x2c3   : > { %1971 = vrot.lane.b32.xlu1 %v1954_v9, %s9166_s20  ;;  %v5660_v57 = vpack.i.bf16 %v7898_v48, %v1955_v13  ;;  %3200 = vmatpush2.bf16.msra.mxu1 %v5786_v21  ;;  %v5797_v3 = vld [vmem:[%s9032_s5 + $0x364] ss:$12 sps:$4 sm:$0xff]   ;;  %v5819_v21 = vld [vmem:[%s9032_s5 + $0x300] ss:$12 sps:$4 sm:$0xff]  }
 0x2c4   : > { %3201 = vmatprep.subr.bf16.mxu1 %v5794_v6  ;;  %v5825_v6 = vld [vmem:[%s9032_s5 + $0x468] ss:$12 sps:$4 sm:$0xff]  }
 0x2c5   : > { %5661 = vrot.lane.b32.xlu0 %v5660_v57, %s9166_s20 }
 0x2c7   : > { %3202 = vmatpush2.bf16.msra.mxu1 %v5792_v52  ;;  %v5822_v52 = vld [vmem:[%s9032_s5 + $0x510] ss:$12 sps:$4 sm:$0xff]  }
 0x2c8   : > { %3203 = vmatprep.subr.bf16.mxu1 %v5800_v60  ;;  %v5833_v60 = vld [vmem:[%s9032_s5 + $0x454] ss:$12 sps:$4 sm:$0xff]  }
 0x2cb   : > { %3204 = vmatpush2.bf16.msra.mxu1 %v5798_v46  ;;  %v5830_v46 = vld [vmem:[%s9032_s5 + $0x4fc] ss:$12 sps:$4 sm:$0xff]  }
 0x2cc   : > { %3205 = vmatprep.subr.bf16.mxu1 %v5806_v26  ;;  %v5836_v26 = vld [vmem:[%s9032_s5 + $0x4e4] ss:$12 sps:$4 sm:$0xff]  }
 0x2cf   : > { %3206 = vmatpush2.bf16.msra.mxu1 %v5804_v58  ;;  %v5831_v58 = vld [vmem:[%s9032_s5 + $0x450] ss:$12 sps:$4 sm:$0xff]  }
 0x2d0   : > { %3207 = vmatprep.subr.bf16.mxu1 %v5812_v55  ;;  %v5834_v55 = vld [vmem:[%s9032_s5 + $0x4e0] ss:$12 sps:$4 sm:$0xff]  }
 0x2d3   : > { %3208 = vmatpush2.bf16.msra.mxu1 %v5810_v22  ;;  %v5839_v22 = vld [vmem:[%s9032_s5 + $0x43c] ss:$12 sps:$4 sm:$0xff]  }
 0x2d4   : > { %3259 = vmatprep.subr.bf16.mxu1 %v5818_v37  ;;  %v5840_v37 = vld [vmem:[%s9032_s5 + $0x4c8] ss:$12 sps:$4 sm:$0xff]  }
 0x2d8   : > { %v5652_v32 = vpop.permute.xlu0 %5651 }
 0x2d9   : > { %v5654_v29 = vunpack.i.h.bf16 %v5652_v32  ;;  %v5653_v59 = vunpack.i.l.bf16 %v5652_v32  ;;  %v5837_v32 = vld [vmem:[%s9032_s5 + $0x438] ss:$12 sps:$4 sm:$0xff]  }
 0x2db   : > { %v1943_v54 = vsel %vm9318_vm9, %v5648_v34, %v5653_v59  ;;  %v1944_v42 = vsel %vm9319_vm13, %v5653_v59, %v5654_v29  ;;  %v5845_v59 = vld [vmem:[%s9032_s5 + $0x424] ss:$12 sps:$4 sm:$0xff]   ;;  %vm3519_vm9 = vcmask 916480   ;;  %vm9333_vm13 = vcmask 1031168  }
 0x2dc   : > { %v1957_v30 = vmax.f32 %v1910_v50, %v1943_v54  ;;  %v7948_v16 = vmax.f32 %v1911_v19, %v1944_v42  ;;  %v5843_v54 = vld [vmem:[%s9032_s5 + $0x420] ss:$12 sps:$4 sm:$0xff]  }
 0x2dd   : > { %v5848_v42 = vld [vmem:[%s9032_s5 + $0x4b4] ss:$12 sps:$4 sm:$0xff]  }
 0x2de   : > { %v5665_v10 = vpack.i.bf16 %v7948_v16, %v1957_v30 }
 0x2e0   : > { %5666 = vrot.lane.b32.xlu0 %v5665_v10, %s9166_s20  ;;  %v5846_v10 = vld [vmem:[%s9032_s5 + $0x4b0] ss:$12 sps:$4 sm:$0xff]  }
 0x2f4   : > { %v5657_v62 = vpop.permute.xlu1 %5656 }
 0x2f5   : > { %v5659_v63 = vunpack.i.h.bf16 %v5657_v62  ;;  %v5658_v1 = vunpack.i.l.bf16 %v5657_v62  ;;  %v5849_v62 = vld [vmem:[%s9032_s5 + $0x408] ss:$12 sps:$4 sm:$0xff]  }
 0x2f7   : > { %v1962_v8 = vmax.f32 %v1914_v0, %v5659_v63  ;;  %v1946_v44 = vsel %vm9320_vm2, %v5658_v1, %v5659_v63  ;;  %v1945_v31 = vsel %vm9321_vm7, %v5654_v29, %v5658_v1  ;;  %v5842_v29 = vld [vmem:[%s9032_s5 + $0x4cc] ss:$12 sps:$4 sm:$0xff]   ;;  %v5854_v63 = vld [vmem:[%s9032_s5 + $0x49c] ss:$12 sps:$4 sm:$0xff]   ;;  %vm9334_vm2 = vcmask 1040384  }
 0x2f8   : > { %v7958_v50 = vmax.f32 %v1913_v35, %v1946_v44  ;;  %v7962_v45 = vmax.f32 %v1912_v11, %v1945_v31  ;;  %v5777_v11 = vld [vmem:[%s9032_s5 + $0x3a8] ss:$12 sps:$4 sm:$0xff]   ;;  %vm9335_vm7 = vcmask 1043456  }
 0x2fa   : > { %v5670_v19 = vpack.i.bf16 %v1962_v8, %v7958_v50  ;;  %1981 = vrot.lane.b32.xlu0 %v7962_v45, %s9166_s20  ;;  %v5857_v8 = vld [vmem:[%s9032_s5 + $0x3f4] ss:$12 sps:$4 sm:$0xff]  }
 0x2fc   : > { %5671 = vrot.lane.b32.xlu1 %v5670_v19, %s9166_s20 }
 0x335   : > { %v1972_v4 = vpop.permute.xlu1 %1971 }
 0x337   : > { %v5662_v47 = vpop.permute.xlu0 %5661 }
 0x338   : > { %v5664_v0 = vunpack.i.h.bf16 %v5662_v47  ;;  %v5663_v56 = vunpack.i.l.bf16 %v5662_v47  ;;  %v5852_v47 = vld [vmem:[%s9032_s5 + $0x498] ss:$12 sps:$4 sm:$0xff]  }
 0x33a   : > { %v1988_v25 = vsel %vm9322_vm0, %v1972_v4, %v5663_v56  ;;  %v1989_v49 = vsel %vm9323_vm6, %v5663_v56, %v5664_v0  ;;  %v5860_v4 = vld [vmem:[%s9032_s5 + $0x484] ss:$12 sps:$4 sm:$0xff]   ;;  %vm9336_vm0 = vcmask 1046528   ;;  %vm9337_vm6 = vcmask 1039360  }
 0x33b   : > { %v2002_v35 = vmax.f32 %v1954_v9, %v1988_v25  ;;  %v2003_v40 = vmax.f32 %v1955_v13, %v1989_v49  ;;  %v5821_v9 = vld [vmem:[%s9032_s5 + $0x304] ss:$12 sps:$4 sm:$0xff]  }
 0x33d   : > { %v7970_v27 = vpack.c.bf16 %v2003_v40, %v2003_v40  ;;  %v7975_v43 = vpack.c.bf16 %v2002_v35, %v2002_v35  ;;  %v5863_v35 = vld [vmem:[%s9032_s5 + $0x3dc] ss:$12 sps:$4 sm:$0xff]  }
 0x33f   : > { %3168 = vmatprep.mubr.bf16.mxu0 %v7970_v27 }
 0x340   : > { %3169 = vmatmul.mubr.bf16.vlgmr.msra.gmra.mxu0 %v7975_v43 }
 0x341   : > { %3219 = vmatpush1.bf16.msra.mxu0 %v5777_v11  ;;  %v5858_v11 = vld [vmem:[%s9032_s5 + $0x480] ss:$12 sps:$4 sm:$0xff]  }
 0x342   : > { %3220 = vmatprep.subr.bf16.mxu0 %v5785_v5 }
 0x345   : > { %3221 = vmatpush1.bf16.msra.mxu0 %v5783_v15  ;;  %v5861_v15 = vld [vmem:[%s9032_s5 + $0x3d8] ss:$12 sps:$4 sm:$0xff]  }
 0x346   : > { %3222 = vmatprep.subr.bf16.mxu0 %v5791_v24  ;;  %v5867_v24 = vld [vmem:[%s9032_s5 + $0x3c4] ss:$12 sps:$4 sm:$0xff]  }
 0x349   : > { %3223 = vmatpush1.bf16.msra.mxu0 %v5789_v12  ;;  %v5868_v12 = vld [vmem:[%s9032_s5 + $0xb0] ss:$12 sps:$4 sm:$0xff]  }
 0x34a   : > { %3224 = vmatprep.subr.bf16.mxu0 %v5797_v3 }
 0x34d   : > { %3225 = vmatpush1.bf16.msra.mxu0 %v5795_v28  ;;  %v5865_v28 = vld [vmem:[%s9032_s5 + $0x3c0] ss:$12 sps:$4 sm:$0xff]  }
 0x34e   : > { %3226 = vmatprep.subr.bf16.mxu0 %v5803_v41  ;;  %v5869_v41 = vld [vmem:[%s9032_s5 + $0x158] ss:$12 sps:$4 sm:$0xff]  }
 0x351   : > { %3227 = vmatpush1.bf16.msra.mxu0 %v5801_v2 }
 0x352   : > { %v8009_v51 = vpop.permute.xlu0 %5666  ;;  %3228 = vmatprep.subr.bf16.mxu0 %v5809_v18  ;;  %v5871_v18 = vld [vmem:[%s9032_s5 + $0x2f0] ss:$12 sps:$4 sm:$0xff]  }
 0x353   : > { %v5669_v53 = vunpack.i.h.bf16 %v8009_v51  ;;  %v5668_v17 = vunpack.i.l.bf16 %v8009_v51 }
 0x355   : > { %v1990_v34 = vsel %vm9324_vm10, %v5664_v0, %v5668_v17  ;;  %3229 = vmatpush1.bf16.msra.mxu0 %v5807_v20  ;;  %v1991_v7 = vsel %vm9325_vm14, %v5668_v17, %v5669_v53  ;;  %v5855_v0 = vld [vmem:[%s9032_s5 + $0x3f0] ss:$12 sps:$4 sm:$0xff]   ;;  %v5870_v20 = vld [vmem:[%s9032_s5 + $0x98] ss:$12 sps:$4 sm:$0xff]   ;;  %vm9338_vm10 = vcmask 1042432   ;;  %vm9339_vm14 = vcmask 1045504  }
 0x356   : > { %v2004_v23 = vmax.f32 %v7898_v48, %v1990_v34  ;;  %3230 = vmatprep.subr.bf16.mxu0 %v5815_v36  ;;  %v2005_v13 = vmax.f32 %v1957_v30, %v1991_v7  ;;  %v5824_v48 = vld [vmem:[%s9032_s5 + $0x514] ss:$12 sps:$4 sm:$0xff]   ;;  %v5851_v30 = vld [vmem:[%s9032_s5 + $0x40c] ss:$12 sps:$4 sm:$0xff]  }
 0x357   : > { %v5873_v36 = vld [vmem:[%s9032_s5 + $0x140] ss:$12 sps:$4 sm:$0xff]   ;;  %v5876_v17 = vld [vmem:[%s9032_s5 + $0x218] ss:$12 sps:$4 sm:$0xff]   ;;  %v5877_v34 = vld [vmem:[%s9032_s5 + $0x128] ss:$12 sps:$4 sm:$0xff]  }
 0x358   : > { %v8027_v38 = vpack.c.bf16 %v2005_v13, %v2005_v13  ;;  %v8032_v57 = vpack.c.bf16 %v2004_v23, %v2004_v23  ;;  %v5878_v7 = vld [vmem:[%s9032_s5 + $0x68] ss:$12 sps:$4 sm:$0xff]   ;;  %v5880_v23 = vld [vmem:[%s9032_s5 + $0x200] ss:$12 sps:$4 sm:$0xff]   ;;  %v5881_v13 = vld [vmem:[%s9032_s5 + $0x110] ss:$12 sps:$4 sm:$0xff]  }
 0x359   : > { %3231 = vmatpush1.bf16.msra.mxu0 %v5813_v33  ;;  %v5879_v33 = vld [vmem:[%s9032_s5 + $0x2c0] ss:$12 sps:$4 sm:$0xff]  }
 0x35a   : > { %3209 = vmatprep.mubr.bf16.mxu1 %v8027_v38  ;;  %3232 = vmatprep.subr.bf16.mxu0 %v5821_v9  ;;  %v5883_v9 = vld [vmem:[%s9032_s5 + $0x2a8] ss:$12 sps:$4 sm:$0xff]  }
 0x35b   : > { %3210 = vmatmul.mubr.bf16.vlgmr.msra.gmra.mxu1 %v8032_v57 }
 0x35c   : > { %3260 = vmatpush1.bf16.msra.mxu1 %v5816_v39  ;;  %3291 = vmatprep.mubr.bf16.mxu1 %v6123_v61  ;;  %v5828_v61 = vld [vmem:[%s9032_s5 + $0x4f8] ss:$12 sps:$4 sm:$0xff]   ;;  %v5884_v39 = vld [vmem:[%s9032_s5 + $0x1e8] ss:$12 sps:$4 sm:$0xff]  }
 0x35d   : > { %3233 = vmatpush1.bf16.msra.mxu0 %v5819_v21  ;;  %3261 = vmatprep.subr.bf16.mxu1 %v5824_v48  ;;  %v5885_v21 = vld [vmem:[%s9032_s5 + $0xf8] ss:$12 sps:$4 sm:$0xff]   ;;  %v5887_v48 = vld [vmem:[%s9032_s5 + $0x290] ss:$12 sps:$4 sm:$0xff]  }
 0x35e   : > { %3234 = vmatprep.subr.bf16.mxu0 %v5827_v14  ;;  %v5886_v14 = vld [vmem:[%s9032_s5 + $0x38] ss:$12 sps:$4 sm:$0xff]  }
 0x360   : > { %3262 = vmatpush1.bf16.msra.mxu1 %v5822_v52  ;;  %v5888_v52 = vld [vmem:[%s9032_s5 + $0x1d0] ss:$12 sps:$4 sm:$0xff]  }
 0x361   : > { %3235 = vmatpush2.bf16.msra.mxu0 %v5825_v6  ;;  %3263 = vmatprep.subr.bf16.mxu1 %v5830_v46  ;;  %v5889_v6 = vld [vmem:[%s9032_s5 + $0xe0] ss:$12 sps:$4 sm:$0xff]   ;;  %v5891_v46 = vld [vmem:[%s9032_s5 + $0x278] ss:$12 sps:$4 sm:$0xff]  }
 0x362   : > { %3236 = vmatprep.subr.bf16.mxu0 %v5833_v60  ;;  %v5890_v60 = vld [vmem:[%s9032_s5 + $0x20] ss:$12 sps:$4 sm:$0xff]  }
 0x364   : > { %3264 = vmatpush1.bf16.msra.mxu1 %v5828_v61  ;;  %v5892_v61 = vld [vmem:[%s9032_s5 + $0x1b8] ss:$12 sps:$4 sm:$0xff]  }
 0x365   : > { %3237 = vmatpush2.bf16.msra.mxu0 %v5831_v58  ;;  %3265 = vmatprep.subr.bf16.mxu1 %v5836_v26  ;;  %v5893_v58 = vld [vmem:[%s9032_s5 + $0xc8] ss:$12 sps:$4 sm:$0xff]   ;;  %v5895_v26 = vld [vmem:[%s9032_s5 + $0x260] ss:$12 sps:$4 sm:$0xff]  }
 0x366   : > { %3238 = vmatprep.subr.bf16.mxu0 %v5839_v22  ;;  %v5894_v22 = vld [vmem:[%s9032_s5 + $0x8] ss:$12 sps:$4 sm:$0xff]  }
 0x368   : > { %3266 = vmatpush1.bf16.msra.mxu1 %v5834_v55  ;;  %v5896_v55 = vld [vmem:[%s9032_s5 + $0x1a0] ss:$12 sps:$4 sm:$0xff]  }
 0x369   : > { %3239 = vmatpush2.bf16.msra.mxu0 %v5837_v32  ;;  %3267 = vmatprep.subr.bf16.mxu1 %v5842_v29  ;;  %v5897_v32 = vld [vmem:[%s9032_s5 + $0x470] ss:$12 sps:$4 sm:$0xff]   ;;  %v5898_v29 = vld [vmem:[%s9032_s5 + $0x248] ss:$12 sps:$4 sm:$0xff]  }
 0x36a   : > { %3240 = vmatprep.subr.bf16.mxu0 %v5845_v59  ;;  %v5899_v59 = vld [vmem:[%s9032_s5 + $0x3b0] ss:$12 sps:$4 sm:$0xff]  }
 0x36c   : > { %3268 = vmatpush1.bf16.msra.mxu1 %v5840_v37  ;;  %v1982_v19 = vpop.permute.xlu0 %1981  ;;  %v5900_v37 = vld [vmem:[%s9032_s5 + $0x188] ss:$12 sps:$4 sm:$0xff]  }
 0x36d   : > { %3241 = vmatpush2.bf16.msra.mxu0 %v5843_v54  ;;  %3269 = vmatprep.subr.bf16.mxu1 %v5848_v42  ;;  %v5901_v54 = vld [vmem:[%s9032_s5 + $0x458] ss:$12 sps:$4 sm:$0xff]  }
 0x36e   : > { %v5672_v1 = vpop.permute.xlu1 %5671  ;;  %3242 = vmatprep.subr.bf16.mxu0 %v5851_v30  ;;  %v5902_v42 = vld [vmem:[%s9032_s5 + $0x398] ss:$12 sps:$4 sm:$0xff]   ;;  %v5903_v30 = vld [vmem:[%s9032_s5 + $0x530] ss:$12 sps:$4 sm:$0xff]  }
 0x36f   : > { %v5674_v44 = vunpack.i.h.bf16 %v5672_v1  ;;  %v5673_v31 = vunpack.i.l.bf16 %v5672_v1  ;;  %v5907_v1 = vld [vmem:[%s9032_s5 + $0x428] ss:$12 sps:$4 sm:$0xff]  }
 0x370   : > { %3270 = vmatpush1.bf16.msra.mxu1 %v5846_v10  ;;  %v5904_v10 = vld [vmem:[%s9032_s5 + $0x440] ss:$12 sps:$4 sm:$0xff]  }
 0x371   : > { %3243 = vmatpush2.bf16.msra.mxu0 %v5849_v62  ;;  %3271 = vmatprep.subr.bf16.mxu1 %v5854_v63  ;;  %v1993_v56 = vsel %vm9326_vm12, %v1982_v19, %v5673_v31  ;;  %v1994_v25 = vsel %vm9327_vm3, %v5673_v31, %v5674_v44  ;;  %v6126_v62 = vmov 0.0   ;;  %v5906_v63 = vld [vmem:[%s9032_s5 + $0x518] ss:$12 sps:$4 sm:$0xff]   ;;  %v5910_v44 = vld [vmem:[%s9032_s5 + $0x410] ss:$12 sps:$4 sm:$0xff]   ;;  %vm9340_vm12 = vmmov %vm9333_vm13 }
 0x372   : > { %3244 = vmatprep.subr.bf16.mxu0 %v5857_v8  ;;  %v2007_v49 = vmax.f32 %v7962_v45, %v1993_v56  ;;  %v2008_v5 = vmax.f32 %v7958_v50, %v1994_v25  ;;  %v5864_v45 = vld [vmem:[%s9032_s5 + $0x170] ss:$12 sps:$4 sm:$0xff]   ;;  %v1992_v50 = vsel %vm9328_vm11, %v5669_v53, %v1982_v19  ;;  %v5874_v53 = vld [vmem:[%s9032_s5 + $0x80] ss:$12 sps:$4 sm:$0xff]   ;;  %v5912_v19 = vld [vmem:[%s9032_s5 + $0x4e8] ss:$12 sps:$4 sm:$0xff]  }
 0x373   : > { %v2006_v2 = vmax.f32 %v7948_v16, %v1992_v50  ;;  %v5872_v16 = vld [vmem:[%s9032_s5 + $0x230] ss:$12 sps:$4 sm:$0xff]   ;;  %v5909_v8 = vld [vmem:[%s9032_s5 + $0x500] ss:$12 sps:$4 sm:$0xff]   ;;  %vm9341_vm3 = vmmov %vm9332_vm4 }
 0x374   : > { %3272 = vmatpush1.bf16.msra.mxu1 %v5852_v47  ;;  %v8121_v40 = vpack.c.bf16 %v2007_v49, %v2007_v49  ;;  %v8143_v3 = vpack.c.bf16 %v2008_v5, %v2008_v5  ;;  %v5911_v31 = vld [vmem:[%s9032_s5 + $0x350] ss:$12 sps:$4 sm:$0xff]   ;;  %v5913_v47 = vld [vmem:[%s9032_s5 + $0x3f8] ss:$12 sps:$4 sm:$0xff]   ;;  %v5917_v25 = vld [vmem:[%s9032_s5 + $0x320] ss:$12 sps:$4 sm:$0xff]  }
 0x375   : > { %3245 = vmatpush2.bf16.msra.mxu0 %v5855_v0  ;;  %3273 = vmatprep.subr.bf16.mxu1 %v5860_v4  ;;  %v8163_v51 = vpack.c.bf16 %v2006_v2, %v2006_v2  ;;  %v5914_v0 = vld [vmem:[%s9032_s5 + $0x338] ss:$12 sps:$4 sm:$0xff]   ;;  %v5915_v56 = vld [vmem:[%s9032_s5 + $0x4d0] ss:$12 sps:$4 sm:$0xff]   ;;  %v5916_v4 = vld [vmem:[%s9032_s5 + $0x3e0] ss:$12 sps:$4 sm:$0xff]  }
 0x376   : > { %3250 = vmatprep.mubr.bf16.mxu0 %v8121_v40  ;;  %3246 = vmatprep.subr.bf16.mxu0 %v5863_v35  ;;  %v5918_v49 = vld [vmem:[%s9032_s5 + $0x4b8] ss:$12 sps:$4 sm:$0xff]   ;;  %v5919_v35 = vld [vmem:[%s9032_s5 + $0x3c8] ss:$12 sps:$4 sm:$0xff]   ;;  %vm9342_vm11 = vmmov %vm9334_vm2 }
 0x377   : > { %v5922_v5 = vld [vmem:[%s9032_s5 + $0x488] ss:$12 sps:$4 sm:$0xff]  }
 0x378   : > { %3274 = vmatpush1.bf16.msra.mxu1 %v5858_v11  ;;  %v5921_v11 = vld [vmem:[%s9032_s5 + $0x4a0] ss:$12 sps:$4 sm:$0xff]  }
 0x379   : > { %3247 = vmatpush2.bf16.msra.mxu0 %v5861_v15  ;;  %5208 = vmatprep.subr.bf16.mxu1 %v5864_v45 }
 0x37a   : > { %3248 = vmatprep.subr.bf16.mxu0 %v5867_v24 }
 0x37b   : > { %3292 = vmatmul.mubr.bf16.vlgmr.msra.gmra.mxu1 %v8143_v3 }
 0x37c   : > { %5209 = vmatpush3.bf16.msra.mxu1 %v5868_v12  ;;  %3332 = vmatprep.mubr.bf16.mxu1 %v7970_v27  ;;  %v5875_v27 = vld [vmem:[%s9032_s5 + $0x2d8] ss:$12 sps:$4 sm:$0xff]  }
 0x37d   : > { %3249 = vmatpush2.bf16.msra.mxu0 %v5865_v28  ;;  %5210 = vmatprep.subr.bf16.mxu1 %v5869_v41 }
 0x37e   : > { %5230 = vmatprep.subr.bf16.mxu0 %v5871_v18 }
 0x380   : > { %3251 = vmatmul.mubr.bf16.vlgmr.msra.gmra.mxu0 %v8163_v51  ;;  %5211 = vmatpush3.bf16.msra.mxu1 %v5870_v20 }
 0x381   : > { %5231 = vmatpush3.bf16.msra.mxu0 %v5872_v16  ;;  %3372 = vmatprep.mubr.bf16.mxu0 %v8027_v38  ;;  %v5882_v38 = vld [vmem:[%s9032_s5 + $0x50] ss:$12 sps:$4 sm:$0xff]  }
 0x382   : > { %5212 = vmatprep.subr.bf16.mxu1 %v5873_v36  ;;  %5232 = vmatprep.subr.bf16.mxu0 %v5875_v27 }
 0x384   : > { %5213 = vmatpush3.bf16.msra.mxu1 %v5874_v53 }
 0x385   : > { %5233 = vmatpush3.bf16.msra.mxu0 %v5876_v17  ;;  %5214 = vmatprep.subr.bf16.mxu1 %v5877_v34 }
 0x386   : > { %5234 = vmatprep.subr.bf16.mxu0 %v5879_v33 }
 0x388   : > { %5215 = vmatpush3.bf16.msra.mxu1 %v5878_v7 }
 0x389   : > { %5235 = vmatpush3.bf16.msra.mxu0 %v5880_v23  ;;  %5216 = vmatprep.subr.bf16.mxu1 %v5881_v13 }
 0x38a   : > { %5236 = vmatprep.subr.bf16.mxu0 %v5883_v9 }
 0x38c   : > { %5217 = vmatpush3.bf16.msra.mxu1 %v5882_v38 }
 0x38d   : > { %5237 = vmatpush3.bf16.msra.mxu0 %v5884_v39  ;;  %5218 = vmatprep.subr.bf16.mxu1 %v5885_v21 }
 0x38e   : > { %5238 = vmatprep.subr.bf16.mxu0 %v5887_v48 }
 0x390   : > { %5219 = vmatpush3.bf16.msra.mxu1 %v5886_v14 }
 0x391   : > { %5239 = vmatpush3.bf16.msra.mxu0 %v5888_v52  ;;  %5220 = vmatprep.subr.bf16.mxu1 %v5889_v6 }
 0x392   : > { %5240 = vmatprep.subr.bf16.mxu0 %v5891_v46 }
 0x394   : > { %5221 = vmatpush3.bf16.msra.mxu1 %v5890_v60 }
 0x395   : > { %5241 = vmatpush3.bf16.msra.mxu0 %v5892_v61  ;;  %5222 = vmatprep.subr.bf16.mxu1 %v5893_v58 }
 0x396   : > { %5242 = vmatprep.subr.bf16.mxu0 %v5895_v26 }
 0x398   : > { %5223 = vmatpush3.bf16.msra.mxu1 %v5894_v22 }
 0x399   : > { %5243 = vmatpush3.bf16.msra.mxu0 %v5896_v55  ;;  %5252 = vmatprep.subr.bf16.mxu1 %v5897_v32 }
 0x39a   : > { %5244 = vmatprep.subr.bf16.mxu0 %v5898_v29 }
 0x39b   : > { %3333 = vmatmul.mubr.bf16.vlgmr.msra.gmra.mxu1 %v7975_v43  ;;  %v5905_v43 = vld [vmem:[%s9032_s5 + $0x380] ss:$12 sps:$4 sm:$0xff]  }
 0x39c   : > { %5253 = vmatpush3.bf16.msra.mxu1 %v5899_v59  ;;  %3412 = vmatprep.mubr.bf16.mxu1 %v8121_v40  ;;  %v5920_v40 = vld [vmem:[%s9032_s5 + $0x308] ss:$12 sps:$4 sm:$0xff]  }
 0x39d   : > { %5245 = vmatpush3.bf16.msra.mxu0 %v5900_v37  ;;  %5254 = vmatprep.subr.bf16.mxu1 %v5901_v54 }
 0x39e   : > { %5343 = vmatprep.subr.bf16.mxu0 %v6126_v62 }
 0x3a0   : > { %3373 = vmatmul.mubr.bf16.vlgmr.msra.gmra.mxu0 %v8032_v57  ;;  %5255 = vmatpush3.bf16.msra.mxu1 %v5902_v42  ;;  %v5908_v57 = vld [vmem:[%s9032_s5 + $0x368] ss:$12 sps:$4 sm:$0xff]  }
 0x3a1   : > { %5344 = vmatpush3.bf16.msra.mxu0 %v5903_v30  ;;  %5256 = vmatprep.subr.bf16.mxu1 %v5904_v10 }
 0x3a2   : > { %5345 = vmatprep.subr.bf16.mxu0 %v6126_v62  ;;  %5359 = vmatprep.mubr.msk.bf16.mxu0 %vm6127_vm1, %v6126_v62 }
 0x3a4   : > { %5257 = vmatpush3.bf16.msra.mxu1 %v5905_v43 }
 0x3a5   : > { %5346 = vmatpush3.bf16.msra.mxu0 %v5906_v63  ;;  %5258 = vmatprep.subr.bf16.mxu1 %v5907_v1 }
 0x3a6   : > { %5347 = vmatprep.subr.bf16.mxu0 %v6126_v62 }
 0x3a8   : > { %5259 = vmatpush3.bf16.msra.mxu1 %v5908_v57 }
 0x3a9   : > { %5348 = vmatpush3.bf16.msra.mxu0 %v5909_v8  ;;  %5260 = vmatprep.subr.bf16.mxu1 %v5910_v44 }
 0x3aa   : > { %5349 = vmatprep.subr.bf16.mxu0 %v6126_v62 }
 0x3ac   : > { %5261 = vmatpush3.bf16.msra.mxu1 %v5911_v31 }
 0x3ad   : > { %5350 = vmatpush3.bf16.msra.mxu0 %v5912_v19  ;;  %5262 = vmatprep.subr.bf16.mxu1 %v5913_v47 }
 0x3ae   : > { %5351 = vmatprep.subr.bf16.mxu0 %v6126_v62 }
 0x3b0   : > { %5263 = vmatpush3.bf16.msra.mxu1 %v5914_v0 }
 0x3b1   : > { %5352 = vmatpush3.bf16.msra.mxu0 %v5915_v56  ;;  %5264 = vmatprep.subr.bf16.mxu1 %v5916_v4 }
 0x3b2   : > { %5353 = vmatprep.subr.bf16.mxu0 %v6126_v62 }
 0x3b4   : > { %5265 = vmatpush3.bf16.msra.mxu1 %v5917_v25 }
 0x3b5   : > { %5354 = vmatpush3.bf16.msra.mxu0 %v5918_v49  ;;  %5266 = vmatprep.subr.bf16.mxu1 %v5919_v35 }
 0x3b6   : > { %5355 = vmatprep.subr.bf16.mxu0 %v6126_v62 }
 0x3b8   : > { %5267 = vmatpush3.bf16.msra.mxu1 %v5920_v40 }
 0x3b9   : > { %5356 = vmatpush3.bf16.msra.mxu0 %v5921_v11 }
 0x3ba   : > { %5357 = vmatprep.subr.bf16.mxu0 %v6126_v62 }
 0x3bb   : > { %3413 = vmatmul.mubr.bf16.vlgmr.msra.gmra.mxu1 %v8163_v51 }
 0x3bd   : > { %5358 = vmatpush3.bf16.msra.mxu0 %v5922_v5 }
 0x3c0   : > { %5360 = vmatmul.mubr.bf16.vlgmr.msra.gmra.mxu0 %v8143_v3 }
 0x400   : > { %v3170_v15 = vpop.f32.mrf.mxu0 }
 0x402   : > { %v3172_v45 = vpop.f32.mrf.mxu0 }
 0x404   : > { %v3174_v24 = vpop.f32.mrf.mxu0 }
 0x406   : > { %v3175_v50 = vpop.f32.mrf.mxu0 }
 0x41b   : > { %v3211_v12 = vpop.f32.mrf.mxu1 }
 0x41c   : > { %v3212_v16 = vadd.f32 %v3211_v12, %v3170_v15 }
 0x41d   : > { %v3213_v28 = vpop.f32.mrf.mxu1 }
 0x41e   : > { %v3214_v7 = vadd.f32 %v3213_v28, %v3172_v45 }
 0x41f   : > { %v3215_v41 = vpop.f32.mrf.mxu1 }
 0x421   : > { %v3216_v2 = vpop.f32.mrf.mxu1 }
 0x43b   : > { %v3293_v18 = vpop.f32.mrf.mxu1 }
 0x43d   : > { %v3295_v20 = vpop.f32.mrf.mxu1 }
 0x43f   : > { %v3297_v36 = vpop.f32.mrf.mxu1 }
 0x440   : > { %v3252_v27 = vpop.f32.mrf.mxu0 }
 0x441   : > { %v3253_v53 = vadd.f32 %v3252_v27, %v3212_v16  ;;  %v3298_v17 = vpop.f32.mrf.mxu1 }
 0x442   : > { %v3254_v34 = vpop.f32.mrf.mxu0 }
 0x443   : > { %v3294_v51 = vadd.f32 %v3293_v18, %v3253_v53  ;;  %v3255_v13 = vadd.f32 %v3254_v34, %v3214_v7 }
 0x444   : > { %v3256_v33 = vpop.f32.mrf.mxu0 }
 0x445   : > { %v8332_v3 = vpack.c.bf16 %v3294_v51, %v3294_v51  ;;  %v3296_v39 = vadd.f32 %v3295_v20, %v3255_v13 }
 0x446   : > { %v3257_v23 = vpop.f32.mrf.mxu0 }
 0x447   : > { %v3488_v9 = vrot.slane %v8332_v3, 7  ;;  %v3477_v38 = vrot.slane %v8332_v3, 2  ;;  %v3510_v21 = vrot.slane %v8332_v3, 1  ;;  %v8344_v48 = vrot.slane %v8332_v3, 4 }
 0x448   : > { %v8349_v14 = vpack.c.bf16 %v3296_v39, %v3296_v39  ;;  %v3466_v52 = vrot.slane %v8332_v3, 5  ;;  %v3522_v30 = vrot.slane %v8332_v3, 6  ;;  %v3534_v15 = vrot.slane %v8332_v3, 3 }
 0x449   : > { %3491 = vrot.lane.b32.xlu0 %v3488_v9, %s9329_s29  ;;  %3480 = vrot.lane.b32.xlu1 %v3477_v38, %s9168_s26 }
 0x44a   : > { %v3478_v6 = vrot.slane %v8349_v14, 2  ;;  %v3489_v46 = vrot.slane %v8349_v14, 7  ;;  %v8364_v61 = vrot.slane %v8349_v14, 4  ;;  %v3511_v22 = vrot.slane %v8349_v14, 1 }
 0x44b   : > { %v3467_v59 = vrot.slane %v8349_v14, 5  ;;  %v3523_v42 = vrot.slane %v8349_v14, 6  ;;  %v3535_v31 = vrot.slane %v8349_v14, 3 }
 0x44d   : > { %3513 = vrot.lane.b32.xlu0 %v3510_v21, %s6128_s16  ;;  %3685 = vrot.lane.b32.xlu1 %v8344_v48, %s6129_s27 }
 0x451   : > { %3469 = vrot.lane.b32.xlu1 %v3466_v52, %s9314_s22 }
 0x455   : > { %3482 = vrot.lane.b32.xlu1 %v3478_v6, %s9168_s26 }
 0x459   : > { %3493 = vrot.lane.b32.xlu1 %v3489_v46, %s9329_s29 }
 0x45b   : > { %v5224_v60 = vpop.f32.mrf.mxu1 }
 0x45d   : > { %v5225_v58 = vpop.f32.mrf.mxu1  ;;  %3687 = vrot.lane.b32.xlu1 %v8364_v61, %s6129_s27 }
 0x45e   : > { %v5226_v63 = vadd.f32 %v5225_v58, %v5224_v60 }
 0x45f   : > { %v5227_v26 = vpop.f32.mrf.mxu1 }
 0x460   : > { %v5246_v55 = vpop.f32.mrf.mxu0 }
 0x461   : > { %v5228_v32 = vpop.f32.mrf.mxu1  ;;  %3515 = vrot.lane.b32.xlu1 %v3511_v22, %s6128_s16 }
 0x462   : > { %v5247_v29 = vpop.f32.mrf.mxu0 }
 0x463   : > { %v5248_v10 = vadd.f32 %v5247_v29, %v5246_v55 }
 0x464   : > { %v5249_v37 = vpop.f32.mrf.mxu0 }
 0x465   : > { %3471 = vrot.lane.b32.xlu1 %v3467_v59, %s9314_s22  ;;  %v3375_v57 = vadd.f32 %v5248_v10, %v5226_v63 }
 0x466   : > { %v5250_v54 = vpop.f32.mrf.mxu0 }
 0x469   : > { %3548 = vrot.lane.b32.xlu1 %v8349_v14, %s6130_s28 }
 0x46d   : > { %3527 = vrot.lane.b32.xlu1 %v3523_v42, %s6131_s24 }
 0x471   : > { %3525 = vrot.lane.b32.xlu1 %v3522_v30, %s6131_s24 }
 0x475   : > { %3590 = vrot.lane.b32.xlu1 %v3511_v22, %s9330_s21 }
 0x479   : > { %3598 = vrot.lane.b32.xlu1 %v3523_v42, %s9209_s18 }
 0x47b   : > { %v5268_v43 = vpop.f32.mrf.mxu1 }
 0x47d   : > { %v5269_v1 = vpop.f32.mrf.mxu1  ;;  %3588 = vrot.lane.b32.xlu1 %v3510_v21, %s9330_s21 }
 0x47e   : > { %v5270_v8 = vadd.f32 %v5269_v1, %v5268_v43 }
 0x47f   : > { %v5271_v44 = vpop.f32.mrf.mxu1 }
 0x480   : > { %v3415_v19 = vadd.f32 %v5270_v8, %v3375_v57  ;;  %v3454_v47 = vpop.f32.mrf.mxu0 }
 0x481   : > { %v5272_v0 = vpop.f32.mrf.mxu1  ;;  %3606 = vrot.lane.b32.xlu1 %v3535_v31, %s6132_s0 }
 0x482   : > { %v3455_v56 = vadd.f32 %v3454_v47, %v3415_v19  ;;  %v5361_v4 = vpop.f32.mrf.mxu0 }
 0x484   : > { %v8385_v25 = vpack.c.bf16 %v3455_v56, %v3455_v56  ;;  %v3457_v49 = vpop.f32.mrf.mxu0 }
 0x486   : > { %v5362_v35 = vpop.f32.mrf.mxu0  ;;  %v3479_v40 = vrot.slane %v8385_v25, 2  ;;  %v3536_v11 = vrot.slane %v8385_v25, 3  ;;  %v3490_v5 = vrot.slane %v8385_v25, 7  ;;  %v8395_v45 = vrot.slane %v8385_v25, 4 }
 0x487   : > { %v3512_v24 = vrot.slane %v8385_v25, 1  ;;  %v3468_v50 = vrot.slane %v8385_v25, 5  ;;  %v3524_v12 = vrot.slane %v8385_v25, 6 }
 0x488   : > { %3484 = vrot.lane.b32.xlu0 %v3479_v40, %s9168_s26  ;;  %3541 = vrot.lane.b32.xlu1 %v3536_v11, %s6133_s15  ;;  %s9331_s26 = smov 95  }
 0x48c   : > { %3495 = vrot.lane.b32.xlu0 %v3490_v5, %s9329_s29  ;;  %3604 = vrot.lane.b32.xlu1 %v3534_v15, %s6132_s0  ;;  %s5205_s29 = sshll.u32 %s6233_s17, 4 }
 0x490   : > { %3689 = vrot.lane.b32.xlu0 %v8395_v45, %s6129_s27  ;;  %3568 = vrot.lane.b32.xlu1 %v3479_v40, %s9166_s20 }
 0x494   : > { %3517 = vrot.lane.b32.xlu0 %v3512_v24, %s6128_s16  ;;  %3576 = vrot.lane.b32.xlu1 %v3490_v5, %s9331_s26 }
 0x498   : > { %3473 = vrot.lane.b32.xlu0 %v3468_v50, %s9314_s22 }
 0x49c   : > { %3546 = vrot.lane.b32.xlu0 %v8332_v3, %s6130_s28 }
 0x4a0   : > { %3550 = vrot.lane.b32.xlu0 %v8385_v25, %s6130_s28 }
 0x4a4   : > { %3539 = vrot.lane.b32.xlu0 %v3535_v31, %s6133_s15 }
 0x4a8   : > { %3537 = vrot.lane.b32.xlu0 %v3534_v15, %s6133_s15 }
 0x4ac   : > { %3596 = vrot.lane.b32.xlu0 %v3522_v30, %s9209_s18 }
 0x4b0   : > { %3529 = vrot.lane.b32.xlu0 %v3524_v12, %s6131_s24 }
 0x4b4   : > { %3566 = vrot.lane.b32.xlu0 %v3478_v6, %s9166_s20 }
 0x4b8   : > { %3574 = vrot.lane.b32.xlu0 %v3489_v46, %s9331_s26 }
 0x4bb   : > { %v3481_v28 = vpop.permute.xlu1 %3480  ;;  %v3492_v16 = vpop.permute.xlu0 %3491 }
 0x4bc   : > { %3564 = vrot.lane.b32.xlu0 %v3477_v38, %s9166_s20  ;;  %s6134_s20 = smov 79  }
 0x4bf   : > { %v3686_v41 = vpop.permute.xlu1 %3685  ;;  %v3514_v34 = vpop.permute.xlu0 %3513 }
 0x4c0   : > { %3592 = vrot.lane.b32.xlu0 %v3512_v24, %s9330_s21 }
 0x4c3   : > { %v3470_v2 = vpop.permute.xlu1 %3469 }
 0x4c4   : > { %3600 = vrot.lane.b32.xlu0 %v3524_v12, %s9209_s18  ;;  %s6135_s18 = smov 108  }
 0x4c7   : > { %v3483_v18 = vpop.permute.xlu1 %3482 }
 0x4c8   : > { %3608 = vrot.lane.b32.xlu0 %v3536_v11, %s6132_s0  ;;  %v3486_v17 = vsel %vm9333_vm13, %v3481_v28, %v3483_v18  ;;  %vm9344_vm13 = vmmov %vm9335_vm7  ;;  %s6136_s0 = smov [#allocation2]  }
 0x4c9   : > { %s6048_s15 = sshll.u32 %s6136_s0, 4  ;;  %s6049_s15 = int_to_ptr.vmem [resolvable:$false] %s6048_s15 }
 0x4cb   : > { %v3494_v20 = vpop.permute.xlu1 %3493 }
 0x4cc   : > { %v3497_v27 = vsel %vm9332_vm4, %v3492_v16, %v3494_v20  ;;  %vm9343_vm4 = vmmov %vm9334_vm2 }
 0x4cd   : > { %v8430_v51 = vsel %vm9334_vm2, %v3486_v17, %v3497_v27  ;;  %vm9345_vm2 = vmmov %vm9336_vm0 }
 0x4cf   : > { %v3688_v36 = vpop.permute.xlu1 %3687 }
 0x4d0   : > { %v3692_v53 = vsel %vm3691_vm5, %v3686_v41, %v3688_v36 }
 0x4d1   : > { %v3702_v7 = vsel %vm9335_vm7, %v8430_v51, %v3692_v53  ;;  %vm9346_vm7 = vmmov %vm9337_vm6  ;;  %v3765_v53 = vld [vmem:[%s9031_s4] sm:$0xff] }
 0x4d3   : > { %v3516_v33 = vpop.permute.xlu1 %3515 }
 0x4d4   : > { %v8435_v23 = vsel %vm3519_vm9, %v3514_v34, %v3516_v33 }
 0x4d5   : > { %v3707_v13 = vsel %vm9336_vm0, %v3702_v7, %v8435_v23  ;;  %vm9347_vm0 = vmmov %vm9338_vm10 }
 0x4d6   : > { %3730 = vrot.lane.b32.xlu1 %v3707_v13, %s6134_s20 }
 0x4d7   : > { %v3472_v38 = vpop.permute.xlu1 %3471 }
 0x4d8   : > { %v3475_v39 = vsel %vm9337_vm6, %v3470_v2, %v3472_v38  ;;  %vm9348_vm6 = vmmov %vm9347_vm0 }
 0x4d9   : > { %v3615_v21 = vsel %vm9338_vm10, %v8332_v3, %v3475_v39  ;;  %vm9349_vm10 = vmmov %vm9339_vm14 }
 0x4da   : > { %v8444_v6 = vsel %vm9339_vm14, %v3615_v21, %v3486_v17  ;;  %vm9350_vm14 = vmmov %vm9349_vm10 }
 0x4db   : > { %3724 = vrot.lane.b32.xlu0 %v8444_v6, %s6134_s20  ;;  %v3549_v60 = vpop.permute.xlu1 %3548 }
 0x4df   : > { %v3528_v29 = vpop.permute.xlu1 %3527 }
 0x4e3   : > { %v3526_v10 = vpop.permute.xlu1 %3525 }
 0x4e7   : > { %v8475_v56 = vpop.permute.xlu1 %3590 }
 0x4eb   : > { %v8485_v35 = vpop.permute.xlu1 %3598 }
 0x4ef   : > { %v3589_v5 = vpop.permute.xlu1 %3588 }
 0x4fa   : > { %v3485_v46 = vpop.permute.xlu0 %3484 }
 0x4fb   : > { %v3487_v26 = vsel %vm9340_vm12, %v3483_v18, %v3485_v46  ;;  %vm9351_vm12 = vmmov %vm9344_vm13 }
 0x4fe   : > { %v3496_v58 = vpop.permute.xlu0 %3495 }
 0x4ff   : > { %v3498_v22 = vsel %vm9341_vm3, %v3494_v20, %v3496_v58  ;;  %v3700_v37 = vsel %vm9343_vm4, %v3485_v46, %v3496_v58  ;;  %vm9353_vm3 = vcmask 760832   ;;  %vm9355_vm4 = vcmask 1041408  }
 0x500   : > { %v8451_v55 = vsel %vm9342_vm11, %v3487_v26, %v3498_v22  ;;  %vm9354_vm11 = vcmask 752640  }
 0x502   : > { %v3690_v32 = vpop.permute.xlu0 %3689 }
 0x503   : > { %v3706_v54 = vsel %vm9344_vm13, %v3700_v37, %v3690_v32  ;;  %v3693_v57 = vsel %vm3691_vm5, %v3688_v36, %v3690_v32  ;;  %vm9352_vm5 = vmmov %vm9345_vm2  ;;  %vm3531_vm13 = vcmask 908288   ;;  %v3766_v36 = vld [vmem:[%s9031_s4 + $0x8] sm:$0xff] }
 0x504   : > { %v3704_v0 = vsel %vm9351_vm12, %v8451_v55, %v3693_v57  ;;  %v3532_v28 = vsel %vm3531_vm13, %v3526_v10, %v3528_v29  ;;  %vm3748_vm12 = vcmask 646144  }
 0x506   : > { %v3518_v42 = vpop.permute.xlu0 %3517 }
 0x507   : > { %v3710_v30 = vsel %vm9345_vm2, %v3706_v54, %v3518_v42  ;;  %v8465_v31 = vsel %vm3519_vm9, %v3516_v33, %v3518_v42  ;;  %vm3552_vm2 = vcmask 891904  }
 0x508   : > { %3734 = vrot.lane.b32.xlu0 %v3710_v30, %s6134_s20  ;;  %v3708_v4 = vsel %vm9352_vm5, %v3704_v0, %v8465_v31  ;;  %vm3610_vm5 = vcmask 654336  }
 0x50a   : > { %v3474_v43 = vpop.permute.xlu0 %3473 }
 0x50b   : > { %v3476_v63 = vsel %vm9346_vm7, %v3472_v38, %v3474_v43  ;;  %v3696_v1 = vsel %vm9347_vm0, %v8385_v25, %v3474_v43  ;;  %vm3543_vm7 = vcmask 900096   ;;  %vm9356_vm0 = vmmov %vm9355_vm4 }
 0x50c   : > { %v3618_v8 = vsel %vm9348_vm6, %v8349_v14, %v3476_v63  ;;  %v3698_v44 = vsel %vm9349_vm10, %v3696_v1, %v3485_v46  ;;  %vm3786_vm6 = vcmask 179200   ;;  %vm9357_vm10 = vmmov %vm9356_vm0 }
 0x50d   : > { %3728 = vrot.lane.b32.xlu1 %v3698_v44, %s6134_s20  ;;  %v8469_v19 = vsel %vm9350_vm14, %v3618_v8, %v3487_v26  ;;  %v3640_v18 = vsel %vm9357_vm10, %v8435_v23, %v3532_v28  ;;  %vm9358_vm14 = vmmov %vm9356_vm0  ;;  %vm9367_vm10 = vcmask 769024  }
 0x50e   : > { %v3547_v47 = vpop.permute.xlu0 %3546  ;;  %3726 = vrot.lane.b32.xlu0 %v8469_v19, %s6134_s20 }
 0x511   : > { %3732 = vrot.lane.b32.xlu1 %v3708_v4, %s6134_s20 }
 0x512   : > { %v3551_v49 = vpop.permute.xlu0 %3550  ;;  %3582 = vrot.lane.b32.xlu0 %v8364_v61, %s9171_s25 }
 0x513   : > { %v8513_v25 = vsel %vm3552_vm2, %v3549_v60, %v3551_v49 }
 0x515   : > { %3572 = vrot.lane.b32.xlu1 %v3488_v9, %s9331_s26  ;;  %v8499_v9 = vsel %vm9353_vm3, %v3589_v5, %v8475_v56  ;;  %vm9359_vm3 = vmmov %vm9354_vm11  ;;  %s6050_s26 = scalar_lea.vmem %s6049_s15, 32 }
 0x516   : > { %v3540_v40 = vpop.permute.xlu0 %3539  ;;  %3580 = vrot.lane.b32.xlu0 %v8344_v48, %s9171_s25 }
 0x519   : > { %3584 = vrot.lane.b32.xlu1 %v8395_v45, %s9171_s25  ;;  %s456_s25 = sand.u32 1, %s6096_s30  }
 0x51a   : > { %v3538_v11 = vpop.permute.xlu0 %3537  ;;  %3559 = vrot.lane.b32.xlu0 %v3468_v50, %s6135_s18  ;;  %s457_s27 = scalar_lea.vmem [#allocation2], %s456_s25  ;;  %s4860_s21 = scalar_lea.sflag [#allocation3], %s456_s25 }
 0x51b   : > { %v3544_v2 = vsel %vm3543_vm7, %v3538_v11, %v3540_v40  ;;  %s4872_s28 = sshll.u32 %s457_s27, 4  ;;  %s8988_s28 = int_to_ptr.vmem [resolvable:$true] %s4872_s28 }
 0x51c   : > { %v8538_v16 = vsel %vm1369_vm15, %v3640_v18, %v3544_v2  ;;  %s6044_s17 = scalar_lea.vmem %s8988_s28, 16  ;;  %p6051_p0 = scmp.lt.s32.totalorder %s8988_s28, %s6049_s15 }
 0x51d   : > { %3557 = vrot.lane.b32.xlu1 %v3467_v59, %s6135_s18  ;;  %p6045_p11 = scmp.ne.s32.totalorder %s8988_s28, %s6044_s17  ;;  %p6052_p1 = scmp.lt.s32.totalorder %s6050_s26, %s6044_s17 }
 0x51e   : > { %v3597_v15 = vpop.permute.xlu0 %3596  ;;  %3504 = vrot.lane.b32.xlu0 %v8364_v61, %s9238_s19  ;;  %v8511_v61 = vpop.permute.xlu1 %3606 }
 0x51f   : > { %v3602_v24 = vsel %vm9354_vm11, %v3597_v15, %v8485_v35  ;;  %vm9360_vm11 = vcmask 760832   ;;  %p6046_p12 = pnand %p6045_p11, %p6250_p5  ;;  %p6053_p2 = por %p6052_p1, %p6051_p0 }
 0x520   : > { %v8505_v12 = vsel %vm9355_vm4, %v8499_v9, %v3602_v24  ;;  %vm9361_vm4 = vcmask 777216  }
 0x521   : > { %3555 = vrot.lane.b32.xlu1 %v3466_v52, %s6135_s18  ;;  %v8521_v52 = vsel %vm3552_vm2, %v3547_v47, %v3549_v60  ;;  %vm9363_vm2 = vmmov %vm9356_vm0  ;;  %p6047_p13 = pneg %p6046_p12 }
 0x522   : > { %v3530_v14 = vpop.permute.xlu0 %3529  ;;  %3502 = vrot.lane.b32.xlu0 %v8344_v48, %s9238_s19  ;;  %v3542_v3 = vpop.permute.xlu1 %3541 }
 0x523   : > { %v3533_v59 = vsel %vm3531_vm13, %v3528_v29, %v3530_v14  ;;  %v3545_v48 = vsel %vm3543_vm7, %v3540_v40, %v3542_v3  ;;  %v3712_v20 = vsel %vm9358_vm14, %v3518_v42, %v3530_v14  ;;  %vm9362_vm13 = vmmov %vm9361_vm4  ;;  %vm9364_vm7 = vcmask 785408   ;;  %p6054_p3 = pnand %p6053_p2, %p6047_p13 }
 0x524   : > { %v3642_v50 = vsel %vm9356_vm0, %v8465_v31, %v3533_v59  ;;  %v3714_v27 = vsel %vm1369_vm15, %v3712_v20, %v3542_v3  ;;  %vm9365_vm0 = vmmov %vm9364_vm7 }
 0x525   : > { %3506 = vrot.lane.b32.xlu1 %v8395_v45, %s9238_s19  ;;  %v8526_v41 = vsel %vm1369_vm15, %v3642_v50, %v3545_v48  ;;  %v5923_v45 = vld [vmem:[%s9030_s3 + $0x4] ss:$8 sps:$4 sm:$0xff]  }
 0x526   : > { %3744 = vrot.lane.b32.xlu0 %v8513_v25, %s6134_s20  ;;  %5106 = vmatprep.mubr.msk.bf16.mxu1 %vm3786_vm6, %v5923_v45  ;;  %v3567_v17 = vpop.permute.xlu0 %3566  ;;  %v3605_v13 = vpop.permute.xlu1 %3604  ;;  %vm9366_vm6 = vcmask 1040384  }
 0x527   : > { %v3611_v5 = vsel %vm3610_vm5, %v3605_v13, %v8511_v61  ;;  %vm9368_vm14 = vmmov %vm9366_vm6 }
 0x528   : > { %v3680_v59 = vsel %vm1369_vm15, %v8505_v12, %v3611_v5  ;;  %v5943_v5 = vld [vmem:[%s9033_s6 + $0xac] ss:$16 sps:$4 sm:$0xff]  }
 0x529   : > { %3742 = vrot.lane.b32.xlu1 %v8521_v52, %s6134_s20 }
 0x52a   : > { %3738 = vrot.lane.b32.xlu0 %v8526_v41, %s6134_s20  ;;  %v3575_v34 = vpop.permute.xlu0 %3574  ;;  %v3569_v39 = vpop.permute.xlu1 %3568 }
 0x52d   : > { %3746 = vrot.lane.b32.xlu1 %v3551_v49, %s6134_s20 }
 0x52e   : > { %3736 = vrot.lane.b32.xlu0 %v8538_v16, %s6134_s20  ;;  %v3565_v33 = vpop.permute.xlu0 %3564  ;;  %v3577_v46 = vpop.permute.xlu1 %3576 }
 0x52f   : > { %v3579_v44 = vsel %vm9362_vm13, %v3575_v34, %v3577_v46  ;;  %v3570_v4 = vsel %vm9364_vm7, %v3565_v33, %v3567_v17  ;;  %vm9374_vm7 = vcmask 1042432  }
 0x531   : > { %3740 = vrot.lane.b32.xlu1 %v3714_v27, %s6134_s20 }
 0x532   : > { %3774 = vperm.xlu0 %5639, %v3766_v36   ;;  %v3593_v7 = vpop.permute.xlu0 %3592 }
 0x533   : > { %v3595_v1 = vsel %vm9360_vm11, %v8475_v56, %v3593_v7  ;;  %vm9370_vm11 = vcmask 1043456  }
 0x534   : > { %vm9371_vm13 = vmmov %vm9370_vm11 }
 0x535   : > { %3769 = vperm.xlu1 %5675, %v3765_v53  }
 0x536   : > { %v3601_v38 = vpop.permute.xlu0 %3600 }
 0x537   : > { %v3603_v30 = vsel %vm9359_vm3, %v8485_v35, %v3601_v38  ;;  %v3571_v35 = vsel %vm9365_vm0, %v3567_v17, %v3569_v39  ;;  %vm9369_vm3 = vmmov %vm9367_vm10 }
 0x538   : > { %v3678_v0 = vsel %vm9363_vm2, %v3595_v1, %v3603_v30  ;;  %v3664_v15 = vsel %vm9368_vm14, %v3571_v35, %v3579_v44  ;;  %vm9372_vm2 = vcmask 1046528   ;;  %vm9376_vm0 = vmmov %vm9374_vm7  ;;  %v5931_v44 = vld [vmem:[%s9033_s6 + $0xec] ss:$16 sps:$4 sm:$0xff]  }
 0x53a   : > { %v3609_v21 = vpop.permute.xlu0 %3608 }
 0x53b   : > { %v3612_v43 = vsel %vm3610_vm5, %v8511_v61, %v3609_v21  ;;  %vm9373_vm5 = vmmov %vm9372_vm2 }
 0x53c   : > { %v3683_v49 = vsel %vm1369_vm15, %v3678_v0, %v3612_v43  ;;  %vm9375_vm15 = vcmask 1045504  }
 0x548   : > { %v3731_v58 = vpop.permute.xlu1 %3730 }
 0x54d   : > { %v3725_v60 = vpop.permute.xlu0 %3724 }
 0x57a   : > { %v3735_v26 = vpop.permute.xlu0 %3734 }
 0x57f   : > { %v3729_v22 = vpop.permute.xlu1 %3728 }
 0x580   : > { %v3727_v32 = vpop.permute.xlu0 %3726 }
 0x581   : > { %v3750_v10 = vsel %vm3748_vm12, %v3727_v32, %v3729_v22  ;;  %v3749_v47 = vsel %vm3748_vm12, %v3725_v60, %v3727_v32 }
 0x583   : > { %v3733_v29 = vpop.permute.xlu1 %3732 }
 0x584   : > { %v3751_v37 = vsel %vm3748_vm12, %v3731_v58, %v3733_v29  ;;  %v3583_v54 = vpop.permute.xlu0 %3582  ;;  %v3752_v42 = vsel %vm3748_vm12, %v3733_v29, %v3735_v26 }
 0x585   : > { %3796 = vmatprep.subr.bf16.mxu1 %v3752_v42 }
 0x586   : > { %3797 = vmatpush1.bf16.msra.mxu1 %v3751_v37 }
 0x587   : > { %3798 = vmatprep.subr.bf16.mxu1 %v3750_v10  ;;  %v3573_v63 = vpop.permute.xlu1 %3572 }
 0x588   : > { %v3578_v57 = vsel %vm9361_vm4, %v3573_v63, %v3575_v34  ;;  %v3581_v8 = vpop.permute.xlu0 %3580  ;;  %vm3561_vm4 = vcmask 883712  }
 0x589   : > { %v3662_v40 = vsel %vm9366_vm6, %v3570_v4, %v3578_v57  ;;  %v3586_v56 = vsel %vm9367_vm10, %v3581_v8, %v3583_v54  ;;  %vm9377_vm6 = vmmov %vm9375_vm15  ;;  %vm9378_vm10 = vcmask 1014784   ;;  %v5928_v57 = vld [vmem:[%s9033_s6 + $0xe4] ss:$16 sps:$4 sm:$0xff]   ;;  %v5929_v8 = vld [vmem:[%s9033_s6 + $0xe8] ss:$16 sps:$4 sm:$0xff]  }
 0x58a   : > { %3799 = vmatpush1.bf16.msra.mxu1 %v3749_v47  ;;  %v3666_v3 = vsel %vm9371_vm13, %v3662_v40, %v3586_v56  ;;  %vm9379_vm14 = vmmov %vm9378_vm10  ;;  %4182 = vmatprep.subr.bf16.mxu0 %v5928_v57  ;;  %v5935_v56 = vld [vmem:[%s9033_s6 + $0xc8] ss:$16 sps:$4 sm:$0xff]  }
 0x58b   : > { %3800 = vmatprep.subr.bf16.mxu1 %v3683_v49  ;;  %v3585_v11 = vpop.permute.xlu1 %3584  ;;  %v3670_v45 = vsel %vm9373_vm5, %v3666_v3, %v8499_v9  ;;  %vm9383_vm13 = vmmov %vm9372_vm2  ;;  %v5932_v49 = vld [vmem:[%s9033_s6 + $0xc0] ss:$16 sps:$4 sm:$0xff]   ;;  %v5947_v3 = vld [vmem:[%s9033_s6 + $0x88] ss:$16 sps:$4 sm:$0xff]  }
 0x58c   : > { %v3587_v24 = vsel %vm9369_vm3, %v3583_v54, %v3585_v11  ;;  %v3560_v14 = vpop.permute.xlu0 %3559  ;;  %vm9380_vm3 = vmmov %vm9370_vm11  ;;  %v5940_v11 = vld [vmem:[%s9033_s6 + $0xa4] ss:$16 sps:$4 sm:$0xff]  }
 0x58d   : > { %v3668_v50 = vsel %vm9370_vm11, %v3664_v15, %v3587_v24  ;;  %vm9381_vm11 = vmmov %vm9372_vm2  ;;  %v5938_v15 = vld [vmem:[%s9033_s6 + $0xa0] ss:$16 sps:$4 sm:$0xff]   ;;  %v5941_v24 = vld [vmem:[%s9033_s6 + $0xa8] ss:$16 sps:$4 sm:$0xff]  }
 0x58e   : > { %3801 = vmatpush1.bf16.msra.mxu1 %v3680_v59  ;;  %v3673_v48 = vsel %vm9372_vm2, %v3668_v50, %v3595_v1  ;;  %vm9384_vm2 = vmmov %vm9376_vm0  ;;  %v5926_v1 = vld [vmem:[%s9033_s6 + $0xe0] ss:$16 sps:$4 sm:$0xff]   ;;  %v5949_v59 = vld [vmem:[%s9033_s6 + $0x8c] ss:$16 sps:$4 sm:$0xff]  }
 0x58f   : > { %3802 = vmatprep.subr.bf16.mxu1 %v3673_v48  ;;  %v3558_v28 = vpop.permute.xlu1 %3557  ;;  %vm9385_vm5 = vmmov %vm9376_vm0  ;;  %4183 = vmatpush1.bf16.msra.mxu0 %v5926_v1  ;;  %v5944_v50 = vld [vmem:[%s9033_s6 + $0x80] ss:$16 sps:$4 sm:$0xff]   ;;  %v5952_v48 = vld [vmem:[%s9033_s6 + $0x64] ss:$16 sps:$4 sm:$0xff]  }
 0x590   : > { %v3563_v2 = vsel %vm3561_vm4, %v3558_v28, %v3560_v14  ;;  %v3505_v61 = vpop.permute.xlu0 %3504  ;;  %v5946_v14 = vld [vmem:[%s9033_s6 + $0x84] ss:$16 sps:$4 sm:$0xff]  }
 0x591   : > { %v3654_v18 = vsel %vm9374_vm7, %v8513_v25, %v3563_v2  ;;  %v5950_v2 = vld [vmem:[%s9033_s6 + $0x60] ss:$16 sps:$4 sm:$0xff]  }
 0x592   : > { %3803 = vmatpush1.bf16.msra.mxu1 %v3670_v45  ;;  %v3659_v12 = vsel %vm9375_vm15, %v3654_v18, %v3571_v35  ;;  %v5937_v35 = vld [vmem:[%s9033_s6 + $0xcc] ss:$16 sps:$4 sm:$0xff]   ;;  %v5958_v45 = vld [vmem:[%s9033_s6 + $0x44] ss:$16 sps:$4 sm:$0xff]   ;;  %vm4810_vm15 = vcmask 687104  }
 0x593   : > { %3804 = vmatprep.subr.bf16.mxu1 %v3659_v12  ;;  %v3556_v20 = vpop.permute.xlu1 %3555  ;;  %v5961_v18 = vld [vmem:[%s9033_s6 + $0x4c] ss:$16 sps:$4 sm:$0xff]   ;;  %v5956_v12 = vld [vmem:[%s9033_s6 + $0x40] ss:$16 sps:$4 sm:$0xff]  }
 0x594   : > { %v3562_v36 = vsel %vm3561_vm4, %v3556_v20, %v3558_v28  ;;  %v3503_v53 = vpop.permute.xlu0 %3502  ;;  %vm9382_vm4 = vmmov %vm9380_vm3  ;;  %v5955_v28 = vld [vmem:[%s9033_s6 + $0x6c] ss:$16 sps:$4 sm:$0xff]   ;;  %v5959_v20 = vld [vmem:[%s9033_s6 + $0x48] ss:$16 sps:$4 sm:$0xff]  }
 0x595   : > { %v3651_v27 = vsel %vm9376_vm0, %v8521_v52, %v3562_v36  ;;  %v3508_v33 = vsel %vm9378_vm10, %v3503_v53, %v3505_v61  ;;  %v5964_v36 = vld [vmem:[%s9033_s6 + $0x24] ss:$16 sps:$4 sm:$0xff]   ;;  %v5962_v53 = vld [vmem:[%s9033_s6 + $0x20] ss:$16 sps:$4 sm:$0xff]   ;;  %vm4857_vm0 = vcmask 73728  }
 0x596   : > { %v3656_v17 = vsel %vm9377_vm6, %v3651_v27, %v3570_v4  ;;  %v3630_v52 = vsel %vm9382_vm4, %v8430_v51, %v3508_v33  ;;  %v5934_v4 = vld [vmem:[%s9033_s6 + $0xc4] ss:$16 sps:$4 sm:$0xff]   ;;  %v5967_v27 = vld [vmem:[%s9033_s6 + $0x2c] ss:$16 sps:$4 sm:$0xff]  }
 0x597   : > { %3805 = vmatpush1.bf16.msra.mxu1 %v3656_v17  ;;  %v3507_v34 = vpop.permute.xlu1 %3506  ;;  %v3634_v39 = vsel %vm9383_vm13, %v3630_v52, %v8435_v23  ;;  %4184 = vmatprep.subr.bf16.mxu0 %v5934_v4  ;;  %v5965_v17 = vld [vmem:[%s9033_s6 + $0x28] ss:$16 sps:$4 sm:$0xff]   ;;  %v5973_v33 = vld [vmem:[%s9033_s6 + $0xc] ss:$16 sps:$4 sm:$0xff]  }
 0x598   : > { %v3509_v9 = vsel %vm9379_vm14, %v3505_v61, %v3507_v34  ;;  %3806 = vmatprep.subr.bf16.mxu1 %v8526_v41  ;;  %v3745_v13 = vpop.permute.xlu0 %3744  ;;  %4185 = vmatpush1.bf16.msra.mxu0 %v5932_v49  ;;  %v5953_v61 = vld [vmem:[%s9033_s6 + $0x68] ss:$16 sps:$4 sm:$0xff]   ;;  %v5970_v34 = vld [vmem:[%s9033_s6 + $0x4] ss:$16 sps:$4 sm:$0xff]   ;;  %v5979_v52 = vld [vmem:[%s9033_s6 + $0x16c] ss:$16 sps:$4 sm:$0xff]  }
 0x599   : > { %v3632_v25 = vsel %vm9380_vm3, %v8451_v55, %v3509_v9  ;;  %4186 = vmatprep.subr.bf16.mxu0 %v5940_v11  ;;  %v5968_v9 = vld [vmem:[%s9033_s6] ss:$16 sps:$4 sm:$0xff]   ;;  %v5998_v4 = vld [vmem:[%s9035_s8 + $0x78] sm:$0xff]  }
 0x59a   : > { %v3637_v7 = vsel %vm9381_vm11, %v3632_v25, %v8465_v31  ;;  %v5971_v25 = vld [vmem:[%s9033_s6 + $0x8] ss:$16 sps:$4 sm:$0xff]  }
 0x59b   : > { %3807 = vmatpush1.bf16.msra.mxu1 %v8538_v16  ;;  %v3743_v38 = vpop.permute.xlu1 %3742 }
 0x59c   : > { %3808 = vmatprep.subr.bf16.mxu1 %v3637_v7  ;;  %v3739_v41 = vpop.permute.xlu0 %3738  ;;  %v3755_v55 = vsel %vm3748_vm12, %v3743_v38, %v3745_v13  ;;  %4187 = vmatpush1.bf16.msra.mxu0 %v5938_v15  ;;  %v5976_v7 = vld [vmem:[%s9033_s6 + $0x164] ss:$16 sps:$4 sm:$0xff]   ;;  %v5977_v38 = vld [vmem:[%s9033_s6 + $0x168] ss:$16 sps:$4 sm:$0xff]  }
 0x59d   : > { %v3791_v16 = vsel %vm9385_vm5, %v3755_v55, 0  ;;  %4188 = vmatprep.subr.bf16.mxu0 %v5946_v14  ;;  %v5983_v55 = vld [vmem:[%s9033_s6 + $0x148] ss:$16 sps:$4 sm:$0xff]  }
 0x59f   : > { %3809 = vmatpush1.bf16.msra.mxu1 %v3634_v39  ;;  %v3747_v21 = vpop.permute.xlu1 %3746  ;;  %v5982_v39 = vld [vmem:[%s9033_s6 + $0x144] ss:$16 sps:$4 sm:$0xff]  }
 0x5a0   : > { %3810 = vmatprep.subr.bf16.mxu1 %v8469_v19  ;;  %v3756_v31 = vsel %vm3748_vm12, %v3745_v13, %v3747_v21  ;;  %v3737_v46 = vpop.permute.xlu0 %3736  ;;  %v5925_v19 = vld [vmem:[%s9030_s3] ss:$8 sps:$4 sm:$0xff]   ;;  %4189 = vmatpush1.bf16.msra.mxu0 %v5944_v50  ;;  %v5985_v21 = vld [vmem:[%s9033_s6 + $0x14c] ss:$16 sps:$4 sm:$0xff]  }
 0x5a1   : > { %v3753_v60 = vsel %vm3748_vm12, %v3737_v46, %v3739_v41  ;;  %4190 = vmatprep.subr.bf16.mxu0 %v5952_v48  ;;  %v5974_v13 = vld [vmem:[%s9033_s6 + $0x160] ss:$16 sps:$4 sm:$0xff]   ;;  %v5989_v46 = vld [vmem:[%s9033_s6 + $0x128] ss:$16 sps:$4 sm:$0xff]  }
 0x5a2   : > { %v6000_v50 = vld [vmem:[%s9035_s8 + $0x38] sm:$0xff]  }
 0x5a3   : > { %3811 = vmatpush1.bf16.msra.mxu1 %v8444_v6  ;;  %v3741_v51 = vpop.permute.xlu1 %3740 }
 0x5a4   : > { %5105 = vmatprep.subr.msk.bf16.mxu1 %vm9384_vm2, %v3756_v31  ;;  %v3754_v23 = vsel %vm3748_vm12, %v3739_v41, %v3741_v51  ;;  %4191 = vmatpush1.bf16.msra.mxu0 %v5950_v2  ;;  %v5980_v41 = vld [vmem:[%s9033_s6 + $0x140] ss:$16 sps:$4 sm:$0xff]   ;;  %v5988_v31 = vld [vmem:[%s9033_s6 + $0x124] ss:$16 sps:$4 sm:$0xff]   ;;  %v5991_v51 = vld [vmem:[%s9033_s6 + $0x12c] ss:$16 sps:$4 sm:$0xff]  }
 0x5a5   : > { %4192 = vmatprep.subr.bf16.mxu0 %v5958_v45  ;;  %vm9386_vm12 = vcmask 1039360   ;;  %v6003_v2 = vld [vmem:[%s9035_s8 + $0xf0] sm:$0xff]  }
 0x5a6   : > { %vm9387_vm7 = vmmov %vm9386_vm12  ;;  %v6005_v45 = vld [vmem:[%s9035_s8 + $0xb0] sm:$0xff]  }
 0x5a7   : > { %3825 = vmatpush2.bf16.msra.mxu1 %v3791_v16  ;;  %v5986_v16 = vld [vmem:[%s9033_s6 + $0x120] ss:$16 sps:$4 sm:$0xff]  }
 0x5a8   : > { %3826 = vmatprep.subr.bf16.mxu1 %v3754_v23  ;;  %4193 = vmatpush1.bf16.msra.mxu0 %v5956_v12  ;;  %v6007_v12 = vld [vmem:[%s9035_s8 + $0xe8] sm:$0xff]  }
 0x5a9   : > { %4194 = vmatprep.subr.bf16.mxu0 %v5964_v36  ;;  %v6009_v36 = vld [vmem:[%s9035_s8 + $0xa8] sm:$0xff]  }
 0x5ab   : > { %3827 = vmatpush2.bf16.msra.mxu1 %v3753_v60 }
 0x5ac   : > { %4225 = vmatprep.subr.bf16.mxu1 %v5931_v44  ;;  %4195 = vmatpush1.bf16.msra.mxu0 %v5962_v53  ;;  %v6011_v53 = vld [vmem:[%s9035_s8 + $0xe0] sm:$0xff]  }
 0x5ad   : > { %v3775_v29 = vpop.permute.xlu0 %3774  ;;  %4196 = vmatprep.subr.bf16.mxu0 %v5970_v34  ;;  %v6013_v34 = vld [vmem:[%s9035_s8 + $0xa0] sm:$0xff]  }
 0x5ae   : > { %3829 = vmatmul.mubr.bf16.vlgmr.msra.gmra.mxu1 %v5925_v19 }
 0x5af   : > { %4226 = vmatpush1.bf16.msra.mxu1 %v5929_v8 }
 0x5b0   : > { %v3770_v58 = vpop.permute.xlu1 %3769  ;;  %4227 = vmatprep.subr.bf16.mxu1 %v5937_v35  ;;  %4197 = vmatpush1.bf16.msra.mxu0 %v5968_v9  ;;  %v6015_v9 = vld [vmem:[%s9035_s8 + $0xd8] sm:$0xff]  }
 0x5b1   : > { %4206 = vmatprep.subr.bf16.mxu0 %v5976_v7  ;;  %v6017_v7 = vld [vmem:[%s9035_s8 + $0x98] sm:$0xff]  }
 0x5b3   : > { %4228 = vmatpush1.bf16.msra.mxu1 %v5935_v56 }
 0x5b4   : > { %4229 = vmatprep.subr.bf16.mxu1 %v5943_v5  ;;  %4207 = vmatpush2.bf16.msra.mxu0 %v5974_v13  ;;  %v6019_v13 = vld [vmem:[%s9035_s8 + $0xd0] sm:$0xff]  }
 0x5b5   : > { %4208 = vmatprep.subr.bf16.mxu0 %v5982_v39  ;;  %v6021_v39 = vld [vmem:[%s9035_s8 + $0x90] sm:$0xff]  }
 0x5b7   : > { %4230 = vmatpush1.bf16.msra.mxu1 %v5941_v24 }
 0x5b8   : > { %4231 = vmatprep.subr.bf16.mxu1 %v5949_v59  ;;  %4209 = vmatpush2.bf16.msra.mxu0 %v5980_v41  ;;  %v6023_v41 = vld [vmem:[%s9035_s8 + $0xc8] sm:$0xff]  }
 0x5b9   : > { %4210 = vmatprep.subr.bf16.mxu0 %v5988_v31  ;;  %v6025_v31 = vld [vmem:[%s9035_s8 + $0x88] sm:$0xff]  }
 0x5bb   : > { %4232 = vmatpush1.bf16.msra.mxu1 %v5947_v3  ;;  %v6001_v3 = vld [vmem:[%s9035_s8 + $0xb8] sm:$0xff]  }
 0x5bc   : > { %4233 = vmatprep.subr.bf16.mxu1 %v5955_v28  ;;  %4211 = vmatpush2.bf16.msra.mxu0 %v5986_v16  ;;  %v6002_v28 = vld [vmem:[%s9035_s8 + $0x70] sm:$0xff]   ;;  %v6027_v16 = vld [vmem:[%s9035_s8 + $0xc0] sm:$0xff]  }
 0x5bf   : > { %4234 = vmatpush1.bf16.msra.mxu1 %v5953_v61  ;;  %v6004_v61 = vld [vmem:[%s9035_s8 + $0x30] sm:$0xff]  }
 0x5c0   : > { %4235 = vmatprep.subr.bf16.mxu1 %v5961_v18  ;;  %v6006_v18 = vld [vmem:[%s9035_s8 + $0x68] sm:$0xff]  }
 0x5c3   : > { %4236 = vmatpush1.bf16.msra.mxu1 %v5959_v20  ;;  %v6008_v20 = vld [vmem:[%s9035_s8 + $0x28] sm:$0xff]  }
 0x5c4   : > { %4237 = vmatprep.subr.bf16.mxu1 %v5967_v27  ;;  %v6010_v27 = vld [vmem:[%s9035_s8 + $0x60] sm:$0xff]  }
 0x5c7   : > { %4238 = vmatpush1.bf16.msra.mxu1 %v5965_v17  ;;  %v6012_v17 = vld [vmem:[%s9035_s8 + $0x20] sm:$0xff]  }
 0x5c8   : > { %4239 = vmatprep.subr.bf16.mxu1 %v5973_v33  ;;  %v6014_v33 = vld [vmem:[%s9035_s8 + $0x58] sm:$0xff]  }
 0x5cb   : > { %4240 = vmatpush1.bf16.msra.mxu1 %v5971_v25  ;;  %v6016_v25 = vld [vmem:[%s9035_s8 + $0x18] sm:$0xff]  }
 0x5cc   : > { %4249 = vmatprep.subr.bf16.mxu1 %v5979_v52  ;;  %v6018_v52 = vld [vmem:[%s9035_s8 + $0x50] sm:$0xff]  }
 0x5cf   : > { %4250 = vmatpush2.bf16.msra.mxu1 %v5977_v38  ;;  %v6020_v38 = vld [vmem:[%s9035_s8 + $0x10] sm:$0xff]  }
 0x5d0   : > { %4251 = vmatprep.subr.bf16.mxu1 %v5985_v21  ;;  %v6022_v21 = vld [vmem:[%s9035_s8 + $0x48] sm:$0xff]  }
 0x5d3   : > { %4252 = vmatpush2.bf16.msra.mxu1 %v5983_v55  ;;  %v6024_v55 = vld [vmem:[%s9035_s8 + $0x8] sm:$0xff]  }
 0x5d4   : > { %4253 = vmatprep.subr.bf16.mxu1 %v5991_v51  ;;  %v6026_v51 = vld [vmem:[%s9035_s8 + $0x40] sm:$0xff]  }
 0x5d7   : > { %4254 = vmatpush2.bf16.msra.mxu1 %v5989_v46  ;;  %v6028_v46 = vld [vmem:[%s9035_s8] sm:$0xff]  }
 0x66e   : > { %v3830_v6 = vpop.f32.mrf.mxu1 }
 0x66f   : > { %v8608_v26 = vadd.f32 %v3830_v6, %v3770_v58  ;;  %v5997_v6 = vld [vmem:[%s9033_s6 + $0x10c] ss:$16 sps:$4 sm:$0xff]  }
 0x670   : > { %v3832_v22 = vpop.f32.mrf.mxu1  ;;  %4255 = vmatprep.subr.bf16.mxu1 %v5997_v6  ;;  %v4270_v6 = vld [vmem:[%s9034_s7 + $0x10] sm:$0xff] }
 0x671   : > { %v8610_v32 = vadd.f32 %v3832_v22, %v3770_v58  ;;  %v3839_v54 = vmax.f32 %v8608_v26, 0.0  ;;  %v5994_v58 = vld [vmem:[%s9033_s6 + $0x104] ss:$16 sps:$4 sm:$0xff]   ;;  %v5992_v22 = vld [vmem:[%s9033_s6 + $0x100] ss:$16 sps:$4 sm:$0xff]  }
 0x672   : > { %v3834_v37 = vpop.f32.mrf.mxu1  ;;  %4212 = vmatprep.subr.bf16.mxu0 %v5994_v58  ;;  %v4268_v58 = vld [vmem:[%s9034_s7] sm:$0xff] }
 0x673   : > { %v3840_v42 = vmax.f32 %v8610_v32, 0.0  ;;  %v8614_v30 = vadd.f32 %v3834_v37, %v3775_v29  ;;  %4213 = vmatpush2.bf16.msra.mxu0 %v5992_v22  ;;  %v5999_v32 = vld [vmem:[%s9035_s8 + $0xf8] sm:$0xff]  }
 0x674   : > { %v3836_v10 = vpop.f32.mrf.mxu1  ;;  %5283 = vmatprep.subr.bf16.mxu0 %v5998_v4  ;;  %v4275_v4 = vld [vmem:[%s9034_s7 + $0x38] sm:$0xff] }
 0x675   : > { %v5676_v43 = vpack.i.bf16 %v3840_v42, %v3839_v54  ;;  %v8620_v63 = vadd.f32 %v3836_v10, %v3775_v29  ;;  %v3841_v47 = vmax.f32 %v8614_v30, 0.0  ;;  %v5995_v29 = vld [vmem:[%s9033_s6 + $0x108] ss:$16 sps:$4 sm:$0xff]  }
 0x676   : > { %4256 = vmatpush2.bf16.msra.mxu1 %v5995_v29 }
 0x677   : > { %v3842_v0 = vmax.f32 %v8620_v63, 0.0  ;;  %5677 = vrot.lane.b32.xlu1 %v5676_v43, %s9314_s22  ;;  %5305 = vmatprep.subr.bf16.mxu1 %v5999_v32 }
 0x679   : > { %v5681_v40 = vpack.i.bf16 %v3842_v0, %v3841_v47 }
 0x67b   : > { %5682 = vrot.lane.b32.xlu0 %v5681_v40, %s9314_s22  ;;  %s8986_s22 = scalar_lea.hbm %s9041_s14, %s5205_s29 }
 0x6e9   : > { %v5678_v23 = vpop.permute.xlu1 %5677 }
 0x6ea   : > { %v5680_v60 = vunpack.i.h.bf16 %v5678_v23  ;;  %v5679_v19 = vunpack.i.l.bf16 %v5678_v23  ;;  %v6029_v23 = vld [vmem:[%s9035_s8 + $0x80] sm:$0xff]  }
 0x6ec   : > { %v3862_v37 = vmax.f32 %v3840_v42, %v5680_v60  ;;  %v3855_v10 = vsel %vm9386_vm12, %v5679_v19, %v5680_v60 }
 0x6ed   : > { %v3861_v43 = vmax.f32 %v3839_v54, %v3855_v10  ;;  %v5683_v1 = vpop.permute.xlu0 %5682  ;;  %v4274_v10 = vld [vmem:[%s9034_s7 + $0x30] sm:$0xff] }
 0x6ee   : > { %v5685_v57 = vunpack.i.h.bf16 %v5683_v1  ;;  %v5684_v8 = vunpack.i.l.bf16 %v5683_v1  ;;  %v4271_v1 = vld [vmem:[%s9034_s7 + $0x18] sm:$0xff] }
 0x6ef   : > { %v5686_v44 = vpack.i.bf16 %v3862_v37, %v3861_v43 }
 0x6f0   : > { %v3864_v42 = vmax.f32 %v3842_v0, %v5685_v57  ;;  %v3856_v26 = vsel %vm9387_vm7, %v5684_v8, %v5685_v57 }
 0x6f1   : > { %v3863_v54 = vmax.f32 %v3841_v47, %v3856_v26  ;;  %5687 = vrot.lane.b32.xlu1 %v5686_v44, %s6128_s16  ;;  %v4273_v44 = vld [vmem:[%s9034_s7 + $0x28] sm:$0xff] }
 0x6f3   : > { %v5691_v49 = vpack.i.bf16 %v3864_v42, %v3863_v54 }
 0x6f5   : > { %5692 = vrot.lane.b32.xlu0 %v5691_v49, %s6128_s16 }
 0x763   : > { %v5688_v35 = vpop.permute.xlu1 %5687 }
 0x764   : > { %v5690_v40 = vunpack.i.h.bf16 %v5688_v35  ;;  %v5689_v56 = vunpack.i.l.bf16 %v5688_v35 }
 0x766   : > { %v3878_v5 = vsel %vm3519_vm9, %v5689_v56, %v5690_v40  ;;  %v3885_v15 = vmax.f32 %v3862_v37, %v5690_v40  ;;  %v4272_v37 = vld [vmem:[%s9034_s7 + $0x20] sm:$0xff] }
 0x767   : > { %v5693_v11 = vpop.permute.xlu0 %5692  ;;  %v3884_v47 = vmax.f32 %v3861_v43, %v3878_v5  ;;  %v4269_v43 = vld [vmem:[%s9034_s7 + $0x8] sm:$0xff] }
 0x768   : > { %v5695_v63 = vunpack.i.h.bf16 %v5693_v11  ;;  %v5694_v0 = vunpack.i.l.bf16 %v5693_v11 }
 0x76a   : > { %v3887_v24 = vmax.f32 %v3864_v42, %v5695_v63  ;;  %v3879_v30 = vsel %vm3519_vm9, %v5694_v0, %v5695_v63  ;;  %vm4716_vm9 = vcmask 982016  }
 0x76b   : > { %v3886_v14 = vmax.f32 %v3863_v54, %v3879_v30 }
 0x76c   : > { %v3889_v59 = vpack.c.bf16 %v3887_v24, %v3885_v15 }
 0x76d   : > { %v3888_v48 = vpack.c.bf16 %v3886_v14, %v3884_v47 }
 0x76e   : > { %5155 = vmatprep.mubr.msk.bf16.mxu0 %vm993_vm8, %v3889_v59  ;;  %5156 = vmatprep.mubr.msk.bf16.mxu1 %vm993_vm8, %v3889_v59  ;;  %vm9388_vm8 = vmmov %vm9380_vm3 }
 0x76f   : > { %4215 = vmatmul.mubr.bf16.vlgmr.msra.gmra.mxu0 %v3888_v48  ;;  %4258 = vmatmul.mubr.bf16.vlgmr.msra.gmra.mxu1 %v3888_v48 }
 0x770   : > { %5284 = vmatpush3.bf16.msra.mxu0 %v6000_v50  ;;  %5306 = vmatpush3.bf16.msra.mxu1 %v6001_v3 }
 0x771   : > { %5285 = vmatprep.subr.bf16.mxu0 %v6002_v28  ;;  %5307 = vmatprep.subr.bf16.mxu1 %v6003_v2 }
 0x774   : > { %5286 = vmatpush3.bf16.msra.mxu0 %v6004_v61  ;;  %5308 = vmatpush3.bf16.msra.mxu1 %v6005_v45 }
 0x775   : > { %5287 = vmatprep.subr.bf16.mxu0 %v6006_v18  ;;  %5309 = vmatprep.subr.bf16.mxu1 %v6007_v12 }
 0x778   : > { %5288 = vmatpush3.bf16.msra.mxu0 %v6008_v20  ;;  %5310 = vmatpush3.bf16.msra.mxu1 %v6009_v36 }
 0x779   : > { %5289 = vmatprep.subr.bf16.mxu0 %v6010_v27  ;;  %5311 = vmatprep.subr.bf16.mxu1 %v6011_v53 }
 0x77c   : > { %5290 = vmatpush3.bf16.msra.mxu0 %v6012_v17  ;;  %5312 = vmatpush3.bf16.msra.mxu1 %v6013_v34 }
 0x77d   : > { %5291 = vmatprep.subr.bf16.mxu0 %v6014_v33  ;;  %5313 = vmatprep.subr.bf16.mxu1 %v6015_v9 }
 0x780   : > { %5292 = vmatpush3.bf16.msra.mxu0 %v6016_v25  ;;  %5314 = vmatpush3.bf16.msra.mxu1 %v6017_v7  ;;  %v6030_v7 = vld [vmem:[%s9037_s10 + $0x38] ss:$0 sps:$4 sm:$0xff]  }
 0x781   : > { %5293 = vmatprep.subr.bf16.mxu0 %v6018_v52  ;;  %5315 = vmatprep.subr.bf16.mxu1 %v6019_v13 }
 0x784   : > { %5294 = vmatpush3.bf16.msra.mxu0 %v6020_v38  ;;  %5316 = vmatpush3.bf16.msra.mxu1 %v6021_v39 }
 0x785   : > { %5295 = vmatprep.subr.bf16.mxu0 %v6022_v21  ;;  %5317 = vmatprep.subr.bf16.mxu1 %v6023_v41 }
 0x788   : > { %5296 = vmatpush3.bf16.msra.mxu0 %v6024_v55  ;;  %5318 = vmatpush3.bf16.msra.mxu1 %v6025_v31  ;;  %v4721_v55 = vsel %vm9388_vm8, %v6030_v7, 0  ;;  %v6031_v31 = vld [vmem:[%s9037_s10 + $0x30] sm:$0xff]  }
 0x789   : > { %5297 = vmatprep.subr.bf16.mxu0 %v6026_v51  ;;  %5319 = vmatprep.subr.bf16.mxu1 %v6027_v16  ;;  %v6032_v51 = vld [vmem:[%s9037_s10 + $0x28] sm:$0xff]   ;;  %v6033_v16 = vld [vmem:[%s9037_s10 + $0x20] sm:$0xff]  }
 0x78c   : > { %5298 = vmatpush3.bf16.msra.mxu0 %v6028_v46  ;;  %5320 = vmatpush3.bf16.msra.mxu1 %v6029_v23  ;;  %v6034_v46 = vld [vmem:[%s9037_s10 + $0x18] sm:$0xff]   ;;  %v6035_v23 = vld [vmem:[%s9037_s10 + $0x10] sm:$0xff]  }
 0x78d   : > { %5363 = vmatprep.subr.bf16.mxu0 %v6126_v62  ;;  %5383 = vmatprep.subr.bf16.mxu1 %v6126_v62 }
 0x82f   : > { %v4216_v60 = vpop.f32.mrf.mxu0  ;;  %v4259_v19 = vpop.f32.mrf.mxu1 }
 0x830   : > { %v4276_v32 = vmul.f32 %v4268_v58, %v4216_v60  ;;  %v4278_v42 = vmul.f32 %v4270_v6, %v4259_v19  ;;  %v6036_v60 = vld [vmem:[%s9037_s10 + $0x8] sm:$0xff]   ;;  %v6037_v19 = vld [vmem:[%s9037_s10] sm:$0xff]  }
 0x831   : > { %v4218_v22 = vpop.f32.mrf.mxu0  ;;  %v4261_v29 = vpop.f32.mrf.mxu1  ;;  %v6038_v58 = vld [vmem:[%s9039_s12 + $0x28] ss:$0 sps:$4 sm:$0x33]  }
 0x832   : > { %v4277_v49 = vmul.f32 %v4269_v43, %v4218_v22  ;;  %v4279_v35 = vmul.f32 %v4271_v1, %v4261_v29  ;;  %v6039_v22 = vld [vmem:[%s9039_s12 + $0x20] sm:$0xff]   ;;  %v6040_v29 = vld [vmem:[%s9039_s12 + $0x18] sm:$0xff]  }
 0x833   : > { %v4220_v57 = vpop.f32.mrf.mxu0  ;;  %v4263_v8 = vpop.f32.mrf.mxu1  ;;  %v4380_v1 = vld [vmem:[%s9036_s9] sm:$0x1] }
 0x834   : > { %v4280_v26 = vmul.f32 %v4272_v37, %v4220_v57  ;;  %v4282_v54 = vmul.f32 %v4274_v10, %v4263_v8  ;;  %v6041_v37 = vld [vmem:[%s9039_s12 + $0x10] sm:$0xff]  }
 0x835   : > { %v4222_v40 = vpop.f32.mrf.mxu0  ;;  %v4265_v56 = vpop.f32.mrf.mxu1 }
 0x836   : > { %v4284_v11 = vadd.f32 %v4280_v26, %v4276_v32  ;;  %v4298_v5 = vadd.f32 %v4282_v54, %v4278_v42  ;;  %v4281_v63 = vmul.f32 %v4273_v44, %v4222_v40  ;;  %v4283_v0 = vmul.f32 %v4275_v4, %v4265_v56 }
 0x838   : > { %v4285_v15 = vrot.slane %v4284_v11, 4  ;;  %v4299_v24 = vrot.slane %v4298_v5, 4  ;;  %v4291_v30 = vadd.f32 %v4281_v63, %v4277_v49  ;;  %v4305_v47 = vadd.f32 %v4283_v0, %v4279_v35  ;;  %v4670_v63 = vld [vmem:[%s9038_s11] sm:$0x1] }
 0x83a   : > { %v4286_v14 = vadd.f32 %v4285_v15, %v4284_v11  ;;  %v4300_v59 = vadd.f32 %v4299_v24, %v4298_v5  ;;  %v4292_v50 = vrot.slane %v4291_v30, 4  ;;  %v4306_v3 = vrot.slane %v4305_v47, 4  ;;  %v6042_v11 = vld [vmem:[%s9039_s12 + $0x8] sm:$0xff]   ;;  %v6043_v5 = vld [vmem:[%s9039_s12] sm:$0xff]  }
 0x83c   : > { %v4287_v48 = vrot.slane %v4286_v14, 2  ;;  %v4301_v28 = vrot.slane %v4300_v59, 2  ;;  %v4293_v2 = vadd.f32 %v4292_v50, %v4291_v30  ;;  %v4307_v61 = vadd.f32 %v4306_v3, %v4305_v47 }
 0x83e   : > { %v4288_v45 = vadd.f32 %v4287_v48, %v4286_v14  ;;  %v4302_v18 = vadd.f32 %v4301_v28, %v4300_v59  ;;  %v4294_v12 = vrot.slane %v4293_v2, 2  ;;  %v4308_v20 = vrot.slane %v4307_v61, 2 }
 0x840   : > { %v4289_v36 = vrot.slane %v4288_v45, 1  ;;  %v4303_v27 = vrot.slane %v4302_v18, 1  ;;  %v4295_v53 = vadd.f32 %v4294_v12, %v4293_v2  ;;  %v4309_v17 = vadd.f32 %v4308_v20, %v4307_v61 }
 0x842   : > { %v4296_v34 = vrot.slane %v4295_v53, 1  ;;  %v4310_v33 = vrot.slane %v4309_v17, 1  ;;  %v4290_v9 = vadd.f32 %v4289_v36, %v4288_v45  ;;  %v4304_v25 = vadd.f32 %v4303_v27, %v4302_v18 }
 0x844   : > { %v4297_v52 = vadd.f32 %v4296_v34, %v4295_v53  ;;  %v4311_v13 = vadd.f32 %v4310_v33, %v4309_v17  ;;  %v4312_v21 = vpack.c.bf16 %v4290_v9, %v4290_v9  ;;  %v4314_v41 = vpack.c.bf16 %v4304_v25, %v4304_v25 }
 0x846   : > { %v4313_v38 = vpack.c.bf16 %v4297_v52, %v4297_v52  ;;  %v4315_v39 = vpack.c.bf16 %v4311_v13, %v4311_v13 }
 0x848   : > { %4605 = vmatprep.mubr.bf16.mxu0 %v4313_v38  ;;  %4645 = vmatprep.mubr.bf16.mxu1 %v4315_v39 }
 0x849   : > { %4606 = vmatmul.mubr.bf16.vlgmr.msra.gmra.mxu0 %v4312_v21  ;;  %4646 = vmatmul.mubr.bf16.vlgmr.msra.gmra.mxu1 %v4314_v41 }
 0x84a   : > { %5364 = vmatpush3.bf16.msra.mxu0 %v4721_v55  ;;  %5379 = vmatprep.mubr.msk.bf16.mxu0 %vm6127_vm1, %v6126_v62 }
 0x84b   : > { %5365 = vmatprep.subr.bf16.mxu0 %v6126_v62  ;;  %5395 = vmatprep.mubr.msk.bf16.mxu1 %vm6127_vm1, %v6126_v62  ;;  %vm9389_vm1 = vcmask 1041408  }
 0x84c   : > { %v4815_v6 = vsel %vm9389_vm1, %v6038_v58, 0 }
 0x84d   : > { %5384 = vmatpush3.bf16.msra.mxu1 %v4815_v6 }
 0x84e   : > { %5366 = vmatpush3.bf16.msra.mxu0 %v6031_v31  ;;  %5385 = vmatprep.subr.bf16.mxu1 %v6126_v62 }
 0x84f   : > { %5367 = vmatprep.subr.bf16.mxu0 %v6126_v62 }
 0x851   : > { %5386 = vmatpush3.bf16.msra.mxu1 %v6039_v22 }
 0x852   : > { %5368 = vmatpush3.bf16.msra.mxu0 %v6032_v51  ;;  %5387 = vmatprep.subr.bf16.mxu1 %v6126_v62 }
 0x853   : > { %5369 = vmatprep.subr.bf16.mxu0 %v6126_v62 }
 0x855   : > { %5388 = vmatpush3.bf16.msra.mxu1 %v6040_v29 }
 0x856   : > { %5370 = vmatpush3.bf16.msra.mxu0 %v6033_v16  ;;  %5389 = vmatprep.subr.bf16.mxu1 %v6126_v62 }
 0x857   : > { %5371 = vmatprep.subr.bf16.mxu0 %v6126_v62 }
 0x859   : > { %5390 = vmatpush3.bf16.msra.mxu1 %v6041_v37 }
 0x85a   : > { %5372 = vmatpush3.bf16.msra.mxu0 %v6034_v46  ;;  %5391 = vmatprep.subr.bf16.mxu1 %v6126_v62 }
 0x85b   : > { %5373 = vmatprep.subr.bf16.mxu0 %v6126_v62 }
 0x85d   : > { %5392 = vmatpush3.bf16.msra.mxu1 %v6042_v11 }
 0x85e   : > { %5374 = vmatpush3.bf16.msra.mxu0 %v6035_v23  ;;  %5393 = vmatprep.subr.bf16.mxu1 %v6126_v62 }
 0x85f   : > { %5375 = vmatprep.subr.bf16.mxu0 %v6126_v62 }
 0x861   : > { %5394 = vmatpush3.bf16.msra.mxu1 %v6043_v5 }
 0x862   : > { %5376 = vmatpush3.bf16.msra.mxu0 %v6036_v60 }
 0x863   : > { %5377 = vmatprep.subr.bf16.mxu0 %v6126_v62  ;;  %v4776_v62 = vld [vmem:[%s9040_s13] sm:$0x1] }
 0x866   : > { %5378 = vmatpush3.bf16.msra.mxu0 %v6037_v19 }
 0x909   : > { %v5299_v10 = vpop.f32.mrf.mxu0  ;;  %v5321_v43 = vpop.f32.mrf.mxu1 }
 0x90b   : > { %v5300_v57 = vpop.f32.mrf.mxu0  ;;  %v5322_v8 = vpop.f32.mrf.mxu1 }
 0x90c   : > { %v5301_v44 = vadd.f32 %v5300_v57, %v5299_v10  ;;  %v5323_v26 = vadd.f32 %v5322_v8, %v5321_v43 }
 0x90d   : > { %v5302_v4 = vpop.f32.mrf.mxu0  ;;  %v5324_v32 = vpop.f32.mrf.mxu1 }
 0x90e   : > { %v4608_v42 = vadd.f32 %v5301_v44, %v4380_v1 }
 0x90f   : > { %v5303_v54 = vpop.f32.mrf.mxu0  ;;  %v5325_v49 = vpop.f32.mrf.mxu1 }
 0x910   : > { %v4648_v35 = vadd.f32 %v5323_v26, %v4608_v42 }
 0x912   : > { %v4653_v40 = vmax.f32 %v4648_v35, 0.0 }
 0x914   : > { %v4654_v56 = vpack.c.bf16 %v4653_v40, %v4653_v40 }
 0x916   : > { %5380 = vmatmul.mubr.msk.bf16.vlgmr.msra.gmra.mxu0 %vm4716_vm9, %v4654_v56 }
 0x9d6   : > { %v4757_v0 = vpop.f32.mrf.mxu0 }
 0x9d7   : > { %v4758_v15 = vadd.f32 %v4757_v0, %v4670_v63 }
 0x9d8   : > { %v5381_v24 = vpop.f32.mrf.mxu0 }
 0x9d9   : > { %v4763_v30 = vmax.f32 %v4758_v15, 0.0 }
 0x9da   : > { %v4760_v47 = vpop.f32.mrf.mxu0 }
 0x9db   : > { %v4764_v14 = vpack.c.bf16 %v4763_v30, %v4763_v30 }
 0x9dc   : > { %v5382_v59 = vpop.f32.mrf.mxu0 }
 0x9dd   : > { %5396 = vmatmul.mubr.msk.bf16.vlgmr.msra.gmra.mxu1 %vm4810_vm15, %v4764_v14 }
 0xa9d   : > { %v4851_v50 = vpop.f32.mrf.mxu1 }
 0xa9e   : > { %v4852_v3 = vadd.f32 %v4851_v50, %v4776_v62 }
 0xa9f   : > { %v5397_v48 = vpop.f32.mrf.mxu1 }
 0xaa0   : > { %4858 = vst.msk [vmem:[%s457_s27] sm:$0x1] %vm4857_vm0, %v4852_v3 }
 0xaa1   : > { %v4854_v28 = vpop.f32.mrf.mxu1 }
 0xaa2   : > { %6057 = shalt.err (!%p6054_p3)
}
 0xaa3   : > { %s6058_s20 = scalar_lea.hbm %s8986_s22, 16  ;;  %s6062_s25 = scalar_lea.hbm %s9041_s14, 32 }
 0xaa4   : > { %p6059_p4 = scmp.ne.s32.totalorder %s8986_s22, %s6058_s20  ;;  %p6063_p9 = scmp.lt.s32.totalorder %s8986_s22, %s9041_s14 }
 0xaa5   : > { %p6064_p10 = scmp.lt.s32.totalorder %s6062_s25, %s6058_s20 }
 0xaa6   : > { %p6060_p7 = pnand %p6059_p4, %p6250_p5 }
 0xaa7   : > { %p6065_p11 = por %p6064_p10, %p6063_p9 }
 0xaa8   : > { %p6061_p8 = pneg %p6060_p7 }
 0xaaa   : > { %p6066_p12 = pnand %p6065_p11, %p6061_p8 }
 0xaac   : > { %6069 = shalt.err (!%p6066_p12)
}
 0xaad   : > { %5400 = dma.vmem_to_hbm [thread:$0]  (%p6250_p5), %s8988_s28, 16, %s8986_s22, %s4860_s21   ;;  %v5398_v2 = vpop.f32.mrf.mxu1 }
 0xaae PF: > { %s9390_s29 = sld [smem:[#allocation7_spill]] }
 0xaaf   : > { %s9391_s27 = sld [smem:[#allocation5_spill]] }
 0xab4   : > { %p5406_p13 = scmp.ge.s32.totalorder %s9390_s29, 2 }
 0xab5   : > { %s4884_s24 = sand.u32 1, %s9391_s27  }
 0xab6   : > { %p5403_p0 = pnand %p5406_p13, %p6254_p6  ;;  %s4885_s17 = scalar_lea.sflag [#allocation3], %s4884_s24 }
 0xab8   : > { %p5404_p1 = pneg %p5403_p0 }
 0xaba   : > { %6087 = dma.done.wait (%p5404_p1), %s4885_s17, 16  }
 0xabb   : > { %6089 = vsyncadd (%p5404_p1), %s4885_s17, 4294967280  ;;  %s9393_s16 = sld [smem:[#allocation8_spill]]  ;;  %s9396_s29 = smov %s6096_s30 }
 0xabc   : > { %s9394_s0 = sld [smem:[#allocation6_spill]] }
 0xabd   : > { %s9395_s15 = sld [smem:[#allocation9_spill]] }
 0xac1   : > { %p24_p2 = scmp.ge.s32.totalorder %s9393_s16, 4  }
 0xac2   : > { %s9397_s30 = smov %s9394_s0 }
 0xac3   :  { %26 = sbr.rel (!%p24_p2) target bundleno = 7 (0x7), region = 111 }
 0xac8   :  { %4889 = vsyncpa [#allocation3], 1 }
 0xac9   :  { %4891 = vsyncpa [#allocation3 + $0x1], 1 }

</bundles_post_ra>
